<compile_context>
chip_gen: v5e
topology: v5e:2x2
jax: 0.10.0
libtpu: 0.0.40
codegen_flags: <defaults>
</compile_context>

<pallas_src>
import functools
import math

import numpy as np
import jax
import jax.numpy as jnp
from jax.experimental import pallas as pl
from jax.experimental.pallas import tpu as pltpu

# ---- Model hyper-parameters (from the PyTorch module) ----
EMBED = 300
FILTER_SIZES = (1, 2, 3, 5)
NUM_FILTERS = 36
N_CLASSES = 5                      # len(classes)
MAX_K = max(FILTER_SIZES)

# ---- Padded / packed layout constants ----
E_PAD = 384                        # 300 -> 3*128 contraction lanes
F_PAD = 128                        # lanes per packed shift block
# Pack up to 3 filters (3*36 = 108 <= 128 lanes) into one lane block set; each group
# needs max(K in group) time-shift blocks.  (2,3,5) + (1,) -> 5 + 1 = 6 blocks (768
# lanes) vs 11 blocks / 1408 lanes for one-block-per-(K, k).
GROUPS = (((2, 3, 5), 5), ((1,), 1))       # (filters_in_group, n_shift_blocks)
N_GROUPS = len(GROUPS)
N_BLOCKS = sum(nb for _, nb in GROUPS)     # 6
N_PACKED = N_BLOCKS * F_PAD                # 768 fused conv output lanes
FEAT_PAD = N_GROUPS * F_PAD                # 256 classifier contraction lanes
NK = len(FILTER_SIZES)

# Static per-lane filter width (drives the valid-time mask); huge => lane always masked.
_K_LANE = np.full((N_GROUPS, F_PAD), 10**6, dtype=np.int64)
for _g, (_ks, _) in enumerate(GROUPS):
    for _p, _K in enumerate(_ks):
        _K_LANE[_g, _p * NUM_FILTERS:(_p + 1) * NUM_FILTERS] = _K

# Small synthetic shapes for the example run.
VOCAB = 512                        # real module uses 120000 + a pickled embedding matrix
BATCH = 2
SEQ_LEN = 16


def _round_up(x, m):
    return (x + m - 1) // m * m


def cnn_text_kernel(emb_ref, wf_ref, bmask_ref, fcw_ref, fcb_ref, out_ref, proj_ref, *,
                    tb, lp, seq_len):
    """One fused MXU matmul + VPU/XLU epilogue for a batch tile of `tb` sequences."""
    # (tb*lp, E_PAD) bf16 @ (E_PAD, N_PACKED) bf16 -> f32: every packed (group, k)
    # conv shift block in a single MXU pass.
    proj = jnp.dot(emb_ref[...], wf_ref[...], preferred_element_type=jnp.float32)
    proj_ref[...] = proj.reshape(tb, lp, N_PACKED)

    pooled = []
    blk = 0
    for g, (_, nblk) in enumerate(GROUPS):
        # conv[t, packed_lane] = sum_k proj[t + k, block(g, k)] -- constant (tb, L, 128) shapes.
        acc = proj_ref[:, 0:seq_len, blk * F_PAD:(blk + 1) * F_PAD]
        for k in range(1, nblk):
            acc = acc + proj_ref[:, k:k + seq_len,
                                 (blk + k) * F_PAD:(blk + k + 1) * F_PAD]
        blk += nblk
        # Conv bias and the invalid-tail (-1e30) mask are pre-folded into one broadcast
        # add; ReLU then clamps masked / unused lanes to 0 before max-over-time.
        z = jnp.maximum(acc + bmask_ref[g], 0.0)
        pooled.append(jnp.max(z, axis=1))                         # (tb, 128) per group

    feat = jnp.concatenate(pooled, axis=-1)                       # (tb, 256) f32
    # TODO(synk): nn.Dropout(0.1) is identity in eval mode; training-time masking omitted.
    logits = jnp.dot(feat.astype(jnp.bfloat16), fcw_ref[...],
                     preferred_element_type=jnp.float32)
    out_ref[...] = logits + fcb_ref[...]                          # lane-dense (tb, 128) store


def prepare_params(params):
    """One-time weight packing / casting.  Call ONCE outside the jitted forward."""
    wf = jnp.zeros((E_PAD, N_PACKED), jnp.float32)
    bias_pack = jnp.zeros((N_GROUPS, F_PAD), jnp.float32)
    fcw = jnp.zeros((FEAT_PAD, F_PAD), jnp.float32)
    blk = 0
    for g, (ks, nblk) in enumerate(GROUPS):
        for p, K in enumerate(ks):
            fi = FILTER_SIZES.index(K)
            col = p * NUM_FILTERS
            w = params[f"conv{K}_w"]                              # (K, EMBED, NUM_FILTERS)
            for k in range(K):
                c0 = (blk + k) * F_PAD + col
                wf = wf.at[:EMBED, c0:c0 + NUM_FILTERS].set(w[k])
            bias_pack = bias_pack.at[g, col:col + NUM_FILTERS].set(
                params[f"conv{K}_b"][0])
            r0 = g * F_PAD + col
            fcw = fcw.at[r0:r0 + NUM_FILTERS, :N_CLASSES].set(params["fc_w"][fi])
        blk += nblk
    fcb = jnp.zeros((1, F_PAD), jnp.float32).at[:, :N_CLASSES].set(params["fc_b"])
    return {
        # Cast once; NEVER pad the vocab-sized table (pad activations after the gather).
        "emb_tbl": params["embedding"].astype(jnp.bfloat16),      # (VOCAB, 300) bf16
        "wf": wf.astype(jnp.bfloat16),                            # (384, 768) bf16
        "bias_pack": bias_pack,                                   # (2, 128) f32
        "fcw": fcw.astype(jnp.bfloat16),                          # (256, 128) bf16
        "fcb": fcb,                                               # (1, 128) f32
    }


def cnn_text_forward(x_tokens, prepped):
    B, L = x_tokens.shape
    assert L >= MAX_K, "sequence must be at least as long as the widest filter"

    # Embedding lookup (gather) stays in XLA; only the (B, L, 300) activations are padded.
    # TODO(synk): the gather could be fused into the kernel via scalar-prefetch + manual DMA.
    emb = jnp.take(prepped["emb_tbl"], x_tokens, axis=0)          # (B, L, 300) bf16

    # Time padding: room for the widest filter's shifts, rounded to the f32 sublane (8).
    lp = _round_up(L + MAX_K - 1, 8)
    # Batch tile: multiple of 8 (layout-friendly output block; tb*lp % 16 == 0 for the
    # bf16 emb tile), large enough to amortize per-grid-step overhead, capped at 64 so the
    # f32 proj scratch (tb*lp*768*4 B) stays small even on v7x's 64 MiB VMEM, and sized so
    # the grid has >= 2 steps (keeps both v7x TensorCores busy).
    tb = max(8, min(64, _round_up(pl.cdiv(B, 2), 8)))
    b_pad = _round_up(B, tb)
    if b_pad // tb < 2:
        b_pad = 2 * tb

    emb = jnp.pad(emb, ((0, b_pad - B), (0, lp - L), (0, E_PAD - EMBED)))
    emb2d = emb.reshape(b_pad * lp, E_PAD)

    # Conv bias + valid-time tail mask folded into a single (N_GROUPS, L, 128) add term.
    t = np.arange(L)[None, :, None]
    valid = jnp.asarray(t < (L - _K_LANE + 1)[:, None, :])        # static bool constant
    bias_mask = jnp.where(valid, prepped["bias_pack"][:, None, :], jnp.float32(-1e30))

    kernel = functools.partial(cnn_text_kernel, tb=tb, lp=lp, seq_len=L)
    out = pl.pallas_call(
        kernel,
        out_shape=jax.ShapeDtypeStruct((b_pad, F_PAD), jnp.float32),
        grid_spec=pltpu.PrefetchScalarGridSpec(
            num_scalar_prefetch=0,
            grid=(b_pad // tb,),
            in_specs=[
                pl.BlockSpec((tb * lp, E_PAD), lambda i: (i, 0)),        # batch tile of embeddings
                pl.BlockSpec((E_PAD, N_PACKED), lambda i: (0, 0)),       # packed conv weight
                pl.BlockSpec((N_GROUPS, L, F_PAD), lambda i: (0, 0, 0)), # bias + tail mask
                pl.BlockSpec((FEAT_PAD, F_PAD), lambda i: (0, 0)),       # fc weight
                pl.BlockSpec((1, F_PAD), lambda i: (0, 0)),              # fc bias
            ],
            out_specs=pl.BlockSpec((tb, F_PAD), lambda i: (i, 0)),
            # TODO(synk): grid-invariant weight inputs could use pipeline_mode=pl.Buffered(1)
            # to drop their second buffer (~0.7 MiB); left default for lowering safety.
            scratch_shapes=[pltpu.VMEM((tb, lp, N_PACKED), jnp.float32)],
        ),
        compiler_params=pltpu.CompilerParams(
            dimension_semantics=("parallel",),
            vmem_limit_bytes=32 * 1024 * 1024),
    )(emb2d, prepped["wf"], bias_mask, prepped["fcw"], prepped["fcb"])
    return out[:B, :N_CLASSES]


def reference_forward(x_tokens, params):
    """Pure-JAX f32 reference matching the PyTorch forward (eval mode)."""
    emb = jnp.take(params["embedding"], x_tokens, axis=0)
    feats = []
    for K in FILTER_SIZES:
        w = params[f"conv{K}_w"]                                  # (K, E, F)
        bias = params[f"conv{K}_b"]                               # (1, F)
        T = emb.shape[1] - K + 1
        acc = jnp.zeros((emb.shape[0], T, NUM_FILTERS), jnp.float32)
        for k in range(K):
            acc = acc + jnp.einsum("ble,ef->blf", emb[:, k:k + T, :], w[k],
                                   precision=jax.lax.Precision.HIGHEST)
        acc = jnp.maximum(acc + bias[None], 0.0)
        feats.append(jnp.max(acc, axis=1))                        # (B, F)
    feat = jnp.concatenate(feats, axis=1)                         # (B, 4*F)
    fc_w = params["fc_w"].reshape(-1, N_CLASSES)                  # (4*F, NC)
    return feat @ fc_w + params["fc_b"]


def init_params(key):
    # TODO(synk): real module loads a pickled pretrained embedding matrix; we init synthetically.
    ks = jax.random.split(key, 2 + 2 * len(FILTER_SIZES) + 2)
    params = {}
    params["embedding"] = 0.1 * jax.random.normal(ks[0], (VOCAB, EMBED), jnp.float32)
    idx = 1
    for K in FILTER_SIZES:
        bound = 1.0 / math.sqrt(K * EMBED)                        # PyTorch Conv2d default init scale
        params[f"conv{K}_w"] = jax.random.uniform(
            ks[idx], (K, EMBED, NUM_FILTERS), jnp.float32, -bound, bound)
        params[f"conv{K}_b"] = jax.random.uniform(
            ks[idx + 1], (1, NUM_FILTERS), jnp.float32, -bound, bound)
        idx += 2
    bound = 1.0 / math.sqrt(len(FILTER_SIZES) * NUM_FILTERS)      # PyTorch Linear default init scale
    params["fc_w"] = jax.random.uniform(
        ks[idx], (len(FILTER_SIZES), NUM_FILTERS, N_CLASSES), jnp.float32, -bound, bound)
    params["fc_b"] = jax.random.uniform(
        ks[idx + 1], (1, N_CLASSES), jnp.float32, -bound, bound)
    return params


if __name__ == "__main__":
    key = jax.random.PRNGKey(0)
    pkey, xkey = jax.random.split(key)
    params = init_params(pkey)
    prepped = prepare_params(params)                              # one-time packing, outside jit
    x = jax.random.randint(xkey, (BATCH, SEQ_LEN), 0, VOCAB, dtype=jnp.int32)

    fwd = jax.jit(cnn_text_forward)
    out = jax.block_until_ready(fwd(x, prepped))
    assert out.shape == (BATCH, N_CLASSES), out.shape

    ref = reference_forward(x, params)
    assert jnp.allclose(out, ref, atol=2e-2, rtol=2e-2), (out, ref)

    print("KERNEL_OK")
</pallas_src>

<mosaic_0001>
module attributes {stable_mosaic.version = 11 : i64} {
  func.func @cnn_text_kernel(%arg0: i32, %arg1: memref<192x384xbf16, #tpu.memory_space<vmem>>, %arg2: memref<384x768xbf16, #tpu.memory_space<vmem>>, %arg3: memref<2x16x128xf32, #tpu.memory_space<vmem>>, %arg4: memref<256x128xbf16, #tpu.memory_space<vmem>>, %arg5: memref<1x128xf32, #tpu.memory_space<vmem>>, %arg6: memref<8x128xf32, #tpu.memory_space<vmem>>, %arg7: memref<8x24x768xf32, #tpu.memory_space<vmem>>) attributes {dimension_semantics = [#tpu.dimension_semantics<parallel>], iteration_bounds = array<i64: 2>, scalar_prefetch = 0 : i64, scratch_operands = 1 : i64, tpu.core_type = #tpu.core_type<tc>, window_params = [{transform_indices = @transform_0, window_bounds = array<i64: 192, 384>}, {pipeline_mode = #tpu.pipeline_mode<synchronous>, transform_indices = @transform_1, window_bounds = array<i64: 384, 768>}, {pipeline_mode = #tpu.pipeline_mode<synchronous>, transform_indices = @transform_2, window_bounds = array<i64: 2, 16, 128>}, {pipeline_mode = #tpu.pipeline_mode<synchronous>, transform_indices = @transform_3, window_bounds = array<i64: 256, 128>}, {pipeline_mode = #tpu.pipeline_mode<synchronous>, transform_indices = @transform_4, window_bounds = array<i64: 1, 128>}, {transform_indices = @transform_5, window_bounds = array<i64: 8, 128>}]} {
    %c0 = arith.constant 0 : index
    %c0_0 = arith.constant 0 : index
    %0 = vector.load %arg1[%c0, %c0_0] : memref<192x384xbf16, #tpu.memory_space<vmem>>, vector<192x384xbf16>
    %c0_1 = arith.constant 0 : index
    %c0_2 = arith.constant 0 : index
    %1 = vector.load %arg2[%c0_1, %c0_2] : memref<384x768xbf16, #tpu.memory_space<vmem>>, vector<384x768xbf16>
    %cst = arith.constant dense<0.000000e+00> : vector<192x768xf32>
    %2 = tpu.matmul %0, %1, %cst {dimension_numbers = #tpu.dot_dimension_numbers<[1], [0], [0], [1], [0, 0, 1, 1], [], []>} : vector<192x384xbf16>, vector<384x768xbf16>, vector<192x768xf32> -> vector<192x768xf32>
    %3 = vector.shape_cast %2 : vector<192x768xf32> to vector<8x24x768xf32>
    %c0_3 = arith.constant 0 : index
    %c0_4 = arith.constant 0 : index
    %c0_5 = arith.constant 0 : index
    %4 = vector.load %arg7[%c0_3, %c0_4, %c0_5] : memref<8x24x768xf32, #tpu.memory_space<vmem>>, vector<8x24x768xf32>
    tpu.vector_store %arg7[%c0_3, %c0_4, %c0_5], %3 {strides = array<i32>} : memref<8x24x768xf32, #tpu.memory_space<vmem>>, vector<8x24x768xf32>,
    %c0_6 = arith.constant 0 : index
    %c0_7 = arith.constant 0 : index
    %c0_8 = arith.constant 0 : index
    %5 = vector.load %arg7[%c0_6, %c0_7, %c0_8] : memref<8x24x768xf32, #tpu.memory_space<vmem>>, vector<8x16x128xf32>
    %c0_9 = arith.constant 0 : index
    %c1 = arith.constant 1 : index
    %c128 = arith.constant 128 : index
    %6 = vector.load %arg7[%c0_9, %c1, %c128] : memref<8x24x768xf32, #tpu.memory_space<vmem>>, vector<8x16x128xf32>
    %7 = arith.addf %5, %6 : vector<8x16x128xf32>
    %c0_10 = arith.constant 0 : index
    %c2 = arith.constant 2 : index
    %c256 = arith.constant 256 : index
    %8 = vector.load %arg7[%c0_10, %c2, %c256] : memref<8x24x768xf32, #tpu.memory_space<vmem>>, vector<8x16x128xf32>
    %9 = arith.addf %7, %8 : vector<8x16x128xf32>
    %c0_11 = arith.constant 0 : index
    %c3 = arith.constant 3 : index
    %c384 = arith.constant 384 : index
    %10 = vector.load %arg7[%c0_11, %c3, %c384] : memref<8x24x768xf32, #tpu.memory_space<vmem>>, vector<8x16x128xf32>
    %11 = arith.addf %9, %10 : vector<8x16x128xf32>
    %c0_12 = arith.constant 0 : index
    %c4 = arith.constant 4 : index
    %c512 = arith.constant 512 : index
    %12 = vector.load %arg7[%c0_12, %c4, %c512] : memref<8x24x768xf32, #tpu.memory_space<vmem>>, vector<8x16x128xf32>
    %13 = arith.addf %11, %12 : vector<8x16x128xf32>
    %c0_13 = arith.constant 0 : index
    %c0_14 = arith.constant 0 : index
    %c0_15 = arith.constant 0 : index
    %14 = vector.load %arg3[%c0_13, %c0_14, %c0_15] : memref<2x16x128xf32, #tpu.memory_space<vmem>>, vector<1x16x128xf32>
    %15 = vector.shape_cast %14 : vector<1x16x128xf32> to vector<16x128xf32>
    %16 = vector.shape_cast %15 : vector<16x128xf32> to vector<1x16x128xf32>
    %17 = vector.broadcast %16 : vector<1x16x128xf32> to vector<8x16x128xf32>
    %18 = arith.addf %13, %17 : vector<8x16x128xf32>
    %cst_16 = arith.constant 0.000000e+00 : f32
    %19 = vector.broadcast %cst_16 : f32 to vector<8x16x128xf32>
    %20 = arith.maximumf %18, %19 : vector<8x16x128xf32>
    %cst_17 = arith.constant dense<0xFF800000> : vector<8x128xf32>
    %21 = vector.multi_reduction <maximumf>, %20, %cst_17 [1] : vector<8x16x128xf32> to vector<8x128xf32>
    %c0_18 = arith.constant 0 : index
    %c0_19 = arith.constant 0 : index
    %c640 = arith.constant 640 : index
    %22 = vector.load %arg7[%c0_18, %c0_19, %c640] : memref<8x24x768xf32, #tpu.memory_space<vmem>>, vector<8x16x128xf32>
    %c1_20 = arith.constant 1 : index
    %c0_21 = arith.constant 0 : index
    %c0_22 = arith.constant 0 : index
    %23 = vector.load %arg3[%c1_20, %c0_21, %c0_22] : memref<2x16x128xf32, #tpu.memory_space<vmem>>, vector<1x16x128xf32>
    %24 = vector.shape_cast %23 : vector<1x16x128xf32> to vector<16x128xf32>
    %25 = vector.shape_cast %24 : vector<16x128xf32> to vector<1x16x128xf32>
    %26 = vector.broadcast %25 : vector<1x16x128xf32> to vector<8x16x128xf32>
    %27 = arith.addf %22, %26 : vector<8x16x128xf32>
    %cst_23 = arith.constant 0.000000e+00 : f32
    %28 = vector.broadcast %cst_23 : f32 to vector<8x16x128xf32>
    %29 = arith.maximumf %27, %28 : vector<8x16x128xf32>
    %cst_24 = arith.constant dense<0xFF800000> : vector<8x128xf32>
    %30 = vector.multi_reduction <maximumf>, %29, %cst_24 [1] : vector<8x16x128xf32> to vector<8x128xf32>
    %31 = tpu.concatenate %21, %30 in 1 : vector<8x128xf32>, vector<8x128xf32> -> vector<8x256xf32>
    %32 = arith.truncf %31 : vector<8x256xf32> to vector<8x256xbf16>
    %c0_25 = arith.constant 0 : index
    %c0_26 = arith.constant 0 : index
    %33 = vector.load %arg4[%c0_25, %c0_26] : memref<256x128xbf16, #tpu.memory_space<vmem>>, vector<256x128xbf16>
    %cst_27 = arith.constant dense<0.000000e+00> : vector<8x128xf32>
    %34 = tpu.matmul %32, %33, %cst_27 {dimension_numbers = #tpu.dot_dimension_numbers<[1], [0], [0], [1], [0, 0, 1, 1], [], []>} : vector<8x256xbf16>, vector<256x128xbf16>, vector<8x128xf32> -> vector<8x128xf32>
    %c0_28 = arith.constant 0 : index
    %c0_29 = arith.constant 0 : index
    %35 = vector.load %arg5[%c0_28, %c0_29] : memref<1x128xf32, #tpu.memory_space<vmem>>, vector<1x128xf32>
    %36 = vector.broadcast %35 : vector<1x128xf32> to vector<8x128xf32>
    %37 = arith.addf %34, %36 : vector<8x128xf32>
    %c0_30 = arith.constant 0 : index
    %c0_31 = arith.constant 0 : index
    %38 = vector.load %arg6[%c0_30, %c0_31] : memref<8x128xf32, #tpu.memory_space<vmem>>, vector<8x128xf32>
    tpu.vector_store %arg6[%c0_30, %c0_31], %37 {strides = array<i32>} : memref<8x128xf32, #tpu.memory_space<vmem>>, vector<8x128xf32>,
    return
  }
  func.func @transform_0(%arg0: i32) -> (i32, i32) {
    %c0_i32 = arith.constant 0 : i32
    %c0_i32_0 = arith.constant 0 : i32
    return %arg0, %c0_i32 : i32, i32
  }
  func.func @transform_1(%arg0: i32) -> (i32, i32) {
    %c0_i32 = arith.constant 0 : i32
    %c0_i32_0 = arith.constant 0 : i32
    %c0_i32_1 = arith.constant 0 : i32
    return %c0_i32, %c0_i32_0 : i32, i32
  }
  func.func @transform_2(%arg0: i32) -> (i32, i32, i32) {
    %c0_i32 = arith.constant 0 : i32
    %c0_i32_0 = arith.constant 0 : i32
    %c0_i32_1 = arith.constant 0 : i32
    %c0_i32_2 = arith.constant 0 : i32
    return %c0_i32, %c0_i32_0, %c0_i32_1 : i32, i32, i32
  }
  func.func @transform_3(%arg0: i32) -> (i32, i32) {
    %c0_i32 = arith.constant 0 : i32
    %c0_i32_0 = arith.constant 0 : i32
    %c0_i32_1 = arith.constant 0 : i32
    return %c0_i32, %c0_i32_0 : i32, i32
  }
  func.func @transform_4(%arg0: i32) -> (i32, i32) {
    %c0_i32 = arith.constant 0 : i32
    %c0_i32_0 = arith.constant 0 : i32
    %c0_i32_1 = arith.constant 0 : i32
    return %c0_i32, %c0_i32_0 : i32, i32
  }
  func.func @transform_5(%arg0: i32) -> (i32, i32) {
    %c0_i32 = arith.constant 0 : i32
    %c0_i32_0 = arith.constant 0 : i32
    return %arg0, %c0_i32 : i32, i32
  }
}

</mosaic_0001>

<bundles_post_ra>
// kernel: cnn_text_forward.1
= control target key start
LH: loop header
LB: loop body
LE: loop exit
PB: predicated region body
PF: predicated region fallthrough
CT: control target
= control target key end

     0   :  { %s4723_s18 = smov 0   ;;  %s6570_s0 = inlined_call_operand.vmem [shape: bf16[384,384], index: 0, kind: input, shape index: {}]   ;;  %s6571_s1 = inlined_call_operand.vmem [shape: bf16[384,768], index: 1, kind: input, shape index: {}]   ;;  %s6572_s2 = inlined_call_operand.vmem [shape: f32[2,16,128], index: 2, kind: input, shape index: {}]   ;;  %s6573_s3 = inlined_call_operand.vmem [shape: bf16[256,128], index: 3, kind: input, shape index: {}]   ;;  %s6574_s4 = inlined_call_operand.vmem [shape: f32[1,128], index: 4, kind: input, shape index: {}]   ;;  %s6575_s5 = inlined_call_operand.vmem [shape: f32[16,128], index: 5, kind: output, shape index: {}]  }
   0x1 LB: > { %s4729_s19 = sadd.s32 4294967295, %s4691_s18   ;;  %p3672_p0 = scmp.ge.s32.totalorder %s4691_s18, 1  ;;  %s4691_s18 = sphi %s4723_s18, %s15_s18  }
   0x2   : > { %p189_p1 = scmp.lt.s32.totalorder %s4691_s18, 3 }
   0x4   : > { %p190_p2 = pnand %p3672_p0, %p189_p1 }
   0x6   : > { %193 = sbr.rel (%p190_p2) target bundleno = 1200 (0x4b0), region = 40 }
   0xb   : > { %v3989_v0 = vld [vmem:[%s6571_s1 + $0x150] sm:$0xf]  ;;  %v4544_v1 = vld [vmem:[%s6571_s1 + $0x164] sm:$0xf0]  ;;  %v3965_v5 = vld [vmem:[%s6571_s1 + $0x120] sm:$0xf] }
   0xc   : > { %v4181_v2 = vld [vmem:[%s6571_s1 + $0x2d0] sm:$0xf]  ;;  %v3990_v3 = vor.u32 %v4544_v1, %v3989_v0  ;;  %v4592_v4 = vld [vmem:[%s6571_s1 + $0x2e4] sm:$0xf0]  ;;  %v4538_v6 = vld [vmem:[%s6571_s1 + $0x134] sm:$0xf0] }
   0xd   : > { %v4182_v7 = vor.u32 %v4592_v4, %v4181_v2  ;;  %v4157_v8 = vld [vmem:[%s6571_s1 + $0x2a0] sm:$0xf]  ;;  %v4586_v9 = vld [vmem:[%s6571_s1 + $0x2b4] sm:$0xf0]  ;;  %v3966_v10 = vor.u32 %v4538_v6, %v3965_v5  ;;  %v3941_v12 = vld [vmem:[%s6571_s1 + $0xf0] sm:$0xf] }
   0xe   : > { %1332 = vmatpush.bf16.msra.mxu0 %v3990_v3  ;;  %4659 = vmatpush.bf16.msra.mxu2 %v3990_v3  ;;  %v4158_v11 = vor.u32 %v4586_v9, %v4157_v8  ;;  %v4532_v13 = vld [vmem:[%s6571_s1 + $0x104] sm:$0xf0]  ;;  %v4133_v14 = vld [vmem:[%s6571_s1 + $0x270] sm:$0xf]  ;;  %v3917_v18 = vld [vmem:[%s6571_s1 + $0xc0] sm:$0xf] }
   0xf   : > { %1401 = vmatpush.bf16.msra.mxu1 %v4182_v7  ;;  %4667 = vmatpush.bf16.msra.mxu3 %v4182_v7  ;;  %v4580_v15 = vld [vmem:[%s6571_s1 + $0x284] sm:$0xf0]  ;;  %v3942_v16 = vor.u32 %v4532_v13, %v3941_v12  ;;  %v4526_v19 = vld [vmem:[%s6571_s1 + $0xd4] sm:$0xf0]  ;;  %v4109_v20 = vld [vmem:[%s6571_s1 + $0x240] sm:$0xf] }
  0x10   : > { %v4134_v17 = vor.u32 %v4580_v15, %v4133_v14  ;;  %v4574_v21 = vld [vmem:[%s6571_s1 + $0x254] sm:$0xf0]  ;;  %s217_s29 = smul.u32 24, %s4729_s19  ;;  %v3918_v22 = vor.u32 %v4526_v19, %v3917_v18  ;;  %v3893_v24 = vld [vmem:[%s6571_s1 + $0x90] sm:$0xf]  ;;  %vm2782_vm0 = vcmask 1046528  }
  0x11   : > { %v4110_v23 = vor.u32 %v4574_v21, %v4109_v20  ;;  %v4520_v25 = vld [vmem:[%s6571_s1 + $0xa4] sm:$0xf0]  ;;  %v4085_v26 = vld [vmem:[%s6571_s1 + $0x210] sm:$0xf]  ;;  %v3869_v30 = vld [vmem:[%s6571_s1 + $0x60] sm:$0xf] }
  0x12   : > { %1333 = vmatpush.bf16.msra.mxu0 %v3966_v10  ;;  %4660 = vmatpush.bf16.msra.mxu2 %v3966_v10  ;;  %p218_p3 = scmp.lt.s32.totalorder %s217_s29, 47  ;;  %v4568_v27 = vld [vmem:[%s6571_s1 + $0x224] sm:$0xf0]  ;;  %v3894_v28 = vor.u32 %v4520_v25, %v3893_v24  ;;  %v4514_v31 = vld [vmem:[%s6571_s1 + $0x74] sm:$0xf0]  ;;  %vm2903_vm1 = vcmask 1045504  }
  0x13   : > { %1402 = vmatpush.bf16.msra.mxu1 %v4158_v11  ;;  %4668 = vmatpush.bf16.msra.mxu3 %v4158_v11  ;;  %v4086_v29 = vor.u32 %v4568_v27, %v4085_v26  ;;  %v4061_v32 = vld [vmem:[%s6571_s1 + $0x1e0] sm:$0xf]  ;;  %v4562_v33 = vld [vmem:[%s6571_s1 + $0x1f4] sm:$0xf0]  ;;  %v3870_v34 = vor.u32 %v4514_v31, %v3869_v30  ;;  %v3845_v36 = vld [vmem:[%s6571_s1 + $0x30] sm:$0xf] }
  0x14   : > { %s6730_s29 = smov (!%p218_p3, %s217_s29), 47  ;;  %v4062_v35 = vor.u32 %v4562_v33, %v4061_v32  ;;  %v4508_v37 = vld [vmem:[%s6571_s1 + $0x44] sm:$0xf0]  ;;  %v4037_v38 = vld [vmem:[%s6571_s1 + $0x1b0] sm:$0xf]  ;;  %vm3024_vm2 = vcmask 1044480  }
  0x15   : > { %s4675_s23 = smul.u32 12, %s6730_s29  ;;  %v4556_v39 = vld [vmem:[%s6571_s1 + $0x1c4] sm:$0xf0]  ;;  %v3846_v40 = vor.u32 %v4508_v37, %v3845_v36  ;;  %v3821_v41 = vld [vmem:[%s6571_s1] sm:$0xf]  ;;  %vm3145_vm3 = vcmask 1043456  }
  0x16   : > { %1334 = vmatpush.bf16.msra.mxu0 %v3942_v16  ;;  %4661 = vmatpush.bf16.msra.mxu2 %v3942_v16  ;;  %v4038_v42 = vor.u32 %v4556_v39, %v4037_v38  ;;  %v4502_v43 = vld [vmem:[%s6571_s1 + $0x14] sm:$0xf0]  ;;  %v4013_v44 = vld [vmem:[%s6571_s1 + $0x180] sm:$0xf]  ;;  %v4589_v46 = vld [vmem:[%s6571_s1 + $0x2d4] sm:$0xf] }
  0x17   : > { %1403 = vmatpush.bf16.msra.mxu1 %v4134_v17  ;;  %4669 = vmatpush.bf16.msra.mxu3 %v4134_v17  ;;  %s4824_s11 = scalar_lea.vmem %s6570_s0, %s4675_s23  ;;  %v4550_v45 = vld [vmem:[%s6571_s1 + $0x194] sm:$0xf0]  ;;  %v4183_v47 = vld [vmem:[%s6571_s1 + $0x2e8] sm:$0xf0]  ;;  %v4637_v48 = vld [vmem:[%s6571_s1 + $0x454] sm:$0xf]  ;;  %v3822_v52 = vor.u32 %v4502_v43, %v3821_v41 }
  0x18   : > { %v3677_v49 = vld [vmem:[%s4824_s11] sm:$0xf]  ;;  %v4464_v50 = vld [vmem:[%s4824_s11 + $0x8] sm:$0xf0]  ;;  %v3761_v53 = vld [vmem:[%s4824_s11 + $0xa8] sm:$0xf]  ;;  %v4014_v57 = vor.u32 %v4550_v45, %v4013_v44  ;;  %v4186_v62 = vor.u32 %v4589_v46, %v4183_v47 }
  0x19   : > { %v4375_v51 = vld [vmem:[%s6571_s1 + $0x468] sm:$0xf0]  ;;  %v4485_v54 = vld [vmem:[%s4824_s11 + $0xb0] sm:$0xf0]  ;;  %v4463_v55 = vld [vmem:[%s4824_s11 + $0x4] sm:$0xf]  ;;  %v4870_v3 = vor.u32 %v4464_v50, %v3677_v49 }
  0x1a   : > { %1335 = vmatpush.bf16.msra.mxu0 %v3918_v22  ;;  %4662 = vmatpush.bf16.msra.mxu2 %v3918_v22  ;;  %v4373_v56 = vld [vmem:[%s6571_s1 + $0x450] sm:$0xf]  ;;  %v4484_v59 = vld [vmem:[%s4824_s11 + $0xac] sm:$0xf]  ;;  %v3763_v60 = vld [vmem:[%s4824_s11 + $0xb4] sm:$0xf0]  ;;  %v4378_v63 = vor.u32 %v4637_v48, %v4375_v51  ;;  %v4872_v4 = vor.u32 %v4485_v54, %v3761_v53 }
  0x1b   : > { %1404 = vmatpush.bf16.msra.mxu1 %v4110_v23  ;;  %4670 = vmatpush.bf16.msra.mxu3 %v4110_v23  ;;  %v3679_v58 = vld [vmem:[%s4824_s11 + $0xc] sm:$0xf0]  ;;  %v4583_v61 = vld [vmem:[%s6571_s1 + $0x2a4] sm:$0xf]  ;;  %v4640_v0 = vld [vmem:[%s6571_s1 + $0x464] sm:$0xf0]  ;;  %v4885_v9 = vor.u32 %v4484_v59, %v3763_v60 }
  0x1c   : > { %v4541_v1 = vld [vmem:[%s6571_s1 + $0x154] sm:$0xf]  ;;  %v3991_v2 = vld [vmem:[%s6571_s1 + $0x168] sm:$0xf0]  ;;  %6630 = vst [vmem:[#allocation3_spill] sm:$0xff] %v4872_v4  ;;  %v4883_v8 = vor.u32 %v4463_v55, %v3679_v58  ;;  %v4374_v10 = vor.u32 %v4640_v0, %v4373_v56  ;;  %vm3423_vm4 = vcmask 1041409  }
  0x1d   : > { %v4159_v5 = vld [vmem:[%s6571_s1 + $0x2b8] sm:$0xf0]  ;;  %v4631_v6 = vld [vmem:[%s6571_s1 + $0x424] sm:$0xf]  ;;  %v3994_v11 = vor.u32 %v4541_v1, %v3991_v2  ;;  %v4349_v14 = vld [vmem:[%s6571_s1 + $0x420] sm:$0xf] }
  0x1e   : > { %1336 = vmatpush.bf16.msra.mxu0 %v3894_v28  ;;  %4663 = vmatpush.bf16.msra.mxu2 %v3894_v28  ;;  %v4351_v7 = vld [vmem:[%s6571_s1 + $0x438] sm:$0xf0]  ;;  %6631 = vst [vmem:[#allocation4_spill] sm:$0xff] %v4883_v8  ;;  %v4162_v12 = vor.u32 %v4583_v61, %v4159_v5  ;;  %v4634_v15 = vld [vmem:[%s6571_s1 + $0x434] sm:$0xf0]  ;;  %vm3425_vm5 = vcmask 1042434  }
  0x1f   : > { %1405 = vmatpush.bf16.msra.mxu1 %v4086_v29  ;;  %4671 = vmatpush.bf16.msra.mxu3 %v4086_v29  ;;  %v4354_v13 = vor.u32 %v4631_v6, %v4351_v7  ;;  %v4577_v16 = vld [vmem:[%s6571_s1 + $0x274] sm:$0xf]  ;;  %v4135_v17 = vld [vmem:[%s6571_s1 + $0x288] sm:$0xf0]  ;;  %v4535_v20 = vld [vmem:[%s6571_s1 + $0x124] sm:$0xf]  ;;  %v4350_v21 = vor.u32 %v4634_v15, %v4349_v14 }
  0x20   : > { %v4625_v18 = vld [vmem:[%s6571_s1 + $0x3f4] sm:$0xf]  ;;  %v4327_v19 = vld [vmem:[%s6571_s1 + $0x408] sm:$0xf0]  ;;  %v4325_v22 = vld [vmem:[%s6571_s1 + $0x3f0] sm:$0xf]  ;;  %v4138_v25 = vor.u32 %v4577_v16, %v4135_v17 }
  0x21   : > { %v4628_v23 = vld [vmem:[%s6571_s1 + $0x404] sm:$0xf0]  ;;  %v3967_v24 = vld [vmem:[%s6571_s1 + $0x138] sm:$0xf0]  ;;  %v4330_v26 = vor.u32 %v4625_v18, %v4327_v19  ;;  %v4571_v28 = vld [vmem:[%s6571_s1 + $0x244] sm:$0xf] }
  0x22   : > { %1337 = vmatpush.bf16.msra.mxu0 %v3870_v34  ;;  %4664 = vmatpush.bf16.msra.mxu2 %v3870_v34  ;;  %v3970_v27 = vor.u32 %v4535_v20, %v3967_v24  ;;  %v4111_v29 = vld [vmem:[%s6571_s1 + $0x258] sm:$0xf0]  ;;  %v4619_v30 = vld [vmem:[%s6571_s1 + $0x3c4] sm:$0xf]  ;;  %v4529_v32 = vld [vmem:[%s6571_s1 + $0xf4] sm:$0xf]  ;;  %v4326_v34 = vor.u32 %v4628_v23, %v4325_v22 }
  0x23   : > { %1406 = vmatpush.bf16.msra.mxu1 %v4062_v35  ;;  %4672 = vmatpush.bf16.msra.mxu3 %v4062_v35  ;;  %v4303_v31 = vld [vmem:[%s6571_s1 + $0x3d8] sm:$0xf0]  ;;  %v3943_v33 = vld [vmem:[%s6571_s1 + $0x108] sm:$0xf0]  ;;  %v4114_v36 = vor.u32 %v4571_v28, %v4111_v29  ;;  %v4301_v38 = vld [vmem:[%s6571_s1 + $0x3c0] sm:$0xf] }
  0x24   : > { %v3946_v35 = vor.u32 %v4529_v32, %v3943_v33  ;;  %v4306_v37 = vor.u32 %v4619_v30, %v4303_v31  ;;  %v4622_v39 = vld [vmem:[%s6571_s1 + $0x3d4] sm:$0xf0]  ;;  %v4467_v41 = vld [vmem:[%s4824_s11 + $0x20] sm:$0xf0]  ;;  %v4488_v43 = vld [vmem:[%s4824_s11 + $0xc8] sm:$0xf0] }
  0x25   : > { %v4466_v44 = vld [vmem:[%s4824_s11 + $0x1c] sm:$0xf]  ;;  %v3691_v45 = vld [vmem:[%s4824_s11 + $0x24] sm:$0xf0]  ;;  %v4487_v46 = vld [vmem:[%s4824_s11 + $0xc4] sm:$0xf]  ;;  %v4302_v48 = vor.u32 %v4622_v39, %v4301_v38 }
  0x26   : > { %1338 = vmatpush.bf16.msra.mxu0 %v3846_v40  ;;  %4665 = vmatpush.bf16.msra.mxu2 %v3846_v40  ;;  %v3689_v40 = vld [vmem:[%s4824_s11 + $0x18] sm:$0xf]  ;;  %v3775_v47 = vld [vmem:[%s4824_s11 + $0xcc] sm:$0xf0]  ;;  %v4957_v51 = vor.u32 %v4466_v44, %v3691_v45  ;;  %v4616_v54 = vld [vmem:[%s6571_s1 + $0x3a4] sm:$0xf0] }
  0x27   : > { %1407 = vmatpush.bf16.msra.mxu1 %v4038_v42  ;;  %4673 = vmatpush.bf16.msra.mxu3 %v4038_v42  ;;  %v3773_v42 = vld [vmem:[%s4824_s11 + $0xc0] sm:$0xf]  ;;  %v4953_v49 = vor.u32 %v4467_v41, %v3689_v40  ;;  %v4277_v53 = vld [vmem:[%s6571_s1 + $0x390] sm:$0xf]  ;;  %v4523_v55 = vld [vmem:[%s6571_s1 + $0xc4] sm:$0xf] }
  0x28   : > { %v4955_v50 = vor.u32 %v4488_v43, %v3773_v42  ;;  %6633 = vst [vmem:[#allocation6_spill] sm:$0xff] %v4957_v51  ;;  %v4278_v56 = vor.u32 %v4616_v54, %v4277_v53  ;;  %v4565_v58 = vld [vmem:[%s6571_s1 + $0x214] sm:$0xf]  ;;  %v4087_v59 = vld [vmem:[%s6571_s1 + $0x228] sm:$0xf0]  ;;  %vm3427_vm6 = vcmask 1043459  }
  0x29   : > { %v4090_v61 = vor.u32 %v4565_v58, %v4087_v59  ;;  %v3701_v1 = vld [vmem:[%s4824_s11 + $0x30] sm:$0xf]  ;;  %v4470_v2 = vld [vmem:[%s4824_s11 + $0x38] sm:$0xf0]  ;;  %v3785_v5 = vld [vmem:[%s4824_s11 + $0xd8] sm:$0xf] }
  0x2a   : > { %1339 = vmatpush.bf16.msra.mxu0 %v3822_v52  ;;  %4666 = vmatpush.bf16.msra.mxu2 %v3822_v52  ;;  %6632 = vst [vmem:[#allocation5_spill] sm:$0xff] %v4955_v50  ;;  %v4959_v52 = vor.u32 %v4487_v46, %v3775_v47  ;;  %v4491_v6 = vld [vmem:[%s4824_s11 + $0xe0] sm:$0xf0]  ;;  %v4469_v7 = vld [vmem:[%s4824_s11 + $0x34] sm:$0xf]  ;;  %vm3429_vm7 = vcmask 1044484  }
  0x2b   : > { %1408 = vmatpush.bf16.msra.mxu1 %v4014_v57  ;;  %4674 = vmatpush.bf16.msra.mxu3 %v4014_v57  ;;  %v3919_v57 = vld [vmem:[%s6571_s1 + $0xd8] sm:$0xf0]  ;;  %v4999_v14 = vor.u32 %v4491_v6, %v3785_v5  ;;  %v4517_v17 = vld [vmem:[%s6571_s1 + $0x94] sm:$0xf]  ;;  %v3895_v18 = vld [vmem:[%s6571_s1 + $0xa8] sm:$0xf0] }
  0x2c   : > { %6634 = vst [vmem:[#allocation7_spill] sm:$0xff] %v4959_v52  ;;  %v3922_v60 = vor.u32 %v4523_v55, %v3919_v57  ;;  %v4253_v19 = vld [vmem:[%s6571_s1 + $0x360] sm:$0xf]  ;;  %v4610_v20 = vld [vmem:[%s6571_s1 + $0x374] sm:$0xf0]  ;;  %vm3431_vm8 = vcmask 1045509  }
  0x2d   : > { %1340 = vmatmul.bf16.vlgmr.msra.gmra.mxu0 %v4870_v3  ;;  %1375 = vmatmul.bf16.vlgmr.msra.gmra.mxu2 %v4872_v4  ;;  %6636 = vst [vmem:[#allocation9_spill] sm:$0xff] %v4999_v14  ;;  %v4559_v22 = vld [vmem:[%s6571_s1 + $0x1e4] sm:$0xf]  ;;  %v4254_v23 = vor.u32 %v4610_v20, %v4253_v19  ;;  %v4063_v24 = vld [vmem:[%s6571_s1 + $0x1f8] sm:$0xf0]  ;;  %vm3433_vm9 = vcmask 1046534  }
  0x2e   : > { %1608 = vmatpush.bf16.msrb.mxu0 %v4186_v62  ;;  %1409 = vmatmul.bf16.vlgmr.msra.gmra.mxu1 %v4883_v8  ;;  %v4613_v62 = vld [vmem:[%s6571_s1 + $0x394] sm:$0xf]  ;;  %v4607_v29 = vld [vmem:[%s6571_s1 + $0x364] sm:$0xf]  ;;  %v4255_v30 = vld [vmem:[%s6571_s1 + $0x378] sm:$0xf0] }
  0x2f   : > { %1677 = vmatpush.bf16.msrb.mxu1 %v4378_v63  ;;  %1444 = vmatmul.bf16.vlgmr.msra.gmra.mxu3 %v4885_v9  ;;  %v4279_v63 = vld [vmem:[%s6571_s1 + $0x3a8] sm:$0xf0]  ;;  %v4229_v31 = vld [vmem:[%s6571_s1 + $0x330] sm:$0xf]  ;;  %v4258_v32 = vor.u32 %v4607_v29, %v4255_v30  ;;  %v4604_v33 = vld [vmem:[%s6571_s1 + $0x344] sm:$0xf0] }
  0x30   : > { %1470 = vmatpush.bf16.msrb.mxu2 %v4374_v10  ;;  %1539 = vmatpush.bf16.msrb.mxu3 %v3994_v11  ;;  %v4282_v0 = vor.u32 %v4613_v62, %v4279_v63  ;;  %v3703_v10 = vld [vmem:[%s4824_s11 + $0x3c] sm:$0xf0]  ;;  %v4490_v11 = vld [vmem:[%s4824_s11 + $0xdc] sm:$0xf]  ;;  %v4598_v38 = vld [vmem:[%s6571_s1 + $0x314] sm:$0xf0] }
  0x31   : > { %v5001_v15 = vor.u32 %v4469_v7, %v3703_v10  ;;  %v3713_v39 = vld [vmem:[%s4824_s11 + $0x48] sm:$0xf]  ;;  %v4473_v41 = vld [vmem:[%s4824_s11 + $0x50] sm:$0xf0]  ;;  %v4499_v43 = vld [vmem:[%s6571_s1 + $0x4] sm:$0xf] }
  0x32   : > { %1609 = vmatpush.bf16.msrb.mxu0 %v4162_v12  ;;  %v3787_v12 = vld [vmem:[%s4824_s11 + $0xe4] sm:$0xf0]  ;;  %v3823_v44 = vld [vmem:[%s6571_s1 + $0x18] sm:$0xf0]  ;;  %v3797_v45 = vld [vmem:[%s4824_s11 + $0xf0] sm:$0xf] }
  0x33   : > { %1678 = vmatpush.bf16.msrb.mxu1 %v4354_v13  ;;  %v4997_v13 = vor.u32 %v4470_v2, %v3701_v1  ;;  %6637 = vst [vmem:[#allocation10_spill] sm:$0xff] %v5001_v15  ;;  %v5003_v16 = vor.u32 %v4490_v11, %v3787_v12  ;;  %v4494_v46 = vld [vmem:[%s4824_s11 + $0xf8] sm:$0xf0]  ;;  %v4472_v47 = vld [vmem:[%s4824_s11 + $0x4c] sm:$0xf]  ;;  %v3826_v55 = vor.u32 %v4499_v43, %v3823_v44  ;;  %vm3435_vm10 = vcmask 1047559  }
  0x34   : > { %1471 = vmatpush.bf16.msrb.mxu2 %v4350_v21  ;;  %1540 = vmatpush.bf16.msrb.mxu3 %v3970_v27  ;;  %v3898_v21 = vor.u32 %v4517_v17, %v3895_v18  ;;  %v4066_v27 = vor.u32 %v4559_v22, %v4063_v24  ;;  %v4493_v53 = vld [vmem:[%s4824_s11 + $0xf4] sm:$0xf]  ;;  %v3799_v54 = vld [vmem:[%s4824_s11 + $0xfc] sm:$0xf0]  ;;  %v5073_v57 = vor.u32 %v4494_v46, %v3797_v45  ;;  %v3997_v1 = vld [vmem:[%s6571_s1 + $0x158] sm:$0xf] }
  0x35   : > { %6635 = vst [vmem:[#allocation8_spill] sm:$0xff] %v4997_v13  ;;  %v5077_v59 = vor.u32 %v4493_v53, %v3799_v54  ;;  %v4601_v62 = vld [vmem:[%s6571_s1 + $0x334] sm:$0xf]  ;;  %v4545_v2 = vld [vmem:[%s6571_s1 + $0x16c] sm:$0xf0]  ;;  %p224_p4 = scmp.lt.s32.totalorder %s4729_s19, 1 }
  0x36   : > { %1610 = vmatpush.bf16.msrb.mxu0 %v4138_v25  ;;  %6638 = vst [vmem:[#allocation11_spill] sm:$0xff] %v5003_v16  ;;  %v4511_v25 = vld [vmem:[%s6571_s1 + $0x64] sm:$0xf]  ;;  %v3998_v6 = vor.u32 %v4545_v2, %v3997_v1  ;;  %v3725_v7 = vld [vmem:[%s4824_s11 + $0x60] sm:$0xf] }
  0x37   : > { %1679 = vmatpush.bf16.msrb.mxu1 %v4330_v26  ;;  %v3871_v26 = vld [vmem:[%s6571_s1 + $0x78] sm:$0xf0]  ;;  %6639 = vst [vmem:[#allocation12_spill] sm:$0xff] %v5073_v57  ;;  %v4476_v10 = vld [vmem:[%s4824_s11 + $0x68] sm:$0xf0]  ;;  %s6732_s19 = smov (!%p224_p4, %s4729_s19), 1 }
  0x38   : > { %1472 = vmatpush.bf16.msrb.mxu2 %v4326_v34  ;;  %1541 = vmatpush.bf16.msrb.mxu3 %v3946_v35  ;;  %v3874_v28 = vor.u32 %v4511_v25, %v3871_v26  ;;  %v4505_v34 = vld [vmem:[%s6571_s1 + $0x34] sm:$0xf]  ;;  %v3847_v35 = vld [vmem:[%s6571_s1 + $0x48] sm:$0xf0]  ;;  %6641 = vst [vmem:[#allocation14_spill] sm:$0xff] %v5077_v59  ;;  %s3674_s29 = sshll.u32 %s6732_s19, 3 }
  0x39   : > { %v3850_v40 = vor.u32 %v4505_v34, %v3847_v35  ;;  %v3809_v11 = vld [vmem:[%s4824_s11 + $0x108] sm:$0xf]  ;;  %v4497_v12 = vld [vmem:[%s4824_s11 + $0x110] sm:$0xf0]  ;;  %v4475_v17 = vld [vmem:[%s4824_s11 + $0x64] sm:$0xf]  ;;  %s227_s10 = scalar_lea.vmem %s6575_s5, %s3674_s29 }
  0x3a   : > { %1611 = vmatpush.bf16.msrb.mxu0 %v4114_v36  ;;  %v4230_v36 = vor.u32 %v4604_v33, %v4229_v31  ;;  %v3727_v18 = vld [vmem:[%s4824_s11 + $0x6c] sm:$0xf0]  ;;  %v4496_v19 = vld [vmem:[%s4824_s11 + $0x10c] sm:$0xf]  ;;  %v3811_v20 = vld [vmem:[%s4824_s11 + $0x114] sm:$0xf0]  ;;  %v5111_v22 = vor.u32 %v4497_v12, %v3809_v11 }
  0x3b   : > { %1680 = vmatpush.bf16.msrb.mxu1 %v4306_v37  ;;  %v4205_v37 = vld [vmem:[%s6571_s1 + $0x300] sm:$0xf]  ;;  %v5115_v24 = vor.u32 %v4496_v19, %v3811_v20  ;;  %v4547_v25 = vld [vmem:[%s6571_s1 + $0x184] sm:$0xf]  ;;  %v4015_v26 = vld [vmem:[%s6571_s1 + $0x198] sm:$0xf0] }
  0x3c   : > { %1473 = vmatpush.bf16.msrb.mxu2 %v4302_v48  ;;  %1542 = vmatpush.bf16.msrb.mxu3 %v3922_v60  ;;  %v4206_v42 = vor.u32 %v4598_v38, %v4205_v37  ;;  %v3715_v48 = vld [vmem:[%s4824_s11 + $0x54] sm:$0xf0]  ;;  %v4553_v60 = vld [vmem:[%s6571_s1 + $0x1b4] sm:$0xf]  ;;  %6642 = vst [vmem:[#allocation15_spill] sm:$0xff] %v5111_v22 }
  0x3d   : > { %1345 = vmatmul.bf16.gmra.mxu0 %v4953_v49  ;;  %1380 = vmatmul.bf16.gmra.mxu2 %v4955_v50  ;;  %v5075_v58 = vor.u32 %v4472_v47, %v3715_v48  ;;  %6644 = vst [vmem:[#allocation17_spill] sm:$0xff] %v5115_v24  ;;  %v4207_v29 = vld [vmem:[%s6571_s1 + $0x318] sm:$0xf0]  ;;  %v4189_v30 = vld [vmem:[%s6571_s1 + $0x2d8] sm:$0xf] }
  0x3e   : > { %1414 = vmatmul.bf16.gmra.mxu1 %v4957_v51  ;;  %1612 = vmatpush.bf16.msrb.mxu0 %v4090_v61  ;;  %v4039_v61 = vld [vmem:[%s6571_s1 + $0x1c8] sm:$0xf0]  ;;  %v4593_v31 = vld [vmem:[%s6571_s1 + $0x2ec] sm:$0xf0]  ;;  %v3737_v34 = vld [vmem:[%s4824_s11 + $0x78] sm:$0xf] }
  0x3f   : > { %1449 = vmatmul.bf16.gmra.mxu3 %v4959_v52  ;;  %1681 = vmatpush.bf16.msrb.mxu1 %v4282_v0  ;;  %6640 = vst [vmem:[#allocation13_spill] sm:$0xff] %v5075_v58  ;;  %v4042_v63 = vor.u32 %v4553_v60, %v4039_v61  ;;  %v4231_v0 = vld [vmem:[%s6571_s1 + $0x348] sm:$0xf0]  ;;  %v4190_v33 = vor.u32 %v4593_v31, %v4189_v30  ;;  %v4479_v35 = vld [vmem:[%s4824_s11 + $0x80] sm:$0xf0] }
  0x40   : > { %1474 = vmatpush.bf16.msrb.mxu2 %v4278_v56  ;;  %1543 = vmatpush.bf16.msrb.mxu3 %v3898_v21  ;;  %v5071_v56 = vor.u32 %v4473_v41, %v3713_v39  ;;  %v4234_v5 = vor.u32 %v4601_v62, %v4231_v0  ;;  %v5109_v21 = vor.u32 %v4476_v10, %v3725_v7  ;;  %v4465_v37 = vld [vmem:[%s4824_s11 + $0x10] sm:$0xf0]  ;;  %v4478_v38 = vld [vmem:[%s4824_s11 + $0x7c] sm:$0xf]  ;;  %v3739_v39 = vld [vmem:[%s4824_s11 + $0x84] sm:$0xf0] }
  0x41   : > { %v4381_v43 = vld [vmem:[%s6571_s1 + $0x458] sm:$0xf]  ;;  %v4641_v44 = vld [vmem:[%s6571_s1 + $0x46c] sm:$0xf0]  ;;  %v4542_v45 = vld [vmem:[%s6571_s1 + $0x15c] sm:$0xf] }
  0x42   : > { %1613 = vmatpush.bf16.msrb.mxu0 %v4066_v27  ;;  %v4595_v27 = vld [vmem:[%s6571_s1 + $0x304] sm:$0xf]  ;;  %v4382_v46 = vor.u32 %v4641_v44, %v4381_v43  ;;  %v3999_v47 = vld [vmem:[%s6571_s1 + $0x170] sm:$0xf0]  ;;  %v3973_v48 = vld [vmem:[%s6571_s1 + $0x128] sm:$0xf] }
  0x43   : > { %1682 = vmatpush.bf16.msrb.mxu1 %v4258_v32  ;;  %v4210_v32 = vor.u32 %v4595_v27, %v4207_v29  ;;  %v4539_v53 = vld [vmem:[%s6571_s1 + $0x13c] sm:$0xf0]  ;;  %v4002_v54 = vor.u32 %v4542_v45, %v3999_v47  ;;  %v3749_v60 = vld [vmem:[%s4824_s11 + $0x90] sm:$0xf]  ;;  %v4482_v61 = vld [vmem:[%s4824_s11 + $0x98] sm:$0xf0] }
  0x44   : > { %1475 = vmatpush.bf16.msrb.mxu2 %v4254_v23  ;;  %1544 = vmatpush.bf16.msrb.mxu3 %v3874_v28  ;;  %v5113_v23 = vor.u32 %v4475_v17, %v3727_v18  ;;  %v4018_v28 = vor.u32 %v4547_v25, %v4015_v26  ;;  %v3697_v62 = vld [vmem:[%s4824_s11 + $0x20] sm:$0xf]  ;;  %v4481_v0 = vld [vmem:[%s4824_s11 + $0x94] sm:$0xf]  ;;  %v5179_v2 = vor.u32 %v4482_v61, %v3749_v60  ;;  %v4165_v7 = vld [vmem:[%s6571_s1 + $0x2a8] sm:$0xf] }
  0x45   : > { %v3751_v1 = vld [vmem:[%s4824_s11 + $0x9c] sm:$0xf0]  ;;  %v4357_v12 = vld [vmem:[%s6571_s1 + $0x428] sm:$0xf]  ;;  %v4536_v18 = vld [vmem:[%s6571_s1 + $0x12c] sm:$0xf] }
  0x46   : > { %1614 = vmatpush.bf16.msrb.mxu0 %v4042_v63  ;;  %6643 = vst [vmem:[#allocation16_spill] sm:$0xff] %v5113_v23  ;;  %v4468_v63 = vld [vmem:[%s4824_s11 + $0x28] sm:$0xf0]  ;;  %v4587_v10 = vld [vmem:[%s6571_s1 + $0x2bc] sm:$0xf0] }
  0x47   : > { %1683 = vmatpush.bf16.msrb.mxu1 %v4234_v5  ;;  %v5181_v5 = vor.u32 %v4468_v63, %v3697_v62  ;;  %v4166_v11 = vor.u32 %v4587_v10, %v4165_v7  ;;  %v4635_v17 = vld [vmem:[%s6571_s1 + $0x43c] sm:$0xf0]  ;;  %v3975_v20 = vld [vmem:[%s6571_s1 + $0x140] sm:$0xf0]  ;;  %v3709_v25 = vld [vmem:[%s4824_s11 + $0x38] sm:$0xf] }
  0x48   : > { %1476 = vmatpush.bf16.msrb.mxu2 %v4230_v36  ;;  %1545 = vmatpush.bf16.msrb.mxu3 %v3850_v40  ;;  %v3685_v36 = vld [vmem:[%s4824_s11 + $0x8] sm:$0xf]  ;;  %v5145_v40 = vor.u32 %v4479_v35, %v3737_v34  ;;  %v4358_v19 = vor.u32 %v4635_v17, %v4357_v12  ;;  %v4471_v26 = vld [vmem:[%s4824_s11 + $0x40] sm:$0xf0]  ;;  %v3978_v27 = vor.u32 %v4536_v18, %v3975_v20  ;;  %v3949_v29 = vld [vmem:[%s6571_s1 + $0xf8] sm:$0xf] }
  0x49   : > { %v5147_v41 = vor.u32 %v4465_v37, %v3685_v36  ;;  %6647 = vst [vmem:[#allocation20_spill] sm:$0xff] %v5181_v5  ;;  %v4533_v30 = vld [vmem:[%s6571_s1 + $0x10c] sm:$0xf0]  ;;  %v4474_v36 = vld [vmem:[%s4824_s11 + $0x58] sm:$0xf0] }
  0x4a   : > { %1615 = vmatpush.bf16.msrb.mxu0 %v4018_v28  ;;  %v5209_v28 = vor.u32 %v4471_v26, %v3709_v25  ;;  %v3950_v31 = vor.u32 %v4533_v30, %v3949_v29  ;;  %v3721_v35 = vld [vmem:[%s4824_s11 + $0x50] sm:$0xf]  ;;  %v4333_v44 = vld [vmem:[%s6571_s1 + $0x3f8] sm:$0xf]  ;;  %v3925_v63 = vld [vmem:[%s6571_s1 + $0xc8] sm:$0xf] }
  0x4b   : > { %1684 = vmatpush.bf16.msrb.mxu1 %v4210_v32  ;;  %6645 = vst [vmem:[#allocation18_spill] sm:$0xff] %v5147_v41  ;;  %v4141_v32 = vld [vmem:[%s6571_s1 + $0x278] sm:$0xf]  ;;  %v5229_v37 = vor.u32 %v4474_v36, %v3721_v35  ;;  %v4629_v45 = vld [vmem:[%s6571_s1 + $0x40c] sm:$0xf0] }
  0x4c   : > { %1477 = vmatpush.bf16.msrb.mxu2 %v4206_v42  ;;  %1546 = vmatpush.bf16.msrb.mxu3 %v3826_v55  ;;  %v5149_v42 = vor.u32 %v4478_v38, %v3739_v39  ;;  %v3974_v55 = vor.u32 %v4539_v53, %v3973_v48  ;;  %6649 = vst [vmem:[#allocation22_spill] sm:$0xff] %v5209_v28  ;;  %v3951_v48 = vld [vmem:[%s6571_s1 + $0x110] sm:$0xf0]  ;;  %v3733_v7 = vld [vmem:[%s4824_s11 + $0x68] sm:$0xf] }
  0x4d   : > { %1350 = vmatmul.bf16.gmra.mxu0 %v4997_v13  ;;  %1385 = vmatmul.bf16.gmra.mxu2 %v4999_v14  ;;  %6650 = vst [vmem:[#allocation23_spill] sm:$0xff] %v5229_v37  ;;  %v4334_v47 = vor.u32 %v4629_v45, %v4333_v44  ;;  %v4477_v10 = vld [vmem:[%s4824_s11 + $0x70] sm:$0xf0]  ;;  %v4117_v25 = vld [vmem:[%s6571_s1 + $0x248] sm:$0xf] }
  0x4e   : > { %1419 = vmatmul.bf16.gmra.mxu1 %v5001_v15  ;;  %6646 = vst [vmem:[#allocation19_spill] sm:$0xff] %v5149_v42  ;;  %1884 = vmatpush.bf16.msra.mxu0 %v4382_v46  ;;  %v4530_v46 = vld [vmem:[%s6571_s1 + $0xfc] sm:$0xf]  ;;  %v5259_v17 = vor.u32 %v4477_v10, %v3733_v7  ;;  %v4575_v26 = vld [vmem:[%s6571_s1 + $0x25c] sm:$0xf0] }
  0x4f   : > { %1454 = vmatmul.bf16.gmra.mxu3 %v5003_v16  ;;  %1953 = vmatpush.bf16.msra.mxu1 %v4002_v54  ;;  %v3954_v54 = vor.u32 %v4530_v46, %v3951_v48  ;;  %v4309_v35 = vld [vmem:[%s6571_s1 + $0x3c8] sm:$0xf]  ;;  %v4623_v36 = vld [vmem:[%s6571_s1 + $0x3dc] sm:$0xf0]  ;;  %v3927_v44 = vld [vmem:[%s6571_s1 + $0xe0] sm:$0xf0] }
  0x50   : > { %1746 = vmatpush.bf16.msra.mxu2 %v3998_v6  ;;  %1815 = vmatpush.bf16.msra.mxu3 %v4190_v33  ;;  %v5183_v6 = vor.u32 %v4481_v0, %v3751_v1  ;;  %v4581_v33 = vld [vmem:[%s6571_s1 + $0x28c] sm:$0xf0]  ;;  %v4527_v0 = vld [vmem:[%s6571_s1 + $0xdc] sm:$0xf0]  ;;  %6651 = vst [vmem:[#allocation24_spill] sm:$0xff] %v5259_v17 }
  0x51   : > { %v4142_v34 = vor.u32 %v4581_v33, %v4141_v32  ;;  %v3926_v1 = vor.u32 %v4527_v0, %v3925_v63  ;;  %v3745_v45 = vld [vmem:[%s4824_s11 + $0x80] sm:$0xf]  ;;  %v4480_v46 = vld [vmem:[%s4824_s11 + $0x88] sm:$0xf0]  ;;  %v3901_v63 = vld [vmem:[%s6571_s1 + $0x98] sm:$0xf] }
  0x52   : > { %6648 = vst [vmem:[#allocation21_spill] sm:$0xff] %v5183_v6  ;;  %1885 = vmatpush.bf16.msra.mxu0 %v4358_v19  ;;  %v4521_v0 = vld [vmem:[%s6571_s1 + $0xac] sm:$0xf0] }
  0x53   : > { %1954 = vmatpush.bf16.msra.mxu1 %v3978_v27  ;;  %v4118_v27 = vor.u32 %v4575_v26, %v4117_v25  ;;  %v4569_v25 = vld [vmem:[%s6571_s1 + $0x22c] sm:$0xf0] }
  0x54   : > { %1747 = vmatpush.bf16.msra.mxu2 %v3974_v55  ;;  %1816 = vmatpush.bf16.msra.mxu3 %v4166_v11 }
  0x56   : > { %1886 = vmatpush.bf16.msra.mxu0 %v4334_v47 }
  0x57   : > { %1955 = vmatpush.bf16.msra.mxu1 %v3954_v54  ;;  %v5291_v54 = vor.u32 %v4480_v46, %v3745_v45  ;;  %v4617_v45 = vld [vmem:[%s6571_s1 + $0x3ac] sm:$0xf0]  ;;  %v4518_v46 = vld [vmem:[%s6571_s1 + $0x9c] sm:$0xf] }
  0x58   : > { %1748 = vmatpush.bf16.msra.mxu2 %v3950_v31  ;;  %1817 = vmatpush.bf16.msra.mxu3 %v4142_v34 }
  0x5c   : > { %1749 = vmatpush.bf16.msra.mxu2 %v3926_v1  ;;  %1818 = vmatpush.bf16.msra.mxu3 %v4118_v27  ;;  %v3902_v1 = vor.u32 %v4521_v0, %v3901_v63  ;;  %v3757_v27 = vld [vmem:[%s4824_s11 + $0x98] sm:$0xf] }
  0x5d   : > { %1355 = vmatmul.bf16.gmra.mxu0 %v5071_v56  ;;  %1390 = vmatmul.bf16.gmra.mxu2 %v5073_v57 }
  0x5e   : > { %1424 = vmatmul.bf16.gmra.mxu1 %v5075_v58 }
  0x5f   : > { %1459 = vmatmul.bf16.gmra.mxu3 %v5077_v59 }
  0x60   : > { %1750 = vmatpush.bf16.msra.mxu2 %v3902_v1 }
  0x6d   : > { %1360 = vmatmul.bf16.gmra.mxu0 %v5109_v21  ;;  %1395 = vmatmul.bf16.gmra.mxu2 %v5111_v22 }
  0x6e   : > { %1429 = vmatmul.bf16.gmra.mxu1 %v5113_v23 }
  0x6f   : > { %1464 = vmatmul.bf16.gmra.mxu3 %v5115_v24 }
  0x7d   : > { %1365 = vmatmul.bf16.gmra.mxu0 %v5145_v40  ;;  %1478 = vmatmul.bf16.vlgmr.msrb.gmra.mxu2 %v5147_v41 }
  0x7e   : > { %1434 = vmatmul.bf16.gmra.mxu1 %v5149_v42 }
  0x7f   : > { %1547 = vmatmul.bf16.vlgmr.msrb.gmra.mxu3 %v4870_v3 }
  0x8d   : > { %1370 = vmatmul.bf16.gmra.mxu0 %v5179_v2  ;;  %1483 = vmatmul.bf16.gmra.mxu2 %v5181_v5 }
  0x8e   : > { %1439 = vmatmul.bf16.gmra.mxu1 %v5183_v6 }
  0x8f   : > { %1552 = vmatmul.bf16.gmra.mxu3 %v4953_v49 }
  0x9d   : > { %1488 = vmatmul.bf16.gmra.mxu2 %v5209_v28  ;;  %1616 = vmatmul.bf16.vlgmr.msrb.gmra.mxu0 %v4883_v8 }
  0x9e   : > { %1685 = vmatmul.bf16.vlgmr.msrb.gmra.mxu1 %v5147_v41 }
  0x9f   : > { %1557 = vmatmul.bf16.gmra.mxu3 %v4997_v13 }
  0xaa   : > { %v1341_v38 = vpop.f32.mrf.mxu0 }
  0xab   : > { %v1410_v39 = vpop.f32.mrf.mxu1 }
  0xac   : > { %v5231_v43 = vadd.f32 %v1410_v39, %v1341_v38  ;;  %v4524_v38 = vld [vmem:[%s6571_s1 + $0xcc] sm:$0xf]  ;;  %v4310_v39 = vor.u32 %v4623_v36, %v4309_v35 }
  0xad   : > { %1493 = vmatmul.bf16.gmra.mxu2 %v5229_v37  ;;  %1621 = vmatmul.bf16.gmra.mxu0 %v4957_v51  ;;  %v3930_v47 = vor.u32 %v4524_v38, %v3927_v44  ;;  %v4285_v44 = vld [vmem:[%s6571_s1 + $0x398] sm:$0xf] }
  0xae   : > { %1690 = vmatmul.bf16.gmra.mxu1 %v5181_v5  ;;  %1887 = vmatpush.bf16.msra.mxu0 %v4310_v39 }
  0xaf   : > { %1562 = vmatmul.bf16.gmra.mxu3 %v5071_v56  ;;  %1956 = vmatpush.bf16.msra.mxu1 %v3930_v47  ;;  %v4286_v47 = vor.u32 %v4617_v45, %v4285_v44 }
  0xb0   : > { %v1376_v53 = vpop.f32.mrf.mxu2 }
  0xb2   : > { %v1445_v55 = vpop.f32.mrf.mxu3  ;;  %v1343_v60 = vpop.f32.mrf.mxu0  ;;  %1888 = vmatpush.bf16.msra.mxu0 %v4286_v47 }
  0xb3   : > { %v1412_v61 = vpop.f32.mrf.mxu1 }
  0xb4   : > { %v5249_v62 = vadd.f32 %v1412_v61, %v1343_v60 }
  0xb8   : > { %v1378_v11 = vpop.f32.mrf.mxu2 }
  0xba   : > { %v1447_v12 = vpop.f32.mrf.mxu3  ;;  %v1346_v18 = vpop.f32.mrf.mxu0 }
  0xbb   : > { %v5261_v19 = vadd.f32 %v1447_v12, %v1378_v11  ;;  %v1415_v20 = vpop.f32.mrf.mxu1 }
  0xbc   : > { %v4093_v20 = vld [vmem:[%s6571_s1 + $0x218] sm:$0xf] }
  0xbd   : > { %1498 = vmatmul.bf16.gmra.mxu2 %v5259_v17  ;;  %1626 = vmatmul.bf16.gmra.mxu0 %v5001_v15  ;;  %v4094_v26 = vor.u32 %v4569_v25, %v4093_v20  ;;  %v4486_v20 = vld [vmem:[%s4824_s11 + $0xb8] sm:$0xf0] }
  0xbe   : > { %1695 = vmatmul.bf16.gmra.mxu1 %v5209_v28 }
  0xbf   : > { %1567 = vmatmul.bf16.gmra.mxu3 %v5109_v21 }
  0xc0   : > { %v1381_v29 = vpop.f32.mrf.mxu2  ;;  %1819 = vmatpush.bf16.msra.mxu3 %v4094_v26 }
  0xc2   : > { %v1450_v30 = vpop.f32.mrf.mxu3  ;;  %v1348_v31 = vpop.f32.mrf.mxu0 }
  0xc3   : > { %v5273_v32 = vadd.f32 %v1450_v30, %v1381_v29  ;;  %v1417_v33 = vpop.f32.mrf.mxu1  ;;  %v4483_v29 = vld [vmem:[%s4824_s11 + $0xa0] sm:$0xf0] }
  0xc4   : > { %v5275_v34 = vadd.f32 %v1417_v33, %v1348_v31  ;;  %v5315_v33 = vor.u32 %v4483_v29, %v3757_v27 }
  0xc6   : > { %6652 = vst [vmem:[#allocation25_spill] sm:$0xff] %v5315_v33 }
  0xc8   : > { %v1383_v48 = vpop.f32.mrf.mxu2 }
  0xc9   : > { %v3903_v48 = vld [vmem:[%s6571_s1 + $0xb0] sm:$0xf0] }
  0xca   : > { %v1452_v53 = vpop.f32.mrf.mxu3  ;;  %v1351_v55 = vpop.f32.mrf.mxu0 }
  0xcb   : > { %v1420_v60 = vpop.f32.mrf.mxu1 }
  0xcc   : > { %v5293_v61 = vadd.f32 %v1420_v60, %v1351_v55  ;;  %v3906_v55 = vor.u32 %v4518_v46, %v3903_v48 }
  0xcd   : > { %1503 = vmatmul.bf16.gmra.mxu2 %v5291_v54  ;;  %1631 = vmatmul.bf16.gmra.mxu0 %v5075_v58 }
  0xce   : > { %1700 = vmatmul.bf16.gmra.mxu1 %v5229_v37 }
  0xcf   : > { %1572 = vmatmul.bf16.gmra.mxu3 %v5145_v40  ;;  %1957 = vmatpush.bf16.msra.mxu1 %v3906_v55 }
  0xd0   : > { %v1386_v7 = vpop.f32.mrf.mxu2 }
  0xd2   : > { %v1455_v10 = vpop.f32.mrf.mxu3  ;;  %v1353_v11 = vpop.f32.mrf.mxu0 }
  0xd3   : > { %v5305_v12 = vadd.f32 %v1455_v10, %v1386_v7  ;;  %v1422_v18 = vpop.f32.mrf.mxu1  ;;  %v3877_v7 = vld [vmem:[%s6571_s1 + $0x68] sm:$0xf]  ;;  %v4515_v10 = vld [vmem:[%s6571_s1 + $0x7c] sm:$0xf0] }
  0xd4   : > { %v3878_v11 = vor.u32 %v4515_v10, %v3877_v7  ;;  %v3769_v18 = vld [vmem:[%s4824_s11 + $0xb0] sm:$0xf]  ;;  %v3879_v10 = vld [vmem:[%s6571_s1 + $0x80] sm:$0xf0] }
  0xd5   : > { %v5347_v27 = vor.u32 %v4486_v20, %v3769_v18  ;;  %v4489_v18 = vld [vmem:[%s4824_s11 + $0xd0] sm:$0xf0] }
  0xd6   : > { %1751 = vmatpush.bf16.msra.mxu2 %v3878_v11  ;;  %v3781_v11 = vld [vmem:[%s4824_s11 + $0xc8] sm:$0xf] }
  0xd7   : > { %6653 = vst [vmem:[#allocation26_spill] sm:$0xff] %v5347_v27 }
  0xd8   : > { %v1388_v30 = vpop.f32.mrf.mxu2 }
  0xda   : > { %v1457_v31 = vpop.f32.mrf.mxu3  ;;  %v1356_v35 = vpop.f32.mrf.mxu0 }
  0xdb   : > { %v5317_v36 = vadd.f32 %v1457_v31, %v1388_v30  ;;  %v1425_v38 = vpop.f32.mrf.mxu1 }
  0xdc   : > { %v5319_v39 = vadd.f32 %v1425_v38, %v1356_v35  ;;  %v4069_v35 = vld [vmem:[%s6571_s1 + $0x1e8] sm:$0xf]  ;;  %v4563_v38 = vld [vmem:[%s6571_s1 + $0x1fc] sm:$0xf0] }
  0xdd   : > { %1508 = vmatmul.bf16.gmra.mxu2 %v5315_v33  ;;  %1636 = vmatmul.bf16.gmra.mxu0 %v5113_v23  ;;  %v4070_v44 = vor.u32 %v4563_v38, %v4069_v35 }
  0xde   : > { %1705 = vmatmul.bf16.gmra.mxu1 %v5259_v17 }
  0xdf   : > { %1577 = vmatmul.bf16.gmra.mxu3 %v5179_v2 }
  0xe0   : > { %v1391_v53 = vpop.f32.mrf.mxu2  ;;  %1820 = vmatpush.bf16.msra.mxu3 %v4070_v44 }
  0xe2   : > { %v1460_v60 = vpop.f32.mrf.mxu3  ;;  %v1358_v63 = vpop.f32.mrf.mxu0 }
  0xe3   : > { %v1427_v0 = vpop.f32.mrf.mxu1  ;;  %v4261_v60 = vld [vmem:[%s6571_s1 + $0x368] sm:$0xf] }
  0xe4   : > { %v5337_v1 = vadd.f32 %v1427_v0, %v1358_v63  ;;  %v4611_v63 = vld [vmem:[%s6571_s1 + $0x37c] sm:$0xf0]  ;;  %v4512_v0 = vld [vmem:[%s6571_s1 + $0x6c] sm:$0xf] }
  0xe5   : > { %v4262_v7 = vor.u32 %v4611_v63, %v4261_v60  ;;  %v3882_v20 = vor.u32 %v4512_v0, %v3879_v10  ;;  %v3793_v60 = vld [vmem:[%s4824_s11 + $0xe0] sm:$0xf]  ;;  %v4492_v63 = vld [vmem:[%s4824_s11 + $0xe8] sm:$0xf0]  ;;  %v3853_v0 = vld [vmem:[%s6571_s1 + $0x38] sm:$0xf] }
  0xe7   : > { %1889 = vmatpush.bf16.msra.mxu0 %v4262_v7  ;;  %1958 = vmatpush.bf16.msra.mxu1 %v3882_v20  ;;  %v4509_v7 = vld [vmem:[%s6571_s1 + $0x4c] sm:$0xf0]  ;;  %v5401_v20 = vor.u32 %v4492_v63, %v3793_v60 }
  0xe8   : > { %v1393_v25 = vpop.f32.mrf.mxu2 }
  0xea   : > { %v1462_v26 = vpop.f32.mrf.mxu3  ;;  %v1361_v29 = vpop.f32.mrf.mxu0 }
  0xeb   : > { %v5349_v30 = vadd.f32 %v1462_v26, %v1393_v25  ;;  %v1430_v31 = vpop.f32.mrf.mxu1  ;;  %v5379_v29 = vor.u32 %v4489_v18, %v3781_v11  ;;  %v3854_v11 = vor.u32 %v4509_v7, %v3853_v0  ;;  %v3805_v7 = vld [vmem:[%s4824_s11 + $0xf8] sm:$0xf] }
  0xed   : > { %1513 = vmatmul.bf16.gmra.mxu2 %v5347_v27  ;;  %1641 = vmatmul.bf16.gmra.mxu0 %v5149_v42  ;;  %6655 = vst [vmem:[#allocation28_spill] sm:$0xff] %v5379_v29 }
  0xee   : > { %1710 = vmatmul.bf16.gmra.mxu1 %v5291_v54  ;;  %1752 = vmatpush.bf16.msra.mxu2 %v3854_v11 }
  0xef   : > { %1582 = vmatmul.bf16.gmra.mxu3 %v4872_v4 }
  0xf0   : > { %v1396_v45 = vpop.f32.mrf.mxu2 }
  0xf2   : > { %v1465_v46 = vpop.f32.mrf.mxu3  ;;  %v1363_v47 = vpop.f32.mrf.mxu0 }
  0xf3   : > { %v5361_v48 = vadd.f32 %v1465_v46, %v1396_v45  ;;  %v1432_v53 = vpop.f32.mrf.mxu1 }
  0xf4   : > { %v5363_v55 = vadd.f32 %v1432_v53, %v1363_v47 }
  0xf5   : > { %6654 = vst [vmem:[#allocation27_spill] sm:$0xff] %v5361_v48 }
  0xf8   : > { %v1398_v25 = vpop.f32.mrf.mxu2 }
  0xfa   : > { %v1467_v26 = vpop.f32.mrf.mxu3  ;;  %v1366_v31 = vpop.f32.mrf.mxu0 }
  0xfb   : > { %v1435_v35 = vpop.f32.mrf.mxu1  ;;  %v4045_v26 = vld [vmem:[%s6571_s1 + $0x1b8] sm:$0xf] }
  0xfc   : > { %v5381_v38 = vadd.f32 %v1435_v35, %v1366_v31  ;;  %v4557_v31 = vld [vmem:[%s6571_s1 + $0x1cc] sm:$0xf0] }
  0xfd   : > { %1518 = vmatmul.bf16.gmra.mxu2 %v5379_v29  ;;  %1646 = vmatmul.bf16.gmra.mxu0 %v5183_v6 }
  0xfe   : > { %1715 = vmatmul.bf16.gmra.mxu1 %v5315_v33  ;;  %v4605_v33 = vld [vmem:[%s6571_s1 + $0x34c] sm:$0xf0] }
  0xff   : > { %1587 = vmatmul.bf16.gmra.mxu3 %v4955_v50 }
 0x100   : > { %v1479_v44 = vpop.f32.mrf.mxu2 }
 0x101   : > { %v5388_v45 = vadd.f32 %v1479_v44, %v5231_v43  ;;  %v4046_v44 = vor.u32 %v4557_v31, %v4045_v26  ;;  %v4503_v26 = vld [vmem:[%s6571_s1 + $0x1c] sm:$0xf0]  ;;  %v4021_v31 = vld [vmem:[%s6571_s1 + $0x188] sm:$0xf] }
 0x102   : > { %v1548_v46 = vpop.f32.mrf.mxu3  ;;  %v1368_v47 = vpop.f32.mrf.mxu0 }
 0x103   : > { %v1437_v53 = vpop.f32.mrf.mxu1  ;;  %1821 = vmatpush.bf16.msra.mxu3 %v4046_v44 }
 0x108   : > { %v1481_v10 = vpop.f32.mrf.mxu2 }
 0x109   : > { %v5399_v18 = vadd.f32 %v1481_v10, %v5249_v62  ;;  %v4495_v10 = vld [vmem:[%s4824_s11 + $0x100] sm:$0xf0] }
 0x10a   : > { %v1550_v43 = vpop.f32.mrf.mxu3  ;;  %v1371_v25 = vpop.f32.mrf.mxu0 }
 0x10b   : > { %v1440_v35 = vpop.f32.mrf.mxu1 }
 0x10c   : > { %v5409_v47 = vadd.f32 %v1440_v35, %v1371_v25  ;;  %v3829_v25 = vld [vmem:[%s6571_s1 + $0x8] sm:$0xf] }
 0x10d   : > { %1523 = vmatmul.bf16.gmra.mxu2 %v5401_v20  ;;  %1651 = vmatmul.bf16.gmra.mxu0 %v4885_v9 }
 0x10e   : > { %1720 = vmatmul.bf16.gmra.mxu1 %v5347_v27 }
 0x10f   : > { %1592 = vmatmul.bf16.gmra.mxu3 %v4999_v14  ;;  %v4237_v14 = vld [vmem:[%s6571_s1 + $0x338] sm:$0xf] }
 0x110   : > { %v1484_v62 = vpop.f32.mrf.mxu2 }
 0x111   : > { %v5431_v62 = vor.u32 %v4495_v10, %v3805_v7 }
 0x112   : > { %v1553_v53 = vpop.f32.mrf.mxu3  ;;  %v1373_v60 = vpop.f32.mrf.mxu0 }
 0x113   : > { %v1442_v63 = vpop.f32.mrf.mxu1  ;;  %6656 = vst [vmem:[#allocation29_spill] sm:$0xff] %v5431_v62 }
 0x114   : > { %v5415_v0 = vadd.f32 %v1442_v63, %v1373_v60  ;;  %v3830_v60 = vor.u32 %v4503_v26, %v3829_v25  ;;  %v4551_v63 = vld [vmem:[%s6571_s1 + $0x19c] sm:$0xf0]  ;;  %v4238_v25 = vor.u32 %v4605_v33, %v4237_v14  ;;  %v3855_v26 = vld [vmem:[%s6571_s1 + $0x50] sm:$0xf0] }
 0x115   : > { %v4022_v7 = vor.u32 %v4551_v63, %v4021_v31 }
 0x116   : > { %1753 = vmatpush.bf16.msra.mxu2 %v3830_v60  ;;  %1890 = vmatpush.bf16.msra.mxu0 %v4238_v25 }
 0x117   : > { %1822 = vmatpush.bf16.msra.mxu3 %v4022_v7  ;;  %v3817_v7 = vld [vmem:[%s4824_s11 + $0x110] sm:$0xf] }
 0x118   : > { %v1486_v11 = vpop.f32.mrf.mxu2 }
 0x119   : > { %v5429_v35 = vadd.f32 %v1486_v11, %v5275_v34  ;;  %v4506_v34 = vld [vmem:[%s6571_s1 + $0x3c] sm:$0xf] }
 0x11a   : > { %v1555_v44 = vpop.f32.mrf.mxu3  ;;  %v1617_v27 = vpop.f32.mrf.mxu0  ;;  %v3858_v50 = vor.u32 %v4506_v34, %v3855_v26 }
 0x11b   : > { %v1618_v10 = vadd.f32 %v1617_v27, %v1548_v46  ;;  %v1686_v11 = vpop.f32.mrf.mxu1 }
 0x11c   : > { %1959 = vmatpush.bf16.msra.mxu1 %v3858_v50 }
 0x11d   : > { %v1687_v48 = vadd.f32 %v1686_v11, %v1618_v10  ;;  %1528 = vmatmul.bf16.gmra.mxu2 %v5431_v62  ;;  %1656 = vmatmul.bf16.gmra.mxu0 %v4959_v52  ;;  %v4498_v10 = vld [vmem:[%s4824_s11 + $0x118] sm:$0xf0] }
 0x11e   : > { %1725 = vmatmul.bf16.gmra.mxu1 %v5379_v29  ;;  %v5458_v50 = vor.u32 %v4498_v10, %v3817_v7 }
 0x11f   : > { %1597 = vmatmul.bf16.gmra.mxu3 %v5073_v57  ;;  %2575 = vst [vmem:[#allocation2 + $0x3b0] sm:$0xff] %v1687_v48 }
 0x120   : > { %v1489_v14 = vpop.f32.mrf.mxu2  ;;  %6657 = vst [vmem:[#allocation30_spill] sm:$0xff] %v5458_v50 }
 0x121   : > { %v5453_v33 = vadd.f32 %v1489_v14, %v5293_v61 }
 0x122   : > { %v1558_v27 = vpop.f32.mrf.mxu3  ;;  %v1619_v46 = vpop.f32.mrf.mxu0 }
 0x123   : > { %v1620_v31 = vadd.f32 %v1619_v46, %v1550_v43  ;;  %v1688_v60 = vpop.f32.mrf.mxu1 }
 0x125   : > { %v1689_v63 = vadd.f32 %v1688_v60, %v1620_v31 }
 0x126   : > { %v2734_v34 = vld [vmem:[#allocation2 + $0x3b0] sm:$0xfe] }
 0x127   : > { %v2783_v11 = vrot.slane %v2734_v34, 1  ;;  %v2784_v26 = vrot.slane %v1689_v63, 1  ;;  %v4500_v63 = vld [vmem:[%s6571_s1 + $0xc] sm:$0xf] }
 0x128   : > { %v1491_v29 = vpop.f32.mrf.mxu2 }
 0x129   : > { %v2785_v48 = vsel %vm2782_vm0, %v2783_v11, %v2784_v26 }
 0x12a   : > { %v1560_v25 = vpop.f32.mrf.mxu3  ;;  %v5461_v61 = vadd.f32 %v2785_v48, %v5388_v45  ;;  %v1622_v14 = vpop.f32.mrf.mxu0 }
 0x12b   : > { %v1623_v57 = vadd.f32 %v1622_v14, %v1553_v53  ;;  %v1691_v43 = vpop.f32.mrf.mxu1  ;;  %v4213_v53 = vld [vmem:[%s6571_s1 + $0x308] sm:$0xf] }
 0x12d   : > { %v1692_v46 = vadd.f32 %v1691_v43, %v1623_v57  ;;  %1533 = vmatmul.bf16.gmra.mxu2 %v5458_v50  ;;  %1661 = vmatmul.bf16.gmra.mxu0 %v5003_v16  ;;  %v4599_v57 = vld [vmem:[%s6571_s1 + $0x31c] sm:$0xf0] }
 0x12e   : > { %1730 = vmatmul.bf16.gmra.mxu1 %v5401_v20  ;;  %v4214_v10 = vor.u32 %v4599_v57, %v4213_v53 }
 0x12f   : > { %1602 = vmatmul.bf16.gmra.mxu3 %v5111_v22  ;;  %2587 = vst [vmem:[#allocation2 + $0xc0] sm:$0xff] %v1692_v46  ;;  %v4590_v46 = vld [vmem:[%s6571_s1 + $0x2dc] sm:$0xf] }
 0x130   : > { %v1494_v29 = vpop.f32.mrf.mxu2  ;;  %1891 = vmatpush.bf16.msra.mxu0 %v4214_v10  ;;  %v4638_v10 = vld [vmem:[%s6571_s1 + $0x45c] sm:$0xf] }
 0x131   : > { %v5468_v31 = vadd.f32 %v1494_v29, %v5319_v39  ;;  %v3831_v39 = vld [vmem:[%s6571_s1 + $0x20] sm:$0xf0] }
 0x132   : > { %v1563_v60 = vpop.f32.mrf.mxu3  ;;  %v1624_v45 = vpop.f32.mrf.mxu0  ;;  %v3834_v11 = vor.u32 %v4500_v63, %v3831_v39  ;;  %v4383_v39 = vld [vmem:[%s6571_s1 + $0x470] sm:$0xf0] }
 0x133   : > { %v1625_v34 = vadd.f32 %v1624_v45, %v1555_v44  ;;  %v1693_v7 = vpop.f32.mrf.mxu1  ;;  %v4191_v44 = vld [vmem:[%s6571_s1 + $0x2f0] sm:$0xf0] }
 0x134   : > { %1960 = vmatpush.bf16.msra.mxu1 %v3834_v11  ;;  %v4194_v45 = vor.u32 %v4590_v46, %v4191_v44 }
 0x135   : > { %v1694_v48 = vadd.f32 %v1693_v7, %v1625_v34 }
 0x136   : > { %v2736_v14 = vld [vmem:[#allocation2 + $0xc0] sm:$0x1]  ;;  %2022 = vmatpush.bf16.msrb.mxu2 %v4194_v45 }
 0x137   : > { %v2786_v43 = vrot.slane %v2736_v14, 1  ;;  %2593 = vst [vmem:[#allocation2 + $0xe0] sm:$0xff] %v1694_v48 }
 0x138   : > { %v1496_v29 = vpop.f32.mrf.mxu2 }
 0x139   : > { %v2787_v53 = vsel %vm2782_vm0, %v2784_v26, %v2786_v43  ;;  %v5490_v57 = vadd.f32 %v1496_v29, %v5337_v1  ;;  %v4386_v26 = vor.u32 %v4638_v10, %v4383_v39 }
 0x13a   : > { %v1565_v63 = vpop.f32.mrf.mxu3  ;;  %v5493_v34 = vadd.f32 %v2787_v53, %v5399_v18  ;;  %v1627_v7 = vpop.f32.mrf.mxu0 }
 0x13b   : > { %v1628_v11 = vadd.f32 %v1627_v7, %v1558_v27  ;;  %v1696_v48 = vpop.f32.mrf.mxu1  ;;  %2091 = vmatpush.bf16.msrb.mxu3 %v4386_v26  ;;  %v4005_v26 = vld [vmem:[%s6571_s1 + $0x160] sm:$0xf] }
 0x13d   : > { %v1697_v14 = vadd.f32 %v1696_v48, %v1628_v11  ;;  %1666 = vmatmul.bf16.gmra.mxu0 %v5077_v59  ;;  %1754 = vmatmul.bf16.vlgmr.msra.gmra.mxu2 %v4870_v3 }
 0x13e   : > { %v2737_v1 = vld [vmem:[#allocation2 + $0xe0] sm:$0xfe]  ;;  %1735 = vmatmul.bf16.gmra.mxu1 %v5431_v62 }
 0x13f   : > { %1823 = vmatmul.bf16.vlgmr.msra.gmra.mxu3 %v4883_v8  ;;  %v2788_v18 = vrot.slane %v2737_v1, 1  ;;  %v2789_v43 = vrot.slane %v1697_v14, 1 }
 0x140   : > { %v1499_v46 = vpop.f32.mrf.mxu2 }
 0x141   : > { %v2790_v44 = vsel %vm2782_vm0, %v2788_v18, %v2789_v43 }
 0x142   : > { %v1568_v29 = vpop.f32.mrf.mxu3  ;;  %v5507_v27 = vadd.f32 %v2790_v44, %v5429_v35  ;;  %v1629_v45 = vpop.f32.mrf.mxu0  ;;  %v4546_v35 = vld [vmem:[%s6571_s1 + $0x174] sm:$0xf0] }
 0x143   : > { %v1630_v53 = vadd.f32 %v1629_v45, %v1560_v25  ;;  %v1698_v7 = vpop.f32.mrf.mxu1  ;;  %v4197_v25 = vld [vmem:[%s6571_s1 + $0x2e0] sm:$0xf]  ;;  %v4006_v46 = vor.u32 %v4546_v35, %v4005_v26 }
 0x145   : > { %v1699_v10 = vadd.f32 %v1698_v7, %v1630_v53  ;;  %2160 = vmatpush.bf16.msrb.mxu0 %v4006_v46  ;;  %v4632_v46 = vld [vmem:[%s6571_s1 + $0x42c] sm:$0xf] }
 0x147   : > { %2605 = vst [vmem:[#allocation2 + $0x68] sm:$0xff] %v1699_v10  ;;  %v4167_v10 = vld [vmem:[%s6571_s1 + $0x2c0] sm:$0xf0] }
 0x148   : > { %v1501_v39 = vpop.f32.mrf.mxu2 }
 0x149   : > { %v5510_v11 = vadd.f32 %v1501_v39, %v5363_v55  ;;  %v4594_v55 = vld [vmem:[%s6571_s1 + $0x2f4] sm:$0xf0] }
 0x14a   : > { %v1570_v48 = vpop.f32.mrf.mxu3  ;;  %v1632_v1 = vpop.f32.mrf.mxu0  ;;  %v4198_v44 = vor.u32 %v4594_v55, %v4197_v25  ;;  %v4359_v55 = vld [vmem:[%s6571_s1 + $0x440] sm:$0xf0] }
 0x14b   : > { %v1633_v14 = vadd.f32 %v1632_v1, %v1563_v60  ;;  %v1701_v18 = vpop.f32.mrf.mxu1  ;;  %v4584_v60 = vld [vmem:[%s6571_s1 + $0x2ac] sm:$0xf] }
 0x14c   : > { %2229 = vmatpush.bf16.msrb.mxu1 %v4198_v44  ;;  %v4170_v1 = vor.u32 %v4584_v60, %v4167_v10 }
 0x14d   : > { %v1702_v45 = vadd.f32 %v1701_v18, %v1633_v14  ;;  %1671 = vmatmul.bf16.gmra.mxu0 %v5115_v24  ;;  %1759 = vmatmul.bf16.gmra.mxu2 %v4953_v49 }
 0x14e   : > { %v2739_v53 = vld [vmem:[#allocation2 + $0x68] sm:$0x1]  ;;  %1740 = vmatmul.bf16.gmra.mxu1 %v5458_v50  ;;  %2023 = vmatpush.bf16.msrb.mxu2 %v4170_v1 }
 0x14f   : > { %1828 = vmatmul.bf16.gmra.mxu3 %v4957_v51  ;;  %v2791_v7 = vrot.slane %v2739_v53, 1  ;;  %2611 = vst [vmem:[#allocation2 + $0xb0] sm:$0xff] %v1702_v45 }
 0x150   : > { %v1504_v39 = vpop.f32.mrf.mxu2 }
 0x151   : > { %v2792_v26 = vsel %vm2782_vm0, %v2789_v43, %v2791_v7  ;;  %v5536_v35 = vadd.f32 %v1504_v39, %v5381_v38  ;;  %v4362_v43 = vor.u32 %v4632_v46, %v4359_v55 }
 0x152   : > { %v1573_v25 = vpop.f32.mrf.mxu3  ;;  %v5539_v14 = vadd.f32 %v2792_v26, %v5453_v33  ;;  %v1634_v18 = vpop.f32.mrf.mxu0 }
 0x153   : > { %v1635_v44 = vadd.f32 %v1634_v18, %v1565_v63  ;;  %v1703_v45 = vpop.f32.mrf.mxu1  ;;  %2092 = vmatpush.bf16.msrb.mxu3 %v4362_v43 }
 0x154   : > { %6658 = vst [vmem:[#allocation31_spill] sm:$0xff] %v5539_v14 }
 0x155   : > { %v1704_v53 = vadd.f32 %v1703_v45, %v1635_v44 }
 0x156   : > { %v2740_v38 = vld [vmem:[#allocation2 + $0xb0] sm:$0xfe] }
 0x157   : > { %v2793_v7 = vrot.slane %v2740_v38, 1  ;;  %v2794_v60 = vrot.slane %v1704_v53, 1 }
 0x158   : > { %v1506_v33 = vpop.f32.mrf.mxu2 }
 0x159   : > { %v2795_v10 = vsel %vm2782_vm0, %v2793_v7, %v2794_v60  ;;  %v4578_v7 = vld [vmem:[%s6571_s1 + $0x27c] sm:$0xf] }
 0x15a   : > { %v1575_v39 = vpop.f32.mrf.mxu3  ;;  %v5549_v1 = vadd.f32 %v2795_v10, %v5468_v31  ;;  %v1637_v26 = vpop.f32.mrf.mxu0 }
 0x15b   : > { %v1638_v14 = vadd.f32 %v1637_v26, %v1568_v29  ;;  %v1706_v51 = vpop.f32.mrf.mxu1  ;;  %v3981_v29 = vld [vmem:[%s6571_s1 + $0x130] sm:$0xf] }
 0x15d   : > { %v1707_v50 = vadd.f32 %v1706_v51, %v1638_v14  ;;  %1764 = vmatmul.bf16.gmra.mxu2 %v4997_v13  ;;  %1892 = vmatmul.bf16.vlgmr.msra.gmra.mxu0 %v5147_v41  ;;  %v4540_v51 = vld [vmem:[%s6571_s1 + $0x144] sm:$0xf0]  ;;  %v4173_v14 = vld [vmem:[%s6571_s1 + $0x2b0] sm:$0xf] }
 0x15e   : > { %1961 = vmatmul.bf16.vlgmr.msra.gmra.mxu1 %v4870_v3  ;;  %v3982_v44 = vor.u32 %v4540_v51, %v3981_v29  ;;  %v4626_v29 = vld [vmem:[%s6571_s1 + $0x3fc] sm:$0xf]  ;;  %v4335_v51 = vld [vmem:[%s6571_s1 + $0x410] sm:$0xf0] }
 0x15f   : > { %1833 = vmatmul.bf16.gmra.mxu3 %v5001_v15  ;;  %2623 = vst [vmem:[#allocation2 + $0x2c0] sm:$0xff] %v1707_v50 }
 0x160   : > { %v1509_v63 = vpop.f32.mrf.mxu2  ;;  %2161 = vmatpush.bf16.msrb.mxu0 %v3982_v44 }
 0x161   : > { %v5556_v18 = vadd.f32 %v1509_v63, %v5409_v47  ;;  %v4588_v47 = vld [vmem:[%s6571_s1 + $0x2c4] sm:$0xf0] }
 0x162   : > { %v1578_v46 = vpop.f32.mrf.mxu3  ;;  %v1639_v31 = vpop.f32.mrf.mxu0  ;;  %v4174_v45 = vor.u32 %v4588_v47, %v4173_v14 }
 0x163   : > { %v1640_v55 = vadd.f32 %v1639_v31, %v1570_v48  ;;  %v1708_v50 = vpop.f32.mrf.mxu1  ;;  %v4143_v48 = vld [vmem:[%s6571_s1 + $0x290] sm:$0xf0] }
 0x164   : > { %2230 = vmatpush.bf16.msrb.mxu1 %v4174_v45  ;;  %v4146_v10 = vor.u32 %v4578_v7, %v4143_v48 }
 0x165   : > { %v1709_v43 = vadd.f32 %v1708_v50, %v1640_v55  ;;  %v4338_v50 = vor.u32 %v4626_v29, %v4335_v51 }
 0x166   : > { %v2742_v53 = vld [vmem:[#allocation2 + $0x2c0] sm:$0x1]  ;;  %2024 = vmatpush.bf16.msrb.mxu2 %v4146_v10 }
 0x167   : > { %v2796_v38 = vrot.slane %v2742_v53, 1  ;;  %2629 = vst [vmem:[#allocation2 + $0x220] sm:$0xff] %v1709_v43  ;;  %2093 = vmatpush.bf16.msrb.mxu3 %v4338_v50  ;;  %v3957_v50 = vld [vmem:[%s6571_s1 + $0x100] sm:$0xf] }
 0x168   : > { %v1511_v33 = vpop.f32.mrf.mxu2 }
 0x169   : > { %v2797_v26 = vsel %vm2782_vm0, %v2794_v60, %v2796_v38  ;;  %v5578_v63 = vadd.f32 %v1511_v33, %v5415_v0 }
 0x16a   : > { %v1580_v31 = vpop.f32.mrf.mxu3  ;;  %v5587_v14 = vadd.f32 %v2797_v26, %v5490_v57  ;;  %v1642_v55 = vpop.f32.mrf.mxu0 }
 0x16b   : > { %v1643_v44 = vadd.f32 %v1642_v55, %v1573_v25  ;;  %v1711_v60 = vpop.f32.mrf.mxu1 }
 0x16d   : > { %v1712_v0 = vadd.f32 %v1711_v60, %v1643_v44  ;;  %1769 = vmatmul.bf16.gmra.mxu2 %v5071_v56  ;;  %1897 = vmatmul.bf16.gmra.mxu0 %v5181_v5 }
 0x16e   : > { %v2743_v47 = vld [vmem:[#allocation2 + $0x220] sm:$0xfe]  ;;  %1966 = vmatmul.bf16.gmra.mxu1 %v4953_v49 }
 0x16f   : > { %1838 = vmatmul.bf16.gmra.mxu3 %v5075_v58  ;;  %v2798_v45 = vrot.slane %v2743_v47, 1  ;;  %v2799_v43 = vrot.slane %v1712_v0, 1 }
 0x170   : > { %v1514_v57 = vpop.f32.mrf.mxu2 }
 0x171   : > { %v2800_v53 = vsel %vm2782_vm0, %v2798_v45, %v2799_v43 }
 0x172   : > { %v1583_v38 = vpop.f32.mrf.mxu3  ;;  %v5595_v25 = vadd.f32 %v2800_v53, %v5510_v11  ;;  %v1644_v7 = vpop.f32.mrf.mxu0  ;;  %v4534_v11 = vld [vmem:[%s6571_s1 + $0x114] sm:$0xf0] }
 0x173   : > { %v1645_v48 = vadd.f32 %v1644_v7, %v1575_v39  ;;  %v1713_v33 = vpop.f32.mrf.mxu1  ;;  %v4149_v39 = vld [vmem:[%s6571_s1 + $0x280] sm:$0xf]  ;;  %v3958_v0 = vor.u32 %v4534_v11, %v3957_v50  ;;  %v4119_v7 = vld [vmem:[%s6571_s1 + $0x260] sm:$0xf0]  ;;  %v4620_v50 = vld [vmem:[%s6571_s1 + $0x3cc] sm:$0xf] }
 0x174   : > { %v4311_v11 = vld [vmem:[%s6571_s1 + $0x3e0] sm:$0xf0] }
 0x175   : > { %v1714_v10 = vadd.f32 %v1713_v33, %v1645_v48  ;;  %2162 = vmatpush.bf16.msrb.mxu0 %v3958_v0 }
 0x177   : > { %2641 = vst [vmem:[#allocation2 + $0x200] sm:$0xff] %v1714_v10 }
 0x178   : > { %v1516_v26 = vpop.f32.mrf.mxu2 }
 0x179   : > { %v5598_v29 = vadd.f32 %v1516_v26, %v5261_v19  ;;  %v4582_v19 = vld [vmem:[%s6571_s1 + $0x294] sm:$0xf0] }
 0x17a   : > { %v5600_v51 = vpop.f32.mrf.mxu3  ;;  %v1647_v55 = vpop.f32.mrf.mxu0  ;;  %v4150_v47 = vor.u32 %v4582_v19, %v4149_v39 }
 0x17b   : > { %v1648_v44 = vadd.f32 %v1647_v55, %v1578_v46  ;;  %v1716_v60 = vpop.f32.mrf.mxu1  ;;  %v4572_v46 = vld [vmem:[%s6571_s1 + $0x24c] sm:$0xf] }
 0x17c   : > { %2231 = vmatpush.bf16.msrb.mxu1 %v4150_v47  ;;  %v4122_v33 = vor.u32 %v4572_v46, %v4119_v7 }
 0x17d   : > { %v1717_v45 = vadd.f32 %v1716_v60, %v1648_v44  ;;  %1774 = vmatmul.bf16.gmra.mxu2 %v5109_v21  ;;  %1902 = vmatmul.bf16.gmra.mxu0 %v5209_v28  ;;  %v4314_v60 = vor.u32 %v4620_v50, %v4311_v11  ;;  %v4125_v50 = vld [vmem:[%s6571_s1 + $0x250] sm:$0xf]  ;;  %v4576_v11 = vld [vmem:[%s6571_s1 + $0x264] sm:$0xf0] }
 0x17e   : > { %v2745_v57 = vld [vmem:[#allocation2 + $0x200] sm:$0x1]  ;;  %1971 = vmatmul.bf16.gmra.mxu1 %v4997_v13  ;;  %2025 = vmatpush.bf16.msrb.mxu2 %v4122_v33 }
 0x17f   : > { %1843 = vmatmul.bf16.gmra.mxu3 %v5113_v23  ;;  %v2801_v53 = vrot.slane %v2745_v57, 1  ;;  %2647 = vst [vmem:[#allocation2 + $0x160] sm:$0xff] %v1717_v45 }
 0x180   : > { %v1519_v48 = vpop.f32.mrf.mxu2  ;;  %2094 = vmatpush.bf16.msrb.mxu3 %v4314_v60  ;;  %v4126_v60 = vor.u32 %v4576_v11, %v4125_v50 }
 0x181   : > { %v2802_v10 = vsel %vm2782_vm0, %v2799_v43, %v2801_v53  ;;  %v5626_v26 = vadd.f32 %v1519_v48, %v5273_v32 }
 0x182   : > { %v1588_v55 = vpop.f32.mrf.mxu3  ;;  %v5635_v39 = vadd.f32 %v2802_v10, %v5536_v35  ;;  %v1649_v44 = vpop.f32.mrf.mxu0  ;;  %2232 = vmatpush.bf16.msrb.mxu1 %v4126_v60 }
 0x183   : > { %v1650_v0 = vadd.f32 %v1649_v44, %v1580_v31  ;;  %v1718_v43 = vpop.f32.mrf.mxu1  ;;  %v3933_v31 = vld [vmem:[%s6571_s1 + $0xd0] sm:$0xf] }
 0x184   : > { %6659 = vst [vmem:[#allocation32_spill] sm:$0xff] %v5635_v39 }
 0x185   : > { %v1719_v32 = vadd.f32 %v1718_v43, %v1650_v0 }
 0x186   : > { %v2746_v19 = vld [vmem:[#allocation2 + $0x160] sm:$0xfe] }
 0x187   : > { %v2803_v47 = vrot.slane %v2746_v19, 1  ;;  %v2804_v45 = vrot.slane %v1719_v32, 1 }
 0x188   : > { %v1521_v57 = vpop.f32.mrf.mxu2 }
 0x189   : > { %v2805_v53 = vsel %vm2782_vm0, %v2803_v47, %v2804_v45 }
 0x18a   : > { %v1590_v46 = vpop.f32.mrf.mxu3  ;;  %v1652_v7 = vpop.f32.mrf.mxu0  ;;  %v5639_v48 = vadd.f32 %v2805_v53, %v5556_v18  ;;  %v4528_v18 = vld [vmem:[%s6571_s1 + $0xe4] sm:$0xf0]  ;;  %v4566_v53 = vld [vmem:[%s6571_s1 + $0x21c] sm:$0xf] }
 0x18b   : > { %v1653_v35 = vadd.f32 %v1652_v7, %v1583_v38  ;;  %v1721_v10 = vpop.f32.mrf.mxu1  ;;  %v3934_v33 = vor.u32 %v4528_v18, %v3933_v31 }
 0x18d   : > { %v1722_v39 = vadd.f32 %v1721_v10, %v1653_v35  ;;  %1779 = vmatmul.bf16.gmra.mxu2 %v5145_v40  ;;  %1907 = vmatmul.bf16.gmra.mxu0 %v5229_v37  ;;  %v4287_v10 = vld [vmem:[%s6571_s1 + $0x3b0] sm:$0xf0] }
 0x18e   : > { %1976 = vmatmul.bf16.gmra.mxu1 %v5071_v56  ;;  %2163 = vmatpush.bf16.msrb.mxu0 %v3934_v33 }
 0x18f   : > { %1848 = vmatmul.bf16.gmra.mxu3 %v5149_v42  ;;  %2659 = vst [vmem:[#allocation2 + $0x1b0] sm:$0xff] %v1722_v39 }
 0x190   : > { %v1524_v38 = vpop.f32.mrf.mxu2 }
 0x191   : > { %v5658_v39 = vadd.f32 %v1524_v38, %v5305_v12  ;;  %v4095_v12 = vld [vmem:[%s6571_s1 + $0x230] sm:$0xf0] }
 0x192   : > { %v1593_v44 = vpop.f32.mrf.mxu3  ;;  %v1654_v0 = vpop.f32.mrf.mxu0  ;;  %v4098_v35 = vor.u32 %v4566_v53, %v4095_v12 }
 0x193   : > { %v1655_v43 = vadd.f32 %v1654_v0, %v5600_v51  ;;  %v1723_v32 = vpop.f32.mrf.mxu1  ;;  %v4614_v51 = vld [vmem:[%s6571_s1 + $0x39c] sm:$0xf] }
 0x194   : > { %v4290_v33 = vor.u32 %v4614_v51, %v4287_v10  ;;  %2026 = vmatpush.bf16.msrb.mxu2 %v4098_v35  ;;  %v3909_v35 = vld [vmem:[%s6571_s1 + $0xa0] sm:$0xf]  ;;  %v4522_v51 = vld [vmem:[%s6571_s1 + $0xb4] sm:$0xf0] }
 0x195   : > { %v1724_v19 = vadd.f32 %v1723_v32, %v1655_v43 }
 0x196   : > { %v2748_v47 = vld [vmem:[#allocation2 + $0x1b0] sm:$0x1]  ;;  %2095 = vmatpush.bf16.msrb.mxu3 %v4290_v33  ;;  %v4101_v33 = vld [vmem:[%s6571_s1 + $0x220] sm:$0xf] }
 0x197   : > { %v2806_v57 = vrot.slane %v2748_v47, 1  ;;  %2665 = vst [vmem:[#allocation2 + $0x78] sm:$0xff] %v1724_v19 }
 0x198   : > { %v1526_v7 = vpop.f32.mrf.mxu2 }
 0x199   : > { %v2807_v31 = vsel %vm2782_vm0, %v2804_v45, %v2806_v57  ;;  %v5675_v18 = vadd.f32 %v1526_v7, %v5317_v36 }
 0x19a   : > { %v1595_v38 = vpop.f32.mrf.mxu3  ;;  %v5678_v50 = vadd.f32 %v2807_v31, %v5578_v63  ;;  %v1657_v11 = vpop.f32.mrf.mxu0  ;;  %v3910_v31 = vor.u32 %v4522_v51, %v3909_v35  ;;  %v6660_v35 = vld [vmem:[#allocation27_spill] sm:$0xff] }
 0x19b   : > { %v1658_v60 = vadd.f32 %v1657_v11, %v1588_v55  ;;  %v1726_v0 = vpop.f32.mrf.mxu1 }
 0x19c   : > { %2164 = vmatpush.bf16.msrb.mxu0 %v3910_v31 }
 0x19d   : > { %v1727_v43 = vadd.f32 %v1726_v0, %v1658_v60  ;;  %1784 = vmatmul.bf16.gmra.mxu2 %v5179_v2  ;;  %1912 = vmatmul.bf16.gmra.mxu0 %v5259_v17 }
 0x19e   : > { %v2749_v32 = vld [vmem:[#allocation2 + $0x78] sm:$0xfe]  ;;  %1981 = vmatmul.bf16.gmra.mxu1 %v5109_v21 }
 0x19f   : > { %1853 = vmatmul.bf16.gmra.mxu3 %v5183_v6  ;;  %v2808_v36 = vrot.slane %v2749_v32, 1  ;;  %v2809_v45 = vrot.slane %v1727_v43, 1 }
 0x1a0   : > { %v1529_v19 = vpop.f32.mrf.mxu2 }
 0x1a1   : > { %v2810_v63 = vsel %vm2782_vm0, %v2808_v36, %v2809_v45 }
 0x1a2   : > { %v1598_v47 = vpop.f32.mrf.mxu3  ;;  %v1659_v57 = vpop.f32.mrf.mxu0  ;;  %v5686_v55 = vadd.f32 %v2810_v63, %v5598_v29  ;;  %v4570_v29 = vld [vmem:[%s6571_s1 + $0x234] sm:$0xf0] }
 0x1a3   : > { %v1660_v53 = vadd.f32 %v1659_v57, %v1590_v46  ;;  %v1728_v12 = vpop.f32.mrf.mxu1  ;;  %v4102_v60 = vor.u32 %v4570_v29, %v4101_v33 }
 0x1a5   : > { %v1729_v7 = vadd.f32 %v1728_v12, %v1660_v53  ;;  %2233 = vmatpush.bf16.msrb.mxu1 %v4102_v60  ;;  %v4608_v12 = vld [vmem:[%s6571_s1 + $0x36c] sm:$0xf] }
 0x1a7   : > { %2677 = vst [vmem:[#allocation2] sm:$0xff] %v1729_v7  ;;  %v4263_v7 = vld [vmem:[%s6571_s1 + $0x380] sm:$0xf0] }
 0x1a8   : > { %v1531_v10 = vpop.f32.mrf.mxu2  ;;  %v4266_v31 = vor.u32 %v4608_v12, %v4263_v7  ;;  %v3885_v7 = vld [vmem:[%s6571_s1 + $0x70] sm:$0xf] }
 0x1a9   : > { %v1532_v46 = vadd.f32 %v1531_v10, %v5349_v30  ;;  %v4560_v30 = vld [vmem:[%s6571_s1 + $0x1ec] sm:$0xf] }
 0x1aa   : > { %v1600_v11 = vpop.f32.mrf.mxu3  ;;  %v1662_v0 = vpop.f32.mrf.mxu0  ;;  %2096 = vmatpush.bf16.msrb.mxu3 %v4266_v31 }
 0x1ab   : > { %2700 = vst [vmem:[#allocation2 + $0xe8] sm:$0xff] %v1532_v46  ;;  %v1663_v43 = vadd.f32 %v1662_v0, %v1593_v44  ;;  %v1731_v32 = vpop.f32.mrf.mxu1  ;;  %v4071_v44 = vld [vmem:[%s6571_s1 + $0x200] sm:$0xf0] }
 0x1ac   : > { %v4074_v53 = vor.u32 %v4560_v30, %v4071_v44 }
 0x1ad   : > { %v1732_v36 = vadd.f32 %v1731_v32, %v1663_v43  ;;  %1789 = vmatmul.bf16.gmra.mxu2 %v4872_v4  ;;  %1917 = vmatmul.bf16.gmra.mxu0 %v5291_v54 }
 0x1ae   : > { %v2751_v19 = vld [vmem:[#allocation2] sm:$0x1]  ;;  %1986 = vmatmul.bf16.gmra.mxu1 %v5145_v40  ;;  %2027 = vmatpush.bf16.msrb.mxu2 %v4074_v53 }
 0x1af   : > { %1858 = vmatmul.bf16.gmra.mxu3 %v4885_v9  ;;  %v2811_v63 = vrot.slane %v2751_v19, 1  ;;  %2683 = vst [vmem:[#allocation2 + $0x3b8] sm:$0xff] %v1732_v36 }
 0x1b0   : > { %v1534_v57 = vpop.f32.mrf.mxu2 }
 0x1b1   : > { %v5718_v51 = vadd.f32 %v1534_v57, %v6660_v35  ;;  %v2812_v33 = vsel %vm2782_vm0, %v2809_v45, %v2811_v63 }
 0x1b2   : > { %v1603_v10 = vpop.f32.mrf.mxu3  ;;  %v1664_v29 = vpop.f32.mrf.mxu0  ;;  %v5722_v46 = vadd.f32 %v2812_v33, %v5626_v26  ;;  %v6661_v26 = vld [vmem:[#allocation5_spill] sm:$0xff] }
 0x1b3   : > { %v1665_v60 = vadd.f32 %v1664_v29, %v1595_v38  ;;  %v1733_v0 = vpop.f32.mrf.mxu1  ;;  %v6662_v38 = vld [vmem:[#allocation25_spill] sm:$0xff]  ;;  %v4564_v29 = vld [vmem:[%s6571_s1 + $0x204] sm:$0xf0] }
 0x1b4   : > { %v4077_v33 = vld [vmem:[%s6571_s1 + $0x1f0] sm:$0xf] }
 0x1b5   : > { %v1734_v43 = vadd.f32 %v1733_v0, %v1665_v60  ;;  %v4078_v0 = vor.u32 %v4564_v29, %v4077_v33 }
 0x1b6   : > { %v2752_v32 = vld [vmem:[#allocation2 + $0x3b8] sm:$0xfe] }
 0x1b7   : > { %v2813_v36 = vrot.slane %v2752_v32, 1  ;;  %v2814_v19 = vrot.slane %v1734_v43, 1  ;;  %2234 = vmatpush.bf16.msrb.mxu1 %v4078_v0 }
 0x1b8   : > { %v1536_v30 = vpop.f32.mrf.mxu2 }
 0x1b9   : > { %v2815_v57 = vsel %vm2782_vm0, %v2813_v36, %v2814_v19 }
 0x1ba   : > { %v1605_v44 = vpop.f32.mrf.mxu3  ;;  %v1667_v35 = vpop.f32.mrf.mxu0  ;;  %v5726_v12 = vadd.f32 %v2815_v57, %v5658_v39  ;;  %v4516_v39 = vld [vmem:[%s6571_s1 + $0x84] sm:$0xf0]  ;;  %v4554_v57 = vld [vmem:[%s6571_s1 + $0x1bc] sm:$0xf] }
 0x1bb   : > { %v1668_v45 = vadd.f32 %v1667_v35, %v1598_v47  ;;  %v1736_v63 = vpop.f32.mrf.mxu1  ;;  %v3886_v31 = vor.u32 %v4516_v39, %v3885_v7  ;;  %v4047_v35 = vld [vmem:[%s6571_s1 + $0x1d0] sm:$0xf0] }
 0x1bc   : > { %v4239_v39 = vld [vmem:[%s6571_s1 + $0x350] sm:$0xf0] }
 0x1bd   : > { %v1737_v53 = vadd.f32 %v1736_v63, %v1668_v45  ;;  %1794 = vmatmul.bf16.gmra.mxu2 %v6661_v26  ;;  %1922 = vmatmul.bf16.gmra.mxu0 %v6662_v38  ;;  %v4050_v63 = vor.u32 %v4554_v57, %v4047_v35  ;;  %v6665_v57 = vld [vmem:[#allocation9_spill] sm:$0xff]  ;;  %v6666_v35 = vld [vmem:[#allocation26_spill] sm:$0xff] }
 0x1be   : > { %1991 = vmatmul.bf16.gmra.mxu1 %v5179_v2  ;;  %2165 = vmatpush.bf16.msrb.mxu0 %v3886_v31 }
 0x1bf   : > { %1863 = vmatmul.bf16.gmra.mxu3 %v4959_v52  ;;  %2695 = vst [vmem:[#allocation2 + $0x3e8] sm:$0xff] %v1737_v53  ;;  %2028 = vmatpush.bf16.msrb.mxu2 %v4050_v63 }
 0x1c0   : > { %v1755_v47 = vpop.f32.mrf.mxu2 }
 0x1c2   : > { %v1824_v60 = vpop.f32.mrf.mxu3  ;;  %v1669_v43 = vpop.f32.mrf.mxu0 }
 0x1c3   : > { %v1670_v32 = vadd.f32 %v1669_v43, %v1600_v11  ;;  %v1738_v36 = vpop.f32.mrf.mxu1  ;;  %v4602_v11 = vld [vmem:[%s6571_s1 + $0x33c] sm:$0xf] }
 0x1c4   : > { %v4242_v33 = vor.u32 %v4602_v11, %v4239_v39  ;;  %v3861_v39 = vld [vmem:[%s6571_s1 + $0x40] sm:$0xf] }
 0x1c5   : > { %v1739_v30 = vadd.f32 %v1738_v36, %v1670_v32 }
 0x1c6   : > { %v2754_v45 = vld [vmem:[#allocation2 + $0x3e8] sm:$0x1]  ;;  %2097 = vmatpush.bf16.msrb.mxu3 %v4242_v33  ;;  %v4510_v33 = vld [vmem:[%s6571_s1 + $0x54] sm:$0xf0] }
 0x1c7   : > { %v2816_v53 = vrot.slane %v2754_v45, 1  ;;  %2701 = vst [vmem:[#allocation2 + $0xf0] sm:$0xff] %v1739_v30 }
 0x1c8   : > { %v1757_v7 = vpop.f32.mrf.mxu2 }
 0x1c9   : > { %v2817_v29 = vsel %vm2782_vm0, %v2814_v19, %v2816_v53 }
 0x1ca   : > { %v1826_v31 = vpop.f32.mrf.mxu3  ;;  %v1672_v0 = vpop.f32.mrf.mxu0  ;;  %v5758_v43 = vadd.f32 %v2817_v29, %v5675_v18  ;;  %v4053_v29 = vld [vmem:[%s6571_s1 + $0x1c0] sm:$0xf] }
 0x1cb   : > { %v1673_v32 = vadd.f32 %v1672_v0, %v1603_v10  ;;  %v1741_v36 = vpop.f32.mrf.mxu1  ;;  %v1825_v0 = vadd.f32 %v1824_v60, %v1755_v47  ;;  %v4596_v47 = vld [vmem:[%s6571_s1 + $0x30c] sm:$0xf]  ;;  %v4215_v60 = vld [vmem:[%s6571_s1 + $0x320] sm:$0xf0] }
 0x1cc   : > { %6663 = vst [vmem:[#allocation27_spill] sm:$0xff] %v5758_v43  ;;  %v6668_v43 = vld [vmem:[#allocation12_spill] sm:$0xff] }
 0x1cd   : > { %v5760_v30 = vadd.f32 %v1741_v36, %v1673_v32  ;;  %1799 = vmatmul.bf16.gmra.mxu2 %v6665_v57  ;;  %1927 = vmatmul.bf16.gmra.mxu0 %v6666_v35  ;;  %v3862_v36 = vor.u32 %v4510_v33, %v3861_v39 }
 0x1ce   : > { %1996 = vmatmul.bf16.gmra.mxu1 %v4872_v4 }
 0x1cf   : > { %6664 = vst [vmem:[#allocation25_spill] sm:$0xff] %v5760_v30  ;;  %1868 = vmatmul.bf16.gmra.mxu3 %v5003_v16  ;;  %2166 = vmatpush.bf16.msrb.mxu0 %v3862_v36  ;;  %v4218_v16 = vor.u32 %v4596_v47, %v4215_v60 }
 0x1d0   : > { %v1760_v45 = vpop.f32.mrf.mxu2 }
 0x1d1   : > { %2098 = vmatpush.bf16.msrb.mxu3 %v4218_v16 }
 0x1d2   : > { %v1829_v63 = vpop.f32.mrf.mxu3  ;;  %v1674_v19 = vpop.f32.mrf.mxu0 }
 0x1d3   : > { %v1675_v53 = vadd.f32 %v1674_v19, %v1605_v44  ;;  %v1743_v11 = vpop.f32.mrf.mxu1  ;;  %v4558_v44 = vld [vmem:[%s6571_s1 + $0x1d4] sm:$0xf0]  ;;  %v4548_v19 = vld [vmem:[%s6571_s1 + $0x18c] sm:$0xf] }
 0x1d5   : > { %v1744_v18 = vadd.f32 %v1743_v11, %v1675_v53  ;;  %v4023_v53 = vld [vmem:[%s6571_s1 + $0x1a0] sm:$0xf0] }
 0x1d6   : > { %v4026_v4 = vor.u32 %v4548_v19, %v4023_v53  ;;  %v6600_v19 = vrot.slane %v5760_v30, 1 }
 0x1d7   : > { %2713 = vst [vmem:[#allocation2 + $0x150] sm:$0xff] %v1744_v18  ;;  %v4054_v18 = vor.u32 %v4558_v44, %v4053_v29  ;;  %v6669_v29 = vld [vmem:[#allocation28_spill] sm:$0xff] }
 0x1d8   : > { %v1762_v10 = vpop.f32.mrf.mxu2  ;;  %2029 = vmatpush.bf16.msrb.mxu2 %v4026_v4 }
 0x1d9   : > { %2235 = vmatpush.bf16.msrb.mxu1 %v4054_v18 }
 0x1da   : > { %v1831_v32 = vpop.f32.mrf.mxu3  ;;  %v1893_v11 = vpop.f32.mrf.mxu0 }
 0x1db   : > { %v1894_v39 = vadd.f32 %v1893_v11, %v1825_v0  ;;  %v5790_v33 = vpop.f32.mrf.mxu1  ;;  %v1827_v11 = vadd.f32 %v1826_v31, %v1757_v7 }
 0x1dc   : > { %6667 = vst [vmem:[#allocation33_spill] sm:$0xff] %v5790_v33 }
 0x1dd   : > { %2576 = vst [vmem:[#allocation2 + $0x10] sm:$0xff] %v1894_v39  ;;  %1804 = vmatmul.bf16.gmra.mxu2 %v6668_v43  ;;  %1932 = vmatmul.bf16.gmra.mxu0 %v6669_v29 }
 0x1de   : > { %v2757_v44 = vld [vmem:[#allocation2 + $0x150] sm:$0x1]  ;;  %2001 = vmatmul.bf16.gmra.mxu1 %v6661_v26 }
 0x1df   : > { %1873 = vmatmul.bf16.gmra.mxu3 %v5077_v59  ;;  %v2821_v53 = vrot.slane %v2757_v44, 1  ;;  %v1830_v44 = vadd.f32 %v1829_v63, %v1760_v45  ;;  %v1832_v45 = vadd.f32 %v1831_v32, %v1762_v10  ;;  %v4389_v10 = vld [vmem:[%s6571_s1 + $0x460] sm:$0xf]  ;;  %v4642_v32 = vld [vmem:[%s6571_s1 + $0x474] sm:$0xf0] }
 0x1e0   : > { %v1765_v0 = vpop.f32.mrf.mxu2 }
 0x1e1   : > { %v2822_v4 = vsel %vm2782_vm0, %v6600_v19, %v2821_v53 }
 0x1e2   : > { %v1834_v36 = vpop.f32.mrf.mxu3  ;;  %v1895_v18 = vpop.f32.mrf.mxu0  ;;  %v5801_v47 = vadd.f32 %v2822_v4, %v5718_v51  ;;  %v4504_v51 = vld [vmem:[%s6571_s1 + $0x24] sm:$0xf0] }
 0x1e3   : > { %v1896_v60 = vadd.f32 %v1895_v18, %v1827_v11  ;;  %v5803_v39 = vpop.f32.mrf.mxu1  ;;  %v4552_v11 = vld [vmem:[%s6571_s1 + $0x1a4] sm:$0xf0] }
 0x1e4   : > { %v2855_v26 = vld [vmem:[#allocation2 + $0x10] sm:$0xfc] }
 0x1e5   : > { %v2904_v59 = vrot.slane %v2855_v26, 2  ;;  %v2905_v33 = vrot.slane %v1896_v60, 2  ;;  %v4029_v26 = vld [vmem:[%s6571_s1 + $0x190] sm:$0xf] }
 0x1e6   : > { %v4030_v18 = vor.u32 %v4552_v11, %v4029_v26  ;;  %v4007_v11 = vld [vmem:[%s6571_s1 + $0x178] sm:$0xf0] }
 0x1e7   : > { %v2906_v16 = vsel %vm2903_vm1, %v2904_v59, %v2905_v33 }
 0x1e8   : > { %v5807_v7 = vadd.f32 %v2906_v16, %v5461_v61  ;;  %v1767_v31 = vpop.f32.mrf.mxu2  ;;  %v3837_v61 = vld [vmem:[%s6571_s1 + $0x10] sm:$0xf]  ;;  %2236 = vmatpush.bf16.msrb.mxu1 %v4030_v18 }
 0x1ea   : > { %v1836_v30 = vpop.f32.mrf.mxu3  ;;  %v1898_v53 = vpop.f32.mrf.mxu0 }
 0x1eb   : > { %v1899_v19 = vadd.f32 %v1898_v53, %v1830_v44  ;;  %v5809_v29 = vpop.f32.mrf.mxu1 }
 0x1ed   : > { %2588 = vst [vmem:[#allocation2 + $0x30] sm:$0xff] %v1899_v19  ;;  %1809 = vmatmul.bf16.gmra.mxu2 %v5111_v22  ;;  %1937 = vmatmul.bf16.gmra.mxu0 %v5401_v20  ;;  %v3838_v19 = vor.u32 %v4504_v51, %v3837_v61  ;;  %v4390_v61 = vor.u32 %v4642_v32, %v4389_v10 }
 0x1ee   : > { %2006 = vmatmul.bf16.gmra.mxu1 %v6665_v57 }
 0x1ef   : > { %1878 = vmatmul.bf16.gmra.mxu3 %v5115_v24  ;;  %2167 = vmatpush.bf16.msrb.mxu0 %v3838_v19  ;;  %v4543_v19 = vld [vmem:[%s6571_s1 + $0x164] sm:$0xf]  ;;  %v6672_v24 = vld [vmem:[#allocation30_spill] sm:$0xff] }
 0x1f0   : > { %v1770_v59 = vpop.f32.mrf.mxu2  ;;  %2298 = vmatpush.bf16.msra.mxu2 %v4390_v61 }
 0x1f2   : > { %v1839_v63 = vpop.f32.mrf.mxu3  ;;  %v1900_v4 = vpop.f32.mrf.mxu0 }
 0x1f3   : > { %v1901_v60 = vadd.f32 %v1900_v4, %v1832_v45  ;;  %v5827_v16 = vpop.f32.mrf.mxu1  ;;  %v1835_v4 = vadd.f32 %v1834_v36, %v1765_v0 }
 0x1f4   : > { %v2857_v44 = vld [vmem:[#allocation2 + $0x30] sm:$0x3] }
 0x1f5   : > { %v2907_v53 = vrot.slane %v2857_v44, 2  ;;  %2594 = vst [vmem:[#allocation2 + $0x368] sm:$0xff] %v1901_v60  ;;  %v4010_v60 = vor.u32 %v4543_v19, %v4007_v11 }
 0x1f7   : > { %v2908_v51 = vsel %vm2903_vm1, %v2905_v33, %v2907_v53  ;;  %2367 = vmatpush.bf16.msra.mxu3 %v4010_v60 }
 0x1f8   : > { %v5837_v26 = vadd.f32 %v2908_v51, %v5493_v34  ;;  %v1772_v45 = vpop.f32.mrf.mxu2  ;;  %v1837_v51 = vadd.f32 %v1836_v30, %v1767_v31  ;;  %v1840_v30 = vadd.f32 %v1839_v63, %v1770_v59  ;;  %v4365_v59 = vld [vmem:[%s6571_s1 + $0x430] sm:$0xf]  ;;  %v4636_v63 = vld [vmem:[%s6571_s1 + $0x444] sm:$0xf0] }
 0x1fa   : > { %v1841_v18 = vpop.f32.mrf.mxu3  ;;  %v1903_v44 = vpop.f32.mrf.mxu0 }
 0x1fb   : > { %v1904_v10 = vadd.f32 %v1903_v44, %v1835_v4  ;;  %v5845_v32 = vpop.f32.mrf.mxu1 }
 0x1fc   : > { %v2858_v34 = vld [vmem:[#allocation2 + $0x368] sm:$0xfc] }
 0x1fd   : > { %v2909_v33 = vrot.slane %v2858_v34, 2  ;;  %v2910_v53 = vrot.slane %v1904_v10, 2  ;;  %1942 = vmatmul.bf16.gmra.mxu0 %v5431_v62  ;;  %2030 = vmatmul.bf16.vlgmr.msrb.gmra.mxu2 %v4883_v8  ;;  %v4591_v10 = vld [vmem:[%s6571_s1 + $0x2e4] sm:$0xf]  ;;  %v4199_v34 = vld [vmem:[%s6571_s1 + $0x2f8] sm:$0xf0] }
 0x1fe   : > { %2011 = vmatmul.bf16.gmra.mxu1 %v6668_v43 }
 0x1ff   : > { %2099 = vmatmul.bf16.vlgmr.msrb.gmra.mxu3 %v5147_v41  ;;  %v2911_v0 = vsel %vm2903_vm1, %v2909_v33, %v2910_v53  ;;  %v4202_v33 = vor.u32 %v4591_v10, %v4199_v34  ;;  %v4366_v10 = vor.u32 %v4636_v63, %v4365_v59  ;;  %v6674_v34 = vld [vmem:[#allocation31_spill] sm:$0xff] }
 0x200   : > { %v5853_v36 = vadd.f32 %v2911_v0, %v5507_v27  ;;  %v1775_v61 = vpop.f32.mrf.mxu2  ;;  %v4639_v27 = vld [vmem:[%s6571_s1 + $0x464] sm:$0xf]  ;;  %v4391_v0 = vld [vmem:[%s6571_s1 + $0x478] sm:$0xf0] }
 0x201   : > { %2436 = vmatpush.bf16.msra.mxu0 %v4202_v33  ;;  %2299 = vmatpush.bf16.msra.mxu2 %v4366_v10  ;;  %v4537_v33 = vld [vmem:[%s6571_s1 + $0x134] sm:$0xf] }
 0x202   : > { %v1844_v19 = vpop.f32.mrf.mxu3  ;;  %v1905_v11 = vpop.f32.mrf.mxu0 }
 0x203   : > { %v1906_v4 = vadd.f32 %v1905_v11, %v1837_v51  ;;  %v5855_v60 = vpop.f32.mrf.mxu1  ;;  %v4394_v11 = vor.u32 %v4639_v27, %v4391_v0  ;;  %v3983_v0 = vld [vmem:[%s6571_s1 + $0x148] sm:$0xf0] }
 0x204   : > { %6670 = vst [vmem:[#allocation34_spill] sm:$0xff] %v5855_v60  ;;  %v6673_v60 = vld [vmem:[#allocation6_spill] sm:$0xff] }
 0x205   : > { %2606 = vst [vmem:[#allocation2 + $0x470] sm:$0xff] %v1906_v4  ;;  %2505 = vmatpush.bf16.msra.mxu1 %v4394_v11 }
 0x208   : > { %v1777_v44 = vpop.f32.mrf.mxu2 }
 0x20a   : > { %v1846_v31 = vpop.f32.mrf.mxu3  ;;  %v1908_v51 = vpop.f32.mrf.mxu0 }
 0x20b   : > { %v1909_v4 = vadd.f32 %v1908_v51, %v1840_v30  ;;  %v5869_v41 = vpop.f32.mrf.mxu1  ;;  %v1842_v51 = vadd.f32 %v1841_v18, %v1772_v45 }
 0x20c   : > { %6671 = vst [vmem:[#allocation35_spill] sm:$0xff] %v5869_v41  ;;  %v2860_v43 = vld [vmem:[#allocation2 + $0x470] sm:$0x3] }
 0x20d   : > { %v2912_v57 = vrot.slane %v2860_v43, 2  ;;  %2612 = vst [vmem:[#allocation2 + $0x20] sm:$0xff] %v1909_v4  ;;  %1947 = vmatmul.bf16.gmra.mxu0 %v6672_v24  ;;  %2035 = vmatmul.bf16.gmra.mxu2 %v6673_v60  ;;  %v3986_v4 = vor.u32 %v4537_v33, %v3983_v0  ;;  %v4367_v0 = vld [vmem:[%s6571_s1 + $0x448] sm:$0xf0] }
 0x20e   : > { %2016 = vmatmul.bf16.gmra.mxu1 %v5111_v22 }
 0x20f   : > { %2104 = vmatmul.bf16.gmra.mxu3 %v5181_v5  ;;  %v2913_v43 = vsel %vm2903_vm1, %v2910_v53, %v2912_v57 }
 0x210   : > { %v5883_v27 = vadd.f32 %v2913_v43, %v6674_v34  ;;  %v1780_v30 = vpop.f32.mrf.mxu2  ;;  %2368 = vmatpush.bf16.msra.mxu3 %v3986_v4 }
 0x212   : > { %6675 = vst [vmem:[#allocation31_spill] sm:$0xff] %v5883_v27  ;;  %v1849_v11 = vpop.f32.mrf.mxu3  ;;  %v1910_v5 = vpop.f32.mrf.mxu0  ;;  %v1845_v27 = vadd.f32 %v1844_v19, %v1775_v61  ;;  %v4633_v61 = vld [vmem:[%s6571_s1 + $0x434] sm:$0xf]  ;;  %v1847_v19 = vadd.f32 %v1846_v31, %v1777_v44  ;;  %v4341_v44 = vld [vmem:[%s6571_s1 + $0x400] sm:$0xf] }
 0x213   : > { %v1911_v59 = vadd.f32 %v1910_v5, %v1842_v51  ;;  %v5891_v63 = vpop.f32.mrf.mxu1  ;;  %v4370_v4 = vor.u32 %v4633_v61, %v4367_v0  ;;  %v4630_v31 = vld [vmem:[%s6571_s1 + $0x414] sm:$0xf0] }
 0x214   : > { %v2861_v57 = vld [vmem:[#allocation2 + $0x20] sm:$0xfc] }
 0x215   : > { %v2914_v53 = vrot.slane %v2861_v57, 2  ;;  %v2915_v43 = vrot.slane %v1911_v59, 2  ;;  %2506 = vmatpush.bf16.msra.mxu1 %v4370_v4 }
 0x217   : > { %v2916_v10 = vsel %vm2903_vm1, %v2914_v53, %v2915_v43 }
 0x218   : > { %v5895_v34 = vadd.f32 %v2916_v10, %v5549_v1  ;;  %v1782_v22 = vpop.f32.mrf.mxu2  ;;  %v4585_v1 = vld [vmem:[%s6571_s1 + $0x2b4] sm:$0xf] }
 0x21a   : > { %v1851_v41 = vpop.f32.mrf.mxu3  ;;  %v1913_v24 = vpop.f32.mrf.mxu0 }
 0x21b   : > { %v1914_v45 = vadd.f32 %v1913_v24, %v1845_v27  ;;  %v5897_v18 = vpop.f32.mrf.mxu1  ;;  %v4175_v24 = vld [vmem:[%s6571_s1 + $0x2c8] sm:$0xf0] }
 0x21c   : > { %v4178_v33 = vor.u32 %v4585_v1, %v4175_v24  ;;  %v4531_v1 = vld [vmem:[%s6571_s1 + $0x104] sm:$0xf]  ;;  %v3959_v24 = vld [vmem:[%s6571_s1 + $0x118] sm:$0xf0] }
 0x21d   : > { %2624 = vst [vmem:[#allocation2 + $0x3f8] sm:$0xff] %v1914_v45  ;;  %2040 = vmatmul.bf16.gmra.mxu2 %v5001_v15  ;;  %2168 = vmatmul.bf16.vlgmr.msrb.gmra.mxu0 %v4870_v3  ;;  %v4342_v45 = vor.u32 %v4630_v31, %v4341_v44 }
 0x21e   : > { %2237 = vmatmul.bf16.vlgmr.msrb.gmra.mxu1 %v4883_v8  ;;  %2437 = vmatpush.bf16.msra.mxu0 %v4178_v33 }
 0x21f   : > { %2109 = vmatmul.bf16.gmra.mxu3 %v5209_v28  ;;  %2300 = vmatpush.bf16.msra.mxu2 %v4342_v45 }
 0x220   : > { %v1785_v5 = vpop.f32.mrf.mxu2 }
 0x222   : > { %v1854_v27 = vpop.f32.mrf.mxu3  ;;  %v1915_v51 = vpop.f32.mrf.mxu0 }
 0x223   : > { %v1916_v59 = vadd.f32 %v1915_v51, %v1847_v19  ;;  %v5915_v57 = vpop.f32.mrf.mxu1  ;;  %v3962_v19 = vor.u32 %v4531_v1, %v3959_v24  ;;  %v1850_v51 = vadd.f32 %v1849_v11, %v1780_v30 }
 0x224   : > { %v2863_v53 = vld [vmem:[#allocation2 + $0x3f8] sm:$0x3] }
 0x225   : > { %v2917_v10 = vrot.slane %v2863_v53, 2  ;;  %2630 = vst [vmem:[#allocation2 + $0x1b8] sm:$0xff] %v1916_v59  ;;  %2369 = vmatpush.bf16.msra.mxu3 %v3962_v19  ;;  %v4151_v19 = vld [vmem:[%s6571_s1 + $0x298] sm:$0xf0] }
 0x227   : > { %v2918_v61 = vsel %vm2903_vm1, %v2915_v43, %v2917_v10  ;;  %v1852_v43 = vadd.f32 %v1851_v41, %v1782_v22  ;;  %v4343_v41 = vld [vmem:[%s6571_s1 + $0x418] sm:$0xf0] }
 0x228   : > { %v5931_v33 = vadd.f32 %v2918_v61, %v5587_v14  ;;  %v1787_v0 = vpop.f32.mrf.mxu2  ;;  %v4579_v61 = vld [vmem:[%s6571_s1 + $0x284] sm:$0xf] }
 0x229   : > { %v4154_v22 = vor.u32 %v4579_v61, %v4151_v19  ;;  %v4317_v61 = vld [vmem:[%s6571_s1 + $0x3d0] sm:$0xf]  ;;  %v4525_v19 = vld [vmem:[%s6571_s1 + $0xd4] sm:$0xf] }
 0x22a   : > { %v1856_v4 = vpop.f32.mrf.mxu3  ;;  %v1918_v59 = vpop.f32.mrf.mxu0 }
 0x22b   : > { %v1919_v53 = vadd.f32 %v1918_v59, %v1850_v51  ;;  %v5933_v44 = vpop.f32.mrf.mxu1  ;;  %v1855_v51 = vadd.f32 %v1854_v27, %v1785_v5  ;;  %2438 = vmatpush.bf16.msra.mxu0 %v4154_v22  ;;  %v4624_v5 = vld [vmem:[%s6571_s1 + $0x3e4] sm:$0xf0] }
 0x22c   : > { %v2864_v31 = vld [vmem:[#allocation2 + $0x1b8] sm:$0xfc]  ;;  %v4318_v27 = vor.u32 %v4624_v5, %v4317_v61 }
 0x22d   : > { %v2919_v8 = vrot.slane %v2864_v31, 2  ;;  %v2920_v28 = vrot.slane %v1919_v53, 2  ;;  %2045 = vmatmul.bf16.gmra.mxu2 %v5075_v58  ;;  %2173 = vmatmul.bf16.gmra.mxu0 %v4953_v49 }
 0x22e   : > { %2242 = vmatmul.bf16.gmra.mxu1 %v6673_v60  ;;  %2301 = vmatpush.bf16.msra.mxu2 %v4318_v27 }
 0x22f   : > { %2114 = vmatmul.bf16.gmra.mxu3 %v5229_v37  ;;  %v2921_v14 = vsel %vm2903_vm1, %v2919_v8, %v2920_v28  ;;  %v4627_v8 = vld [vmem:[%s6571_s1 + $0x404] sm:$0xf] }
 0x230   : > { %v5941_v30 = vadd.f32 %v2921_v14, %v5595_v25  ;;  %v1790_v11 = vpop.f32.mrf.mxu2  ;;  %v4346_v53 = vor.u32 %v4627_v8, %v4343_v41  ;;  %v3935_v8 = vld [vmem:[%s6571_s1 + $0xe8] sm:$0xf0] }
 0x231   : > { %v3938_v41 = vor.u32 %v4525_v19, %v3935_v8 }
 0x232   : > { %v1859_v10 = vpop.f32.mrf.mxu3  ;;  %v1920_v45 = vpop.f32.mrf.mxu0  ;;  %2507 = vmatpush.bf16.msra.mxu1 %v4346_v53 }
 0x233   : > { %v1921_v1 = vadd.f32 %v1920_v45, %v1852_v43  ;;  %v5943_v24 = vpop.f32.mrf.mxu1  ;;  %2370 = vmatpush.bf16.msra.mxu3 %v3938_v41 }
 0x235   : > { %2642 = vst [vmem:[#allocation2 + $0x1a0] sm:$0xff] %v1921_v1 }
 0x238   : > { %v1792_v25 = vpop.f32.mrf.mxu2 }
 0x23a   : > { %v1861_v59 = vpop.f32.mrf.mxu3  ;;  %v1923_v31 = vpop.f32.mrf.mxu0 }
 0x23b   : > { %v1924_v14 = vadd.f32 %v1923_v31, %v1855_v51  ;;  %v5957_v43 = vpop.f32.mrf.mxu1  ;;  %v6677_v51 = vld [vmem:[#allocation32_spill] sm:$0xff] }
 0x23c   : > { %6676 = vst [vmem:[#allocation36_spill] sm:$0xff] %v5957_v43  ;;  %v2866_v45 = vld [vmem:[#allocation2 + $0x1a0] sm:$0x3] }
 0x23d   : > { %v2922_v1 = vrot.slane %v2866_v45, 2  ;;  %2648 = vst [vmem:[#allocation2 + $0x2a8] sm:$0xff] %v1924_v14  ;;  %2050 = vmatmul.bf16.gmra.mxu2 %v5113_v23  ;;  %2178 = vmatmul.bf16.gmra.mxu0 %v4997_v13  ;;  %v1857_v14 = vadd.f32 %v1856_v4, %v1787_v0  ;;  %v4621_v4 = vld [vmem:[%s6571_s1 + $0x3d4] sm:$0xf] }
 0x23e   : > { %2247 = vmatmul.bf16.gmra.mxu1 %v5001_v15 }
 0x23f   : > { %2119 = vmatmul.bf16.gmra.mxu3 %v5259_v17  ;;  %v2923_v22 = vsel %vm2903_vm1, %v2920_v28, %v2922_v1  ;;  %v1860_v1 = vadd.f32 %v1859_v10, %v1790_v11  ;;  %v4319_v11 = vld [vmem:[%s6571_s1 + $0x3e8] sm:$0xf0] }
 0x240   : > { %v5977_v53 = vadd.f32 %v2923_v22, %v6677_v51  ;;  %v1795_v31 = vpop.f32.mrf.mxu2  ;;  %v4322_v10 = vor.u32 %v4621_v4, %v4319_v11  ;;  %v1862_v22 = vadd.f32 %v1861_v59, %v1792_v25  ;;  %v4519_v25 = vld [vmem:[%s6571_s1 + $0xa4] sm:$0xf]  ;;  %v3911_v59 = vld [vmem:[%s6571_s1 + $0xb8] sm:$0xf0] }
 0x242   : > { %v1864_v45 = vpop.f32.mrf.mxu3  ;;  %v1925_v61 = vpop.f32.mrf.mxu0  ;;  %2508 = vmatpush.bf16.msra.mxu1 %v4322_v10 }
 0x243   : > { %v1926_v5 = vadd.f32 %v1925_v61, %v1857_v14  ;;  %v5979_v15 = vpop.f32.mrf.mxu1  ;;  %v1865_v10 = vadd.f32 %v1864_v45, %v1795_v31 }
 0x244   : > { %v2867_v17 = vld [vmem:[#allocation2 + $0x2a8] sm:$0xfc] }
 0x245   : > { %v2924_v60 = vrot.slane %v2867_v17, 2  ;;  %v2925_v37 = vrot.slane %v1926_v5, 2  ;;  %v4573_v17 = vld [vmem:[%s6571_s1 + $0x254] sm:$0xf] }
 0x247   : > { %v2926_v43 = vsel %vm2903_vm1, %v2924_v60, %v2925_v37 }
 0x248   : > { %v1797_v13 = vpop.f32.mrf.mxu2  ;;  %v5983_v28 = vadd.f32 %v2926_v43, %v5639_v48  ;;  %v4127_v48 = vld [vmem:[%s6571_s1 + $0x268] sm:$0xf0] }
 0x249   : > { %v4130_v60 = vor.u32 %v4573_v17, %v4127_v48 }
 0x24a   : > { %v1866_v19 = vpop.f32.mrf.mxu3  ;;  %v1928_v8 = vpop.f32.mrf.mxu0 }
 0x24b   : > { %v1929_v27 = vadd.f32 %v1928_v8, %v1860_v1  ;;  %v5985_v0 = vpop.f32.mrf.mxu1  ;;  %2439 = vmatpush.bf16.msra.mxu0 %v4130_v60  ;;  %v4293_v8 = vld [vmem:[%s6571_s1 + $0x3a0] sm:$0xf]  ;;  %v3914_v60 = vor.u32 %v4519_v25, %v3911_v59  ;;  %v1867_v45 = vadd.f32 %v1866_v19, %v1797_v13  ;;  %v4295_v13 = vld [vmem:[%s6571_s1 + $0x3b8] sm:$0xf0] }
 0x24d   : > { %2660 = vst [vmem:[#allocation2 + $0x328] sm:$0xff] %v1929_v27  ;;  %2055 = vmatmul.bf16.gmra.mxu2 %v5149_v42  ;;  %2183 = vmatmul.bf16.gmra.mxu0 %v5071_v56  ;;  %v4618_v27 = vld [vmem:[%s6571_s1 + $0x3b4] sm:$0xf0] }
 0x24e   : > { %2252 = vmatmul.bf16.gmra.mxu1 %v5075_v58  ;;  %v4294_v17 = vor.u32 %v4618_v27, %v4293_v8  ;;  %2371 = vmatpush.bf16.msra.mxu3 %v3914_v60  ;;  %v4103_v60 = vld [vmem:[%s6571_s1 + $0x238] sm:$0xf0] }
 0x24f   : > { %2124 = vmatmul.bf16.gmra.mxu3 %v5291_v54 }
 0x250   : > { %v1800_v43 = vpop.f32.mrf.mxu2  ;;  %2302 = vmatpush.bf16.msra.mxu2 %v4294_v17 }
 0x252   : > { %v1869_v41 = vpop.f32.mrf.mxu3  ;;  %v1930_v51 = vpop.f32.mrf.mxu0 }
 0x253   : > { %v1931_v14 = vadd.f32 %v1930_v51, %v1862_v22  ;;  %v6003_v61 = vpop.f32.mrf.mxu1 }
 0x254   : > { %v2869_v5 = vld [vmem:[#allocation2 + $0x328] sm:$0x3] }
 0x255   : > { %v2927_v1 = vrot.slane %v2869_v5, 2  ;;  %2666 = vst [vmem:[#allocation2 + $0x2f8] sm:$0xff] %v1931_v14 }
 0x257   : > { %v2928_v48 = vsel %vm2903_vm1, %v2925_v37, %v2927_v1 }
 0x258   : > { %v1802_v4 = vpop.f32.mrf.mxu2  ;;  %v6019_v11 = vadd.f32 %v2928_v48, %v5678_v50  ;;  %v4567_v48 = vld [vmem:[%s6571_s1 + $0x224] sm:$0xf] }
 0x25a   : > { %v1871_v22 = vpop.f32.mrf.mxu3  ;;  %v1933_v51 = vpop.f32.mrf.mxu0 }
 0x25b   : > { %v1934_v14 = vadd.f32 %v1933_v51, %v1865_v10  ;;  %v6021_v5 = vpop.f32.mrf.mxu1  ;;  %v4106_v10 = vor.u32 %v4567_v48, %v4103_v60 }
 0x25c   : > { %v2870_v8 = vld [vmem:[#allocation2 + $0x2f8] sm:$0xfc] }
 0x25d   : > { %v2929_v27 = vrot.slane %v2870_v8, 2  ;;  %v2930_v58 = vrot.slane %v1934_v14, 2  ;;  %2060 = vmatmul.bf16.gmra.mxu2 %v5183_v6  ;;  %2188 = vmatmul.bf16.gmra.mxu0 %v5109_v21  ;;  %v1870_v14 = vadd.f32 %v1869_v41, %v1800_v43  ;;  %v4269_v43 = vld [vmem:[%s6571_s1 + $0x370] sm:$0xf]  ;;  %v4612_v41 = vld [vmem:[%s6571_s1 + $0x384] sm:$0xf0] }
 0x25e   : > { %2257 = vmatmul.bf16.gmra.mxu1 %v5113_v23  ;;  %2440 = vmatpush.bf16.msra.mxu0 %v4106_v10  ;;  %v4270_v48 = vor.u32 %v4612_v41, %v4269_v43 }
 0x25f   : > { %2129 = vmatmul.bf16.gmra.mxu3 %v6662_v38  ;;  %v2931_v37 = vsel %vm2903_vm1, %v2929_v27, %v2930_v58 }
 0x260   : > { %v1805_v50 = vpop.f32.mrf.mxu2  ;;  %v6029_v31 = vadd.f32 %v2931_v37, %v5686_v55  ;;  %v4615_v55 = vld [vmem:[%s6571_s1 + $0x3a4] sm:$0xf]  ;;  %2303 = vmatpush.bf16.msra.mxu2 %v4270_v48 }
 0x261   : > { %v4298_v19 = vor.u32 %v4615_v55, %v4295_v13  ;;  %v1872_v13 = vadd.f32 %v1871_v22, %v1802_v4 }
 0x262   : > { %v1874_v1 = vpop.f32.mrf.mxu3  ;;  %v1935_v17 = vpop.f32.mrf.mxu0 }
 0x263   : > { %v1936_v25 = vadd.f32 %v1935_v17, %v1867_v45  ;;  %v6031_v59 = vpop.f32.mrf.mxu1  ;;  %2509 = vmatpush.bf16.msra.mxu1 %v4298_v19 }
 0x265   : > { %2678 = vst [vmem:[#allocation2 + $0x478] sm:$0xff] %v1936_v25 }
 0x268   : > { %v1807_v51 = vpop.f32.mrf.mxu2 }
 0x26a   : > { %v1876_v8 = vpop.f32.mrf.mxu3  ;;  %v1938_v27 = vpop.f32.mrf.mxu0 }
 0x26b   : > { %v1939_v37 = vadd.f32 %v1938_v27, %v1870_v14  ;;  %v6045_v45 = vpop.f32.mrf.mxu1  ;;  %v4513_v14 = vld [vmem:[%s6571_s1 + $0x74] sm:$0xf]  ;;  %v3887_v27 = vld [vmem:[%s6571_s1 + $0x88] sm:$0xf0] }
 0x26c   : > { %v2872_v17 = vld [vmem:[#allocation2 + $0x478] sm:$0x3] }
 0x26d   : > { %v2932_v25 = vrot.slane %v2872_v17, 2  ;;  %2684 = vst [vmem:[#allocation2 + $0x180] sm:$0xff] %v1939_v37  ;;  %2065 = vmatmul.bf16.gmra.mxu2 %v4885_v9  ;;  %2193 = vmatmul.bf16.gmra.mxu0 %v5145_v40  ;;  %v3890_v17 = vor.u32 %v4513_v14, %v3887_v27 }
 0x26e   : > { %2262 = vmatmul.bf16.gmra.mxu1 %v5149_v42 }
 0x26f   : > { %2134 = vmatmul.bf16.gmra.mxu3 %v6666_v35  ;;  %v2933_v60 = vsel %vm2903_vm1, %v2930_v58, %v2932_v25 }
 0x270   : > { %v1810_v10 = vpop.f32.mrf.mxu2  ;;  %v6059_v55 = vadd.f32 %v2933_v60, %v5722_v46  ;;  %2372 = vmatpush.bf16.msra.mxu3 %v3890_v17  ;;  %v1875_v60 = vadd.f32 %v1874_v1, %v1805_v50  ;;  %v4609_v1 = vld [vmem:[%s6571_s1 + $0x374] sm:$0xf] }
 0x272   : > { %v1879_v19 = vpop.f32.mrf.mxu3  ;;  %v1940_v37 = vpop.f32.mrf.mxu0 }
 0x273   : > { %v1941_v43 = vadd.f32 %v1940_v37, %v1872_v13  ;;  %v6067_v41 = vpop.f32.mrf.mxu1  ;;  %v6680_v13 = vld [vmem:[#allocation28_spill] sm:$0xff]  ;;  %v1877_v37 = vadd.f32 %v1876_v8, %v1807_v51 }
 0x274   : > { %v2873_v58 = vld [vmem:[#allocation2 + $0x180] sm:$0xfc]  ;;  %v4271_v51 = vld [vmem:[%s6571_s1 + $0x388] sm:$0xf0] }
 0x275   : > { %v2934_v46 = vrot.slane %v2873_v58, 2  ;;  %v2935_v25 = vrot.slane %v1941_v43, 2 }
 0x277   : > { %v2936_v4 = vsel %vm2903_vm1, %v2934_v46, %v2935_v25 }
 0x278   : > { %v6070_v22 = vpop.f32.mrf.mxu2  ;;  %v6073_v48 = vadd.f32 %v2936_v4, %v5726_v12  ;;  %v6681_v12 = vld [vmem:[#allocation33_spill] sm:$0xff] }
 0x27a   : > { %6678 = vst [vmem:[#allocation32_spill] sm:$0xff] %v6073_v48  ;;  %v6075_v42 = vpop.f32.mrf.mxu3  ;;  %v1943_v35 = vpop.f32.mrf.mxu0  ;;  %v2732_v48 = vld [vmem:[#allocation2 + $0xe8] sm:$0xff] }
 0x27b   : > { %v1944_v23 = vadd.f32 %v1943_v35, %v1875_v60  ;;  %v6077_v14 = vpop.f32.mrf.mxu1  ;;  %v4561_v35 = vld [vmem:[%s6571_s1 + $0x1f4] sm:$0xf]  ;;  %v4274_v60 = vor.u32 %v4609_v1, %v4271_v51  ;;  %v4507_v1 = vld [vmem:[%s6571_s1 + $0x44] sm:$0xf] }
 0x27c   : > { %6679 = vst [vmem:[#allocation37_spill] sm:$0xff] %v6077_v14 }
 0x27d   : > { %2696 = vst [vmem:[#allocation2 + $0x250] sm:$0xff] %v1944_v23  ;;  %2070 = vmatmul.bf16.gmra.mxu2 %v4959_v52  ;;  %2198 = vmatmul.bf16.gmra.mxu0 %v5179_v2  ;;  %v4079_v23 = vld [vmem:[%s6571_s1 + $0x208] sm:$0xf0] }
 0x27e   : > { %2267 = vmatmul.bf16.gmra.mxu1 %v5183_v6  ;;  %v4082_v58 = vor.u32 %v4561_v35, %v4079_v23  ;;  %v4606_v35 = vld [vmem:[%s6571_s1 + $0x354] sm:$0xf0] }
 0x27f   : > { %2139 = vmatmul.bf16.gmra.mxu3 %v6680_v13  ;;  %2510 = vmatpush.bf16.msra.mxu1 %v4274_v60  ;;  %v4245_v13 = vld [vmem:[%s6571_s1 + $0x340] sm:$0xf] }
 0x280   : > { %v2031_v27 = vpop.f32.mrf.mxu2  ;;  %2441 = vmatpush.bf16.msra.mxu0 %v4082_v58  ;;  %v6683_v58 = vld [vmem:[#allocation27_spill] sm:$0xff] }
 0x281   : > { %v2032_v17 = vadd.f32 %v2031_v27, %v6681_v12  ;;  %v2755_v27 = vld [vmem:[#allocation2 + $0xf0] sm:$0xfe] }
 0x282   : > { %v2100_v50 = vpop.f32.mrf.mxu3  ;;  %v1945_v43 = vpop.f32.mrf.mxu0  ;;  %v2818_v23 = vrot.slane %v2755_v27, 1 }
 0x283   : > { %v1946_v8 = vadd.f32 %v1945_v43, %v1877_v37  ;;  %v6096_v46 = vpop.f32.mrf.mxu1  ;;  %v2101_v4 = vadd.f32 %v2100_v50, %v2032_v17  ;;  %v4246_v37 = vor.u32 %v4606_v35, %v4245_v13  ;;  %v3863_v43 = vld [vmem:[%s6571_s1 + $0x58] sm:$0xf0]  ;;  %v6684_v35 = vld [vmem:[#allocation25_spill] sm:$0xff] }
 0x284   : > { %6682 = vst [vmem:[#allocation33_spill] sm:$0xff] %v6096_v46  ;;  %v2875_v12 = vld [vmem:[#allocation2 + $0x250] sm:$0x3]  ;;  %v3866_v60 = vor.u32 %v4507_v1, %v3863_v43 }
 0x285   : > { %v2937_v6 = vrot.slane %v2875_v12, 2  ;;  %2702 = vst [vmem:[#allocation2 + $0x168] sm:$0xff] %v1946_v8  ;;  %2304 = vmatpush.bf16.msra.mxu2 %v4246_v37  ;;  %v1880_v8 = vadd.f32 %v1879_v19, %v1810_v10  ;;  %v6685_v37 = vrot.slane %v6684_v35, 1 }
 0x286   : > { %2577 = vst [vmem:[#allocation2 + $0x448] sm:$0xff] %v2101_v4  ;;  %2373 = vmatpush.bf16.msra.mxu3 %v3866_v60 }
 0x287   : > { %v2938_v17 = vsel %vm2903_vm1, %v2935_v25, %v2937_v6  ;;  %v2820_v46 = vsel %vm2782_vm0, %v2818_v23, %v6685_v37 }
 0x288   : > { %v2033_v50 = vpop.f32.mrf.mxu2  ;;  %v6112_v51 = vadd.f32 %v2938_v17, %v6683_v58  ;;  %v2853_v43 = vadd.f32 %v2820_v46, %v2732_v48 }
 0x289   : > { %v2034_v4 = vadd.f32 %v2033_v50, %v5803_v39  ;;  %v6686_v39 = vld [vmem:[#allocation11_spill] sm:$0xff] }
 0x28a   : > { %v2102_v13 = vpop.f32.mrf.mxu3  ;;  %v1948_v27 = vpop.f32.mrf.mxu0  ;;  %v6687_v50 = vld [vmem:[#allocation3_spill] sm:$0xff] }
 0x28b   : > { %v1949_v6 = vadd.f32 %v1948_v27, %v1880_v8  ;;  %v6115_v25 = vpop.f32.mrf.mxu1  ;;  %v2103_v12 = vadd.f32 %v2102_v13, %v2034_v4 }
 0x28c   : > { %v2876_v14 = vld [vmem:[#allocation2 + $0x168] sm:$0xfc] }
 0x28d   : > { %v2939_v17 = vrot.slane %v2876_v14, 2  ;;  %v2976_v58 = vld [vmem:[#allocation2 + $0x448] sm:$0xf8]  ;;  %v2940_v10 = vrot.slane %v1949_v6, 2  ;;  %v3026_v19 = vrot.slane %v2103_v12, 3  ;;  %2075 = vmatmul.bf16.gmra.mxu2 %v6686_v39  ;;  %2203 = vmatmul.bf16.gmra.mxu0 %v6687_v50  ;;  %v1882_v14 = vadd.f32 %v6075_v42, %v6070_v22 }
 0x28e   : > { %v3025_v1 = vrot.slane %v2976_v58, 3  ;;  %2272 = vmatmul.bf16.gmra.mxu1 %v4885_v9  ;;  %v4055_v42 = vld [vmem:[%s6571_s1 + $0x1d8] sm:$0xf0] }
 0x28f   : > { %2144 = vmatmul.bf16.gmra.mxu3 %v5401_v20  ;;  %v2941_v8 = vsel %vm2903_vm1, %v2939_v17, %v2940_v10  ;;  %v4555_v17 = vld [vmem:[%s6571_s1 + $0x1c4] sm:$0xf] }
 0x290   : > { %v3027_v23 = vsel %vm3024_vm2, %v3025_v1, %v3026_v19  ;;  %v2036_v4 = vpop.f32.mrf.mxu2  ;;  %v6126_v13 = vadd.f32 %v2941_v8, %v2853_v43  ;;  %v4058_v58 = vor.u32 %v4555_v17, %v4055_v42  ;;  %v4247_v1 = vld [vmem:[%s6571_s1 + $0x358] sm:$0xf0]  ;;  %v4221_v43 = vld [vmem:[%s6571_s1 + $0x310] sm:$0xf]  ;;  %v4600_v8 = vld [vmem:[%s6571_s1 + $0x324] sm:$0xf0] }
 0x291   : > { %v6131_v60 = vadd.f32 %v3027_v23, %v5807_v7  ;;  %v2037_v27 = vadd.f32 %v2036_v4, %v5809_v29  ;;  %v4603_v29 = vld [vmem:[%s6571_s1 + $0x344] sm:$0xf]  ;;  %v6689_v17 = vld [vmem:[#allocation5_spill] sm:$0xff] }
 0x292   : > { %v2105_v6 = vpop.f32.mrf.mxu3  ;;  %v1950_v12 = vpop.f32.mrf.mxu0  ;;  %v4250_v4 = vor.u32 %v4603_v29, %v4247_v1  ;;  %2442 = vmatpush.bf16.msra.mxu0 %v4058_v58  ;;  %v4501_v58 = vld [vmem:[%s6571_s1 + $0x14] sm:$0xf]  ;;  %v3839_v1 = vld [vmem:[%s6571_s1 + $0x28] sm:$0xf0] }
 0x293   : > { %v1951_v35 = vadd.f32 %v1950_v12, %v1882_v14  ;;  %v6134_v37 = vpop.f32.mrf.mxu1  ;;  %v2106_v48 = vadd.f32 %v2105_v6, %v2037_v27  ;;  %v4222_v14 = vor.u32 %v4600_v8, %v4221_v43 }
 0x294   : > { %2511 = vmatpush.bf16.msra.mxu1 %v4250_v4  ;;  %v3842_v4 = vor.u32 %v4501_v58, %v3839_v1 }
 0x295   : > { %2714 = vst [vmem:[#allocation2 + $0x3a8] sm:$0xff] %v1951_v35  ;;  %2305 = vmatpush.bf16.msra.mxu2 %v4222_v14 }
 0x296   : > { %2589 = vst [vmem:[#allocation2 + $0x148] sm:$0xff] %v2106_v48  ;;  %2374 = vmatpush.bf16.msra.mxu3 %v3842_v4  ;;  %v6694_v4 = vld [vmem:[#allocation9_spill] sm:$0xff] }
 0x298   : > { %v2038_v46 = vpop.f32.mrf.mxu2 }
 0x299   : > { %v2039_v7 = vadd.f32 %v2038_v46, %v5827_v16  ;;  %v6688_v46 = vld [vmem:[#allocation14_spill] sm:$0xff] }
 0x29a   : > { %v2107_v22 = vpop.f32.mrf.mxu3  ;;  %v2169_v23 = vpop.f32.mrf.mxu0 }
 0x29b   : > { %v2108_v27 = vadd.f32 %v2107_v22, %v2039_v7  ;;  %v2238_v6 = vpop.f32.mrf.mxu1 }
 0x29c   : > { %v2878_v16 = vld [vmem:[#allocation2 + $0x3a8] sm:$0x3]  ;;  %v6155_v12 = vadd.f32 %v2238_v6, %v2169_v23 }
 0x29d   : > { %v2942_v35 = vrot.slane %v2878_v16, 2  ;;  %v2978_v48 = vld [vmem:[#allocation2 + $0x148] sm:$0x7]  ;;  %2595 = vst [vmem:[#allocation2 + $0x3e0] sm:$0xff] %v2108_v27  ;;  %2080 = vmatmul.bf16.gmra.mxu2 %v6688_v46  ;;  %2208 = vmatmul.bf16.gmra.mxu0 %v6689_v17 }
 0x29e   : > { %v3028_v42 = vrot.slane %v2978_v48, 3  ;;  %2277 = vmatmul.bf16.gmra.mxu1 %v4959_v52 }
 0x29f   : > { %2149 = vmatmul.bf16.gmra.mxu3 %v5431_v62  ;;  %v2943_v29 = vsel %vm2903_vm1, %v2940_v10, %v2942_v35 }
 0x2a0   : > { %v3029_v7 = vsel %vm3024_vm2, %v3026_v19, %v3028_v42  ;;  %v2041_v22 = vpop.f32.mrf.mxu2  ;;  %v6170_v43 = vadd.f32 %v2943_v29, %v5801_v47  ;;  %v6692_v29 = vld [vmem:[#allocation34_spill] sm:$0xff] }
 0x2a1   : > { %v6173_v8 = vadd.f32 %v3029_v7, %v5837_v26  ;;  %v2042_v23 = vadd.f32 %v2041_v22, %v5845_v32 }
 0x2a2   : > { %v2110_v10 = vpop.f32.mrf.mxu3  ;;  %v2171_v19 = vpop.f32.mrf.mxu0 }
 0x2a3   : > { %6690 = vst [vmem:[#allocation27_spill] sm:$0xff] %v6173_v8  ;;  %v2111_v14 = vadd.f32 %v2110_v10, %v2042_v23  ;;  %v2240_v27 = vpop.f32.mrf.mxu1  ;;  %v6693_v10 = vld [vmem:[#allocation17_spill] sm:$0xff] }
 0x2a4   : > { %v2979_v6 = vld [vmem:[#allocation2 + $0x3e0] sm:$0xf8]  ;;  %v6176_v16 = vadd.f32 %v2240_v27, %v2171_v19  ;;  %v6695_v19 = vld [vmem:[#allocation30_spill] sm:$0xff]  ;;  %v4031_v27 = vld [vmem:[%s6571_s1 + $0x1a8] sm:$0xf0] }
 0x2a5   : > { %v3030_v35 = vrot.slane %v2979_v6, 3  ;;  %v3031_v48 = vrot.slane %v2111_v14, 3  ;;  %v4549_v14 = vld [vmem:[%s6571_s1 + $0x194] sm:$0xf] }
 0x2a6   : > { %v4597_v6 = vld [vmem:[%s6571_s1 + $0x314] sm:$0xf] }
 0x2a7   : > { %v3032_v42 = vsel %vm3024_vm2, %v3030_v35, %v3031_v48  ;;  %v6696_v35 = vld [vmem:[#allocation35_spill] sm:$0xff] }
 0x2a8   : > { %v6180_v47 = vadd.f32 %v3032_v42, %v5853_v36  ;;  %v2043_v26 = vpop.f32.mrf.mxu2 }
 0x2a9   : > { %v2044_v7 = vadd.f32 %v2043_v26, %v6692_v29  ;;  %v4034_v29 = vor.u32 %v4549_v14, %v4031_v27 }
 0x2aa   : > { %6691 = vst [vmem:[#allocation25_spill] sm:$0xff] %v6180_v47  ;;  %v2112_v32 = vpop.f32.mrf.mxu3  ;;  %v2174_v22 = vpop.f32.mrf.mxu0 }
 0x2ab   : > { %v2113_v58 = vadd.f32 %v2112_v32, %v2044_v7  ;;  %v2243_v1 = vpop.f32.mrf.mxu1  ;;  %v4223_v7 = vld [vmem:[%s6571_s1 + $0x328] sm:$0xf0]  ;;  %2443 = vmatpush.bf16.msra.mxu0 %v4034_v29 }
 0x2ac   : > { %v6183_v23 = vadd.f32 %v2243_v1, %v2174_v22  ;;  %v4226_v22 = vor.u32 %v4597_v6, %v4223_v7 }
 0x2ad   : > { %2607 = vst [vmem:[#allocation2 + $0x298] sm:$0xff] %v2113_v58  ;;  %2085 = vmatmul.bf16.gmra.mxu2 %v6693_v10  ;;  %2213 = vmatmul.bf16.gmra.mxu0 %v6694_v4 }
 0x2ae   : > { %2282 = vmatmul.bf16.gmra.mxu1 %v6686_v39 }
 0x2af   : > { %2154 = vmatmul.bf16.gmra.mxu3 %v6695_v19  ;;  %2512 = vmatpush.bf16.msra.mxu1 %v4226_v22  ;;  %v6698_v22 = vld [vmem:[#allocation12_spill] sm:$0xff] }
 0x2b0   : > { %v2046_v36 = vpop.f32.mrf.mxu2 }
 0x2b1   : > { %v2047_v42 = vadd.f32 %v2046_v36, %v6696_v35  ;;  %v6697_v36 = vld [vmem:[#allocation31_spill] sm:$0xff] }
 0x2b2   : > { %v2115_v26 = vpop.f32.mrf.mxu3  ;;  %v2176_v32 = vpop.f32.mrf.mxu0 }
 0x2b3   : > { %v2116_v58 = vadd.f32 %v2115_v26, %v2047_v42  ;;  %v2245_v1 = vpop.f32.mrf.mxu1 }
 0x2b4   : > { %v2981_v39 = vld [vmem:[#allocation2 + $0x298] sm:$0x7]  ;;  %v6202_v19 = vadd.f32 %v2245_v1, %v2176_v32 }
 0x2b5   : > { %v3033_v47 = vrot.slane %v2981_v39, 3  ;;  %2613 = vst [vmem:[#allocation2 + $0x1e8] sm:$0xff] %v2116_v58  ;;  %v6699_v39 = vld [vmem:[#allocation18_spill] sm:$0xff] }
 0x2b7   : > { %v3034_v8 = vsel %vm3024_vm2, %v3031_v48, %v3033_v47 }
 0x2b8   : > { %v6206_v35 = vadd.f32 %v3034_v8, %v6697_v36  ;;  %v2048_v14 = vpop.f32.mrf.mxu2 }
 0x2b9   : > { %v2049_v27 = vadd.f32 %v2048_v14, %v5891_v63 }
 0x2ba   : > { %v2117_v52 = vpop.f32.mrf.mxu3  ;;  %v2179_v62 = vpop.f32.mrf.mxu0 }
 0x2bb   : > { %v2118_v6 = vadd.f32 %v2117_v52, %v2049_v27  ;;  %v2248_v42 = vpop.f32.mrf.mxu1 }
 0x2bc   : > { %v2982_v26 = vld [vmem:[#allocation2 + $0x1e8] sm:$0xf8]  ;;  %v6209_v29 = vadd.f32 %v2248_v42, %v2179_v62 }
 0x2bd   : > { %v3035_v7 = vrot.slane %v2982_v26, 3  ;;  %v3036_v32 = vrot.slane %v2118_v6, 3  ;;  %2218 = vmatmul.bf16.gmra.mxu0 %v6698_v22  ;;  %2306 = vmatmul.bf16.vlgmr.msra.gmra.mxu2 %v6699_v39 }
 0x2be   : > { %2287 = vmatmul.bf16.gmra.mxu1 %v6688_v46 }
 0x2bf   : > { %2375 = vmatmul.bf16.vlgmr.msra.gmra.mxu3 %v4870_v3  ;;  %v3037_v8 = vsel %vm3024_vm2, %v3035_v7, %v3036_v32 }
 0x2c0   : > { %v6217_v63 = vadd.f32 %v3037_v8, %v5895_v34  ;;  %v2051_v52 = vpop.f32.mrf.mxu2 }
 0x2c1   : > { %v2052_v48 = vadd.f32 %v2051_v52, %v5897_v18  ;;  %v6700_v18 = vld [vmem:[#allocation15_spill] sm:$0xff]  ;;  %v6701_v52 = vld [vmem:[#allocation20_spill] sm:$0xff] }
 0x2c2   : > { %v2120_v62 = vpop.f32.mrf.mxu3  ;;  %v2181_v47 = vpop.f32.mrf.mxu0 }
 0x2c3   : > { %v2121_v58 = vadd.f32 %v2120_v62, %v2052_v48  ;;  %v2250_v1 = vpop.f32.mrf.mxu1 }
 0x2c4   : > { %v6220_v36 = vadd.f32 %v2250_v1, %v2181_v47 }
 0x2c5   : > { %2625 = vst [vmem:[#allocation2 + $0x3f0] sm:$0xff] %v2121_v58 }
 0x2c8   : > { %v2053_v14 = vpop.f32.mrf.mxu2 }
 0x2c9   : > { %v2054_v27 = vadd.f32 %v2053_v14, %v5915_v57 }
 0x2ca   : > { %v2122_v6 = vpop.f32.mrf.mxu3  ;;  %v2184_v3 = vpop.f32.mrf.mxu0 }
 0x2cb   : > { %v2123_v42 = vadd.f32 %v2122_v6, %v2054_v27  ;;  %v2253_v26 = vpop.f32.mrf.mxu1 }
 0x2cc   : > { %v2984_v7 = vld [vmem:[#allocation2 + $0x3f0] sm:$0x7]  ;;  %v6223_v34 = vadd.f32 %v2253_v26, %v2184_v3 }
 0x2cd   : > { %v3038_v8 = vrot.slane %v2984_v7, 3  ;;  %2631 = vst [vmem:[#allocation2 + $0x310] sm:$0xff] %v2123_v42  ;;  %2223 = vmatmul.bf16.gmra.mxu0 %v6700_v18  ;;  %2311 = vmatmul.bf16.gmra.mxu2 %v6701_v52 }
 0x2ce   : > { %2292 = vmatmul.bf16.gmra.mxu1 %v6693_v10 }
 0x2cf   : > { %2380 = vmatmul.bf16.gmra.mxu3 %v4953_v49  ;;  %v3039_v48 = vsel %vm3024_vm2, %v3036_v32, %v3038_v8 }
 0x2d0   : > { %v6231_v57 = vadd.f32 %v3039_v48, %v5931_v33  ;;  %v2056_v62 = vpop.f32.mrf.mxu2 }
 0x2d1   : > { %v2057_v47 = vadd.f32 %v2056_v62, %v5933_v44 }
 0x2d2   : > { %6702 = vst [vmem:[#allocation3_spill] sm:$0xff] %v6231_v57  ;;  %v2125_v58 = vpop.f32.mrf.mxu3  ;;  %v2186_v1 = vpop.f32.mrf.mxu0 }
 0x2d3   : > { %v2126_v14 = vadd.f32 %v2125_v58, %v2057_v47  ;;  %v2255_v27 = vpop.f32.mrf.mxu1  ;;  %v6704_v47 = vld [vmem:[#allocation22_spill] sm:$0xff]  ;;  %v6705_v58 = vld [vmem:[#allocation4_spill] sm:$0xff] }
 0x2d4   : > { %v2985_v6 = vld [vmem:[#allocation2 + $0x310] sm:$0xf8]  ;;  %v6234_v3 = vadd.f32 %v2255_v27, %v2186_v1  ;;  %v6706_v1 = vld [vmem:[#allocation8_spill] sm:$0xff] }
 0x2d5   : > { %v3040_v42 = vrot.slane %v2985_v6, 3  ;;  %v3041_v26 = vrot.slane %v2126_v14, 3 }
 0x2d7   : > { %v3042_v7 = vsel %vm3024_vm2, %v3040_v42, %v3041_v26 }
 0x2d8   : > { %v2058_v49 = vpop.f32.mrf.mxu2  ;;  %v6238_v32 = vadd.f32 %v3042_v7, %v5941_v30  ;;  %v6707_v30 = vld [vmem:[#allocation36_spill] sm:$0xff] }
 0x2d9   : > { %v2059_v33 = vadd.f32 %v2058_v49, %v5943_v24 }
 0x2da   : > { %6703 = vst [vmem:[#allocation14_spill] sm:$0xff] %v6238_v32  ;;  %v2127_v8 = vpop.f32.mrf.mxu3  ;;  %v2189_v48 = vpop.f32.mrf.mxu0 }
 0x2db   : > { %v2128_v44 = vadd.f32 %v2127_v8, %v2059_v33  ;;  %v2258_v62 = vpop.f32.mrf.mxu1 }
 0x2dc   : > { %v6241_v57 = vadd.f32 %v2258_v62, %v2189_v48 }
 0x2dd   : > { %2643 = vst [vmem:[#allocation2 + $0x140] sm:$0xff] %v2128_v44  ;;  %2316 = vmatmul.bf16.gmra.mxu2 %v6704_v47  ;;  %2444 = vmatmul.bf16.vlgmr.msra.gmra.mxu0 %v6705_v58 }
 0x2de   : > { %2513 = vmatmul.bf16.vlgmr.msra.gmra.mxu1 %v6699_v39 }
 0x2df   : > { %2385 = vmatmul.bf16.gmra.mxu3 %v6706_v1 }
 0x2e0   : > { %v2061_v14 = vpop.f32.mrf.mxu2 }
 0x2e1   : > { %v2062_v27 = vadd.f32 %v2061_v14, %v6707_v30 }
 0x2e2   : > { %v2130_v6 = vpop.f32.mrf.mxu3  ;;  %v2191_v24 = vpop.f32.mrf.mxu0 }
 0x2e3   : > { %v2131_v42 = vadd.f32 %v2130_v6, %v2062_v27  ;;  %v2260_v7 = vpop.f32.mrf.mxu1 }
 0x2e4   : > { %v2987_v49 = vld [vmem:[#allocation2 + $0x140] sm:$0x7]  ;;  %v6248_v33 = vadd.f32 %v2260_v7, %v2191_v24 }
 0x2e5   : > { %v3043_v8 = vrot.slane %v2987_v49, 3  ;;  %2649 = vst [vmem:[#allocation2 + $0x130] sm:$0xff] %v2131_v42  ;;  %v6708_v7 = vld [vmem:[#allocation23_spill] sm:$0xff]  ;;  %v6709_v42 = vld [vmem:[#allocation6_spill] sm:$0xff] }
 0x2e7   : > { %v3044_v48 = vsel %vm3024_vm2, %v3041_v26, %v3043_v8 }
 0x2e8   : > { %v2063_v44 = vpop.f32.mrf.mxu2  ;;  %v6252_v62 = vadd.f32 %v3044_v48, %v5977_v53 }
 0x2e9   : > { %v2064_v39 = vadd.f32 %v2063_v44, %v5979_v15 }
 0x2ea   : > { %v2132_v58 = vpop.f32.mrf.mxu3  ;;  %v2194_v1 = vpop.f32.mrf.mxu0 }
 0x2eb   : > { %v2133_v14 = vadd.f32 %v2132_v58, %v2064_v39  ;;  %v2263_v30 = vpop.f32.mrf.mxu1 }
 0x2ec   : > { %v2988_v32 = vld [vmem:[#allocation2 + $0x130] sm:$0xf8]  ;;  %v6255_v27 = vadd.f32 %v2263_v30, %v2194_v1 }
 0x2ed   : > { %v3045_v6 = vrot.slane %v2988_v32, 3  ;;  %v3046_v24 = vrot.slane %v2133_v14, 3  ;;  %2321 = vmatmul.bf16.gmra.mxu2 %v6708_v7  ;;  %2449 = vmatmul.bf16.gmra.mxu0 %v6709_v42 }
 0x2ee   : > { %2518 = vmatmul.bf16.gmra.mxu1 %v6701_v52 }
 0x2ef   : > { %2390 = vmatmul.bf16.gmra.mxu3 %v5071_v56  ;;  %v3047_v53 = vsel %vm3024_vm2, %v3045_v6, %v3046_v24 }
 0x2f0   : > { %v2066_v15 = vpop.f32.mrf.mxu2  ;;  %v6263_v26 = vadd.f32 %v3047_v53, %v5983_v28  ;;  %v6711_v53 = vld [vmem:[#allocation10_spill] sm:$0xff] }
 0x2f1   : > { %v2067_v49 = vadd.f32 %v2066_v15, %v5985_v0  ;;  %v6710_v0 = vld [vmem:[#allocation24_spill] sm:$0xff] }
 0x2f2   : > { %v2135_v8 = vpop.f32.mrf.mxu3  ;;  %v2196_v48 = vpop.f32.mrf.mxu0 }
 0x2f3   : > { %v2136_v32 = vadd.f32 %v2135_v8, %v2067_v49  ;;  %v2265_v44 = vpop.f32.mrf.mxu1 }
 0x2f4   : > { %v6266_v39 = vadd.f32 %v2265_v44, %v2196_v48 }
 0x2f5   : > { %2661 = vst [vmem:[#allocation2 + $0x230] sm:$0xff] %v2136_v32 }
 0x2f8   : > { %v2068_v58 = vpop.f32.mrf.mxu2 }
 0x2f9   : > { %v2069_v52 = vadd.f32 %v2068_v58, %v6003_v61 }
 0x2fa   : > { %v2137_v1 = vpop.f32.mrf.mxu3  ;;  %v2199_v56 = vpop.f32.mrf.mxu0 }
 0x2fb   : > { %v2138_v14 = vadd.f32 %v2137_v1, %v2069_v52  ;;  %v2268_v30 = vpop.f32.mrf.mxu1 }
 0x2fc   : > { %v2990_v6 = vld [vmem:[#allocation2 + $0x230] sm:$0x7]  ;;  %v6269_v42 = vadd.f32 %v2268_v30, %v2199_v56 }
 0x2fd   : > { %v3048_v28 = vrot.slane %v2990_v6, 3  ;;  %2667 = vst [vmem:[#allocation2 + $0x218] sm:$0xff] %v2138_v14  ;;  %2326 = vmatmul.bf16.gmra.mxu2 %v6710_v0  ;;  %2454 = vmatmul.bf16.gmra.mxu0 %v6711_v53 }
 0x2fe   : > { %2523 = vmatmul.bf16.gmra.mxu1 %v6704_v47 }
 0x2ff   : > { %2395 = vmatmul.bf16.gmra.mxu3 %v5109_v21  ;;  %v3049_v15 = vsel %vm3024_vm2, %v3046_v24, %v3048_v28 }
 0x300   : > { %v2071_v61 = vpop.f32.mrf.mxu2  ;;  %v6277_v49 = vadd.f32 %v3049_v15, %v6019_v11  ;;  %v6712_v15 = vld [vmem:[#allocation13_spill] sm:$0xff] }
 0x301   : > { %v2072_v8 = vadd.f32 %v2071_v61, %v6021_v5 }
 0x302   : > { %v2140_v48 = vpop.f32.mrf.mxu3  ;;  %v2201_v32 = vpop.f32.mrf.mxu0 }
 0x303   : > { %v2141_v44 = vadd.f32 %v2140_v48, %v2072_v8  ;;  %v2270_v58 = vpop.f32.mrf.mxu1 }
 0x304   : > { %v2991_v52 = vld [vmem:[#allocation2 + $0x218] sm:$0xf8]  ;;  %v6280_v1 = vadd.f32 %v2270_v58, %v2201_v32 }
 0x305   : > { %v3050_v56 = vrot.slane %v2991_v52, 3  ;;  %v3051_v14 = vrot.slane %v2141_v44, 3 }
 0x307   : > { %v3052_v47 = vsel %vm3024_vm2, %v3050_v56, %v3051_v14 }
 0x308   : > { %v2073_v21 = vpop.f32.mrf.mxu2  ;;  %v6284_v24 = vadd.f32 %v3052_v47, %v6029_v31 }
 0x309   : > { %v2074_v11 = vadd.f32 %v2073_v21, %v6031_v59 }
 0x30a   : > { %v2142_v30 = vpop.f32.mrf.mxu3  ;;  %v2204_v6 = vpop.f32.mrf.mxu0 }
 0x30b   : > { %v2143_v5 = vadd.f32 %v2142_v30, %v2074_v11  ;;  %v2273_v28 = vpop.f32.mrf.mxu1 }
 0x30c   : > { %v6287_v53 = vadd.f32 %v2273_v28, %v2204_v6 }
 0x30d   : > { %2679 = vst [vmem:[#allocation2 + $0x138] sm:$0xff] %v2143_v5  ;;  %2331 = vmatmul.bf16.gmra.mxu2 %v5291_v54  ;;  %2459 = vmatmul.bf16.gmra.mxu0 %v6712_v15 }
 0x30e   : > { %2528 = vmatmul.bf16.gmra.mxu1 %v6708_v7 }
 0x30f   : > { %2400 = vmatmul.bf16.gmra.mxu3 %v5145_v40 }
 0x310   : > { %v2076_v61 = vpop.f32.mrf.mxu2 }
 0x311   : > { %v2077_v31 = vadd.f32 %v2076_v61, %v6045_v45  ;;  %v6713_v61 = vld [vmem:[#allocation16_spill] sm:$0xff] }
 0x312   : > { %v2145_v8 = vpop.f32.mrf.mxu3  ;;  %v2206_v59 = vpop.f32.mrf.mxu0 }
 0x313   : > { %v2146_v48 = vadd.f32 %v2145_v8, %v2077_v31  ;;  %v2275_v32 = vpop.f32.mrf.mxu1  ;;  %v6715_v8 = vld [vmem:[#allocation37_spill] sm:$0xff] }
 0x314   : > { %v2993_v44 = vld [vmem:[#allocation2 + $0x138] sm:$0x7]  ;;  %v6294_v58 = vadd.f32 %v2275_v32, %v2206_v59 }
 0x315   : > { %v3053_v52 = vrot.slane %v2993_v44, 3  ;;  %2685 = vst [vmem:[#allocation2 + $0x28] sm:$0xff] %v2146_v48 }
 0x317   : > { %v3054_v56 = vsel %vm3024_vm2, %v3051_v14, %v3053_v52  ;;  %v6714_v14 = vld [vmem:[#allocation32_spill] sm:$0xff] }
 0x318   : > { %v2078_v47 = vpop.f32.mrf.mxu2  ;;  %v6298_v21 = vadd.f32 %v3054_v56, %v6059_v55 }
 0x319   : > { %v2079_v40 = vadd.f32 %v2078_v47, %v6067_v41 }
 0x31a   : > { %v2147_v7 = vpop.f32.mrf.mxu3  ;;  %v2209_v11 = vpop.f32.mrf.mxu0 }
 0x31b   : > { %v2148_v45 = vadd.f32 %v2147_v7, %v2079_v40  ;;  %v2278_v30 = vpop.f32.mrf.mxu1  ;;  %v6716_v40 = vld [vmem:[#allocation33_spill] sm:$0xff] }
 0x31c   : > { %v2994_v6 = vld [vmem:[#allocation2 + $0x28] sm:$0xf8]  ;;  %v6301_v5 = vadd.f32 %v2278_v30, %v2209_v11 }
 0x31d   : > { %v3055_v28 = vrot.slane %v2994_v6, 3  ;;  %v3056_v15 = vrot.slane %v2148_v45, 3  ;;  %2336 = vmatmul.bf16.gmra.mxu2 %v6662_v38  ;;  %2464 = vmatmul.bf16.gmra.mxu0 %v6713_v61  ;;  %v6717_v61 = vld [vmem:[#allocation26_spill] sm:$0xff] }
 0x31e   : > { %2533 = vmatmul.bf16.gmra.mxu1 %v6710_v0 }
 0x31f   : > { %2405 = vmatmul.bf16.gmra.mxu3 %v5179_v2  ;;  %v3057_v55 = vsel %vm3024_vm2, %v3055_v28, %v3056_v15 }
 0x320   : > { %v2081_v41 = vpop.f32.mrf.mxu2  ;;  %v6309_v31 = vadd.f32 %v3057_v55, %v6714_v14  ;;  %v6718_v55 = vld [vmem:[#allocation19_spill] sm:$0xff] }
 0x321   : > { %v2082_v59 = vadd.f32 %v2081_v41, %v6715_v8 }
 0x322   : > { %v2150_v48 = vpop.f32.mrf.mxu3  ;;  %v2211_v32 = vpop.f32.mrf.mxu0 }
 0x323   : > { %v2151_v44 = vadd.f32 %v2150_v48, %v2082_v59  ;;  %v2280_v52 = vpop.f32.mrf.mxu1 }
 0x324   : > { %v6312_v56 = vadd.f32 %v2280_v52, %v2211_v32 }
 0x325   : > { %2697 = vst [vmem:[#allocation2 + $0x1c8] sm:$0xff] %v2151_v44 }
 0x328   : > { %v2083_v47 = vpop.f32.mrf.mxu2 }
 0x329   : > { %v2084_v0 = vadd.f32 %v2083_v47, %v6716_v40 }
 0x32a   : > { %v2152_v7 = vpop.f32.mrf.mxu3  ;;  %v2214_v2 = vpop.f32.mrf.mxu0 }
 0x32b   : > { %v2153_v11 = vadd.f32 %v2152_v7, %v2084_v0  ;;  %v2283_v45 = vpop.f32.mrf.mxu1 }
 0x32c   : > { %v2996_v30 = vld [vmem:[#allocation2 + $0x1c8] sm:$0x7]  ;;  %v6315_v6 = vadd.f32 %v2283_v45, %v2214_v2 }
 0x32d   : > { %v3058_v28 = vrot.slane %v2996_v30, 3  ;;  %2703 = vst [vmem:[#allocation2 + $0x90] sm:$0xff] %v2153_v11  ;;  %2341 = vmatmul.bf16.gmra.mxu2 %v6717_v61  ;;  %2469 = vmatmul.bf16.gmra.mxu0 %v6718_v55  ;;  %v6720_v55 = vld [vmem:[#allocation21_spill] sm:$0xff] }
 0x32e   : > { %2538 = vmatmul.bf16.gmra.mxu1 %v5291_v54 }
 0x32f   : > { %2410 = vmatmul.bf16.gmra.mxu3 %v6687_v50  ;;  %v3059_v41 = vsel %vm3024_vm2, %v3056_v15, %v3058_v28  ;;  %v6719_v28 = vld [vmem:[#allocation28_spill] sm:$0xff] }
 0x330   : > { %v2086_v14 = vpop.f32.mrf.mxu2  ;;  %v6323_v8 = vadd.f32 %v3059_v41, %v6112_v51 }
 0x331   : > { %v2087_v59 = vadd.f32 %v2086_v14, %v6115_v25 }
 0x332   : > { %v2155_v48 = vpop.f32.mrf.mxu3  ;;  %v2216_v32 = vpop.f32.mrf.mxu0 }
 0x333   : > { %v2156_v44 = vadd.f32 %v2155_v48, %v2087_v59  ;;  %v2285_v52 = vpop.f32.mrf.mxu1 }
 0x334   : > { %v2997_v47 = vld [vmem:[#allocation2 + $0x90] sm:$0xf8]  ;;  %v6326_v40 = vadd.f32 %v2285_v52, %v2216_v32 }
 0x335   : > { %v3060_v0 = vrot.slane %v2997_v47, 3  ;;  %v3061_v7 = vrot.slane %v2156_v44, 3 }
 0x337   : > { %v3062_v54 = vsel %vm3024_vm2, %v3060_v0, %v3061_v7 }
 0x338   : > { %v2088_v50 = vpop.f32.mrf.mxu2  ;;  %v6330_v15 = vadd.f32 %v3062_v54, %v6126_v13 }
 0x339   : > { %v2089_v51 = vadd.f32 %v2088_v50, %v6134_v37 }
 0x33a   : > { %v2157_v2 = vpop.f32.mrf.mxu3  ;;  %v2219_v11 = vpop.f32.mrf.mxu0 }
 0x33b   : > { %v2158_v25 = vadd.f32 %v2157_v2, %v2089_v51  ;;  %v2288_v45 = vpop.f32.mrf.mxu1 }
 0x33c   : > { %v6333_v30 = vadd.f32 %v2288_v45, %v2219_v11 }
 0x33d   : > { %2715 = vst [vmem:[#allocation2 + $0x98] sm:$0xff] %v2158_v25  ;;  %2346 = vmatmul.bf16.gmra.mxu2 %v6719_v28  ;;  %2474 = vmatmul.bf16.gmra.mxu0 %v6720_v55 }
 0x33e   : > { %2543 = vmatmul.bf16.gmra.mxu1 %v6662_v38 }
 0x33f   : > { %2415 = vmatmul.bf16.gmra.mxu3 %v6689_v17 }
 0x340   : > { %v2307_v41 = vpop.f32.mrf.mxu2 }
 0x341   : > { %v2308_v13 = vadd.f32 %v2307_v41, %v6155_v12 }
 0x342   : > { %v2376_v14 = vpop.f32.mrf.mxu3  ;;  %v2221_v37 = vpop.f32.mrf.mxu0 }
 0x343   : > { %2578 = vst [vmem:[#allocation2 + $0x320] sm:$0xff] %v2308_v13  ;;  %v2290_v59 = vpop.f32.mrf.mxu1 }
 0x344   : > { %v2999_v48 = vld [vmem:[#allocation2 + $0x98] sm:$0x7]  ;;  %v6340_v32 = vadd.f32 %v2290_v59, %v2221_v37 }
 0x345   : > { %v3063_v44 = vrot.slane %v2999_v48, 3  ;;  %v4650_v37 = vld [vmem:[%s6573_s3 + $0x38] sm:$0xff] }
 0x346   : > { %3588 = vmatpush.bf16.msrb.mxu2 %v4650_v37 }
 0x347   : > { %v3064_v52 = vsel %vm3024_vm2, %v3061_v7, %v3063_v44 }
 0x348   : > { %v2309_v47 = vpop.f32.mrf.mxu2  ;;  %v6344_v0 = vadd.f32 %v3064_v52, %v6170_v43 }
 0x349   : > { %v2310_v38 = vadd.f32 %v2309_v47, %v6176_v16  ;;  %v6368_v47 = vld [vmem:[%s6572_s2] sm:$0xff] }
 0x34a   : > { %v2378_v17 = vpop.f32.mrf.mxu3  ;;  %v3097_v54 = vld [vmem:[#allocation2 + $0x320] sm:$0xf0]  ;;  %v2224_v12 = vpop.f32.mrf.mxu0 }
 0x34b   : > { %v3146_v50 = vrot.slane %v3097_v54, 4  ;;  %v3147_v51 = vrot.slane %v2310_v38, 4  ;;  %v2293_v2 = vpop.f32.mrf.mxu1 }
 0x34c   : > { %v6347_v11 = vadd.f32 %v2293_v2, %v2224_v12  ;;  %v6721_v12 = vld [vmem:[#allocation29_spill] sm:$0xff]  ;;  %v6723_v2 = vld [vmem:[#allocation27_spill] sm:$0xff] }
 0x34d   : > { %v3148_v25 = vsel %vm3145_vm3, %v3146_v50, %v3147_v51  ;;  %2351 = vmatmul.bf16.gmra.mxu2 %v5401_v20  ;;  %2479 = vmatmul.bf16.gmra.mxu0 %v4885_v9  ;;  %v4658_v9 = vld [vmem:[%s6573_s3 + $0x78] sm:$0xff]  ;;  %v6722_v50 = vld [vmem:[#allocation7_spill] sm:$0xff] }
 0x34e   : > { %v3202_v43 = vadd.f32 %v3148_v25, %v6131_v60  ;;  %2548 = vmatmul.bf16.gmra.mxu1 %v6717_v61  ;;  %3601 = vmatpush.bf16.msrb.mxu3 %v4658_v9 }
 0x34f   : > { %2420 = vmatmul.bf16.gmra.mxu3 %v6694_v4 }
 0x350   : > { %v2312_v16 = vpop.f32.mrf.mxu2  ;;  %v3220_v25 = vadd.f32 %v6368_v47, %v3202_v43  ;;  %v6392_v43 = vld [vmem:[%s6572_s2 + $0x18] sm:$0xff] }
 0x351   : > { %v2313_v7 = vadd.f32 %v2312_v16, %v6183_v23 }
 0x352   : > { %v2381_v45 = vpop.f32.mrf.mxu3  ;;  %v2226_v55 = vpop.f32.mrf.mxu0  ;;  %v3236_v9 = vmax.f32 %v3220_v25, 0.0 }
 0x353   : > { %2590 = vst [vmem:[#allocation2 + $0x208] sm:$0xff] %v2313_v7  ;;  %v2295_v41 = vpop.f32.mrf.mxu1 }
 0x354   : > { %v6356_v13 = vadd.f32 %v2295_v41, %v2226_v55  ;;  %v6387_v41 = vld [vmem:[%s6572_s2 + $0x10] sm:$0xff] }
 0x358   : > { %v2314_v60 = vpop.f32.mrf.mxu2 }
 0x359   : > { %v2315_v4 = vadd.f32 %v2314_v60, %v6202_v19  ;;  %v6376_v19 = vld [vmem:[%s6572_s2 + $0x8] sm:$0xff] }
 0x35a   : > { %v2383_v23 = vpop.f32.mrf.mxu3  ;;  %v3099_v61 = vld [vmem:[#allocation2 + $0x208] sm:$0xf]  ;;  %v2445_v59 = vpop.f32.mrf.mxu0 }
 0x35b   : > { %v3149_v48 = vrot.slane %v3099_v61, 4  ;;  %2596 = vst [vmem:[#allocation2 + $0x1a8] sm:$0xff] %v2315_v4  ;;  %v2446_v44 = vadd.f32 %v2445_v59, %v2376_v14  ;;  %v2514_v52 = vpop.f32.mrf.mxu1 }
 0x35d   : > { %v3150_v38 = vsel %vm3145_vm3, %v3147_v51, %v3149_v48  ;;  %v2515_v54 = vadd.f32 %v2514_v52, %v2446_v44  ;;  %2356 = vmatmul.bf16.gmra.mxu2 %v6721_v12  ;;  %2484 = vmatmul.bf16.gmra.mxu0 %v6722_v50  ;;  %v6724_v52 = vld [vmem:[#allocation25_spill] sm:$0xff] }
 0x35e   : > { %v3203_v14 = vadd.f32 %v3150_v38, %v6723_v2  ;;  %2553 = vmatmul.bf16.gmra.mxu1 %v6719_v28 }
 0x35f   : > { %2425 = vmatmul.bf16.gmra.mxu3 %v6698_v22  ;;  %v3327_v59 = vadd.f32 %v6387_v41, %v2515_v54  ;;  %v6726_v54 = vld [vmem:[#allocation11_spill] sm:$0xff] }
 0x360   : > { %v2317_v16 = vpop.f32.mrf.mxu2  ;;  %v3221_v51 = vadd.f32 %v6376_v19, %v3203_v14 }
 0x361   : > { %v2318_v7 = vadd.f32 %v2317_v16, %v6209_v29  ;;  %v3343_v14 = vmax.f32 %v3327_v59, 0.0 }
 0x362   : > { %v2386_v45 = vpop.f32.mrf.mxu3  ;;  %v3100_v55 = vld [vmem:[#allocation2 + $0x1a8] sm:$0xf0]  ;;  %v2447_v37 = vpop.f32.mrf.mxu0  ;;  %v3237_v60 = vmax.f32 %v3221_v51, 0.0 }
 0x363   : > { %v3151_v28 = vrot.slane %v3100_v55, 4  ;;  %v3152_v4 = vrot.slane %v2318_v7, 4  ;;  %v2448_v22 = vadd.f32 %v2447_v37, %v2378_v17  ;;  %v2516_v61 = vpop.f32.mrf.mxu1  ;;  %v6725_v37 = vld [vmem:[#allocation30_spill] sm:$0xff] }
 0x364   : > { %v3252_v29 = vmax.f32 %v3236_v9, %v3237_v60  ;;  %v4649_v9 = vld [vmem:[%s6573_s3 + $0x30] sm:$0xff] }
 0x365   : > { %v3153_v48 = vsel %vm3145_vm3, %v3151_v28, %v3152_v4  ;;  %v2517_v44 = vadd.f32 %v2516_v61, %v2448_v22  ;;  %v4657_v60 = vld [vmem:[%s6573_s3 + $0x70] sm:$0xff]  ;;  %3589 = vmatpush.bf16.msrb.mxu2 %v4649_v9 }
 0x366   : > { %v3204_v38 = vadd.f32 %v3153_v48, %v6724_v52  ;;  %3602 = vmatpush.bf16.msrb.mxu3 %v4657_v60 }
 0x367   : > { %v3328_v50 = vadd.f32 %v6392_v43, %v2517_v44 }
 0x368   : > { %v2319_v2 = vpop.f32.mrf.mxu2 }
 0x369   : > { %v3344_v25 = vmax.f32 %v3328_v50, 0.0  ;;  %v2320_v17 = vadd.f32 %v2319_v2, %v6220_v36  ;;  %v3253_v50 = vrot.slane %v3252_v29, 4 }
 0x36a   : > { %v2388_v16 = vpop.f32.mrf.mxu3  ;;  %v2450_v51 = vpop.f32.mrf.mxu0 }
 0x36b   : > { %2608 = vst [vmem:[#allocation2 + $0x278] sm:$0xff] %v2320_v17  ;;  %v2519_v7 = vpop.f32.mrf.mxu1  ;;  %v3359_v55 = vmax.f32 %v3343_v14, %v3344_v25 }
 0x36d   : > { %2361 = vmatmul.bf16.gmra.mxu2 %v6725_v37  ;;  %2489 = vmatmul.bf16.gmra.mxu0 %v6726_v54 }
 0x36e   : > { %2558 = vmatmul.bf16.gmra.mxu1 %v5401_v20 }
 0x36f   : > { %2430 = vmatmul.bf16.gmra.mxu3 %v6700_v18  ;;  %v3222_v18 = vadd.f32 %v6368_v47, %v3204_v38 }
 0x370   : > { %v2322_v36 = vpop.f32.mrf.mxu2 }
 0x371   : > { %v2323_v28 = vadd.f32 %v2322_v36, %v6223_v34  ;;  %v3254_v34 = vmax.f32 %v3252_v29, %v3253_v50  ;;  %v3238_v54 = vmax.f32 %v3222_v18, 0.0 }
 0x372   : > { %v6410_v22 = vpop.f32.mrf.mxu3  ;;  %v3102_v61 = vld [vmem:[#allocation2 + $0x278] sm:$0xf]  ;;  %v2452_v59 = vpop.f32.mrf.mxu0 }
 0x373   : > { %v3154_v48 = vrot.slane %v3102_v61, 4  ;;  %2614 = vst [vmem:[#allocation2 + $0x1f8] sm:$0xff] %v2323_v28  ;;  %v2453_v44 = vadd.f32 %v2452_v59, %v2383_v23  ;;  %v2521_v52 = vpop.f32.mrf.mxu1  ;;  %v3360_v28 = vrot.slane %v3359_v55, 4  ;;  %v3255_v38 = vrot.slane %v3254_v34, 2 }
 0x375   : > { %v3155_v2 = vsel %vm3145_vm3, %v3152_v4, %v3154_v48  ;;  %v2522_v14 = vadd.f32 %v2521_v52, %v2453_v44  ;;  %v3361_v50 = vmax.f32 %v3359_v55, %v3360_v28 }
 0x376   : > { %v3205_v20 = vadd.f32 %v3155_v2, %v6206_v35  ;;  %v3256_v2 = vmax.f32 %v3254_v34, %v3255_v38 }
 0x377   : > { %v3329_v59 = vadd.f32 %v6387_v41, %v2522_v14  ;;  %v3362_v55 = vrot.slane %v3361_v50, 2 }
 0x378   : > { %v2324_v25 = vpop.f32.mrf.mxu2  ;;  %v3223_v17 = vadd.f32 %v6376_v19, %v3205_v20 }
 0x379   : > { %v6417_v16 = vadd.f32 %v2324_v25, %v6234_v3  ;;  %v3345_v18 = vmax.f32 %v3329_v59, 0.0 }
 0x37a   : > { %v6419_v51 = vpop.f32.mrf.mxu3  ;;  %v3103_v7 = vld [vmem:[#allocation2 + $0x1f8] sm:$0xf0]  ;;  %v2455_v23 = vpop.f32.mrf.mxu0  ;;  %v3239_v9 = vmax.f32 %v3223_v17, 0.0 }
 0x37b   : > { %v3156_v60 = vrot.slane %v3103_v7, 4  ;;  %v3157_v4 = vrot.slane %v6417_v16, 4  ;;  %v2456_v36 = vadd.f32 %v2455_v23, %v2386_v45  ;;  %v2524_v35 = vpop.f32.mrf.mxu1  ;;  %v3257_v23 = vrot.slane %v3256_v2, 1 }
 0x37c   : > { %v3259_v61 = vmax.f32 %v3238_v54, %v3239_v9 }
 0x37d   : > { %v3158_v29 = vsel %vm3145_vm3, %v3156_v60, %v3157_v4  ;;  %v2525_v3 = vadd.f32 %v2524_v35, %v2456_v36  ;;  %2494 = vmatmul.bf16.gmra.mxu0 %v6688_v46  ;;  %v3363_v60 = vmax.f32 %v3361_v50, %v3362_v55  ;;  %v3258_v28 = vmax.f32 %v3256_v2, %v3257_v23 }
 0x37e   : > { %2563 = vmatmul.bf16.gmra.mxu1 %v6721_v12  ;;  %v3206_v48 = vadd.f32 %v3158_v29, %v6217_v63  ;;  %v3260_v44 = vrot.slane %v3259_v61, 4  ;;  %v4648_v63 = vld [vmem:[%s6573_s3 + $0x28] sm:$0xff] }
 0x37f   : > { %v3330_v52 = vadd.f32 %v6392_v43, %v2525_v3  ;;  %v4656_v12 = vld [vmem:[%s6573_s3 + $0x68] sm:$0xff]  ;;  %3590 = vmatpush.bf16.msrb.mxu2 %v4648_v63  ;;  %v3364_v50 = vrot.slane %v3363_v60, 1 }
 0x380   : > { %v2327_v45 = vpop.f32.mrf.mxu2  ;;  %v3261_v20 = vmax.f32 %v3259_v61, %v3260_v44  ;;  %3603 = vmatpush.bf16.msrb.mxu3 %v4656_v12 }
 0x381   : > { %v3346_v25 = vmax.f32 %v3330_v52, 0.0  ;;  %v2328_v14 = vadd.f32 %v2327_v45, %v6241_v57 }
 0x382   : > { %v2396_v17 = vpop.f32.mrf.mxu3  ;;  %v2457_v16 = vpop.f32.mrf.mxu0  ;;  %v3262_v7 = vrot.slane %v3261_v20, 2 }
 0x383   : > { %2626 = vst [vmem:[#allocation2 + $0x338] sm:$0xff] %v2328_v14  ;;  %v2526_v46 = vpop.f32.mrf.mxu1  ;;  %v3366_v34 = vmax.f32 %v3345_v18, %v3346_v25  ;;  %v6727_v17 = vld [vmem:[#allocation3_spill] sm:$0xff] }
 0x384   : > { %v3263_v54 = vmax.f32 %v3261_v20, %v3262_v7  ;;  %v3224_v7 = vadd.f32 %v6368_v47, %v3206_v48  ;;  %v3365_v46 = vmax.f32 %v3363_v60, %v3364_v50 }
 0x385   : > { %v3367_v57 = vrot.slane %v3366_v34, 4 }
 0x386   : > { %v3264_v9 = vrot.slane %v3263_v54, 1 }
 0x387   : > { %v3368_v36 = vmax.f32 %v3366_v34, %v3367_v57 }
 0x388   : > { %v2329_v35 = vpop.f32.mrf.mxu2  ;;  %v3265_v38 = vmax.f32 %v3263_v54, %v3264_v9  ;;  %v3240_v54 = vmax.f32 %v3224_v7, 0.0 }
 0x389   : > { %v2330_v61 = vadd.f32 %v2329_v35, %v6248_v33  ;;  %v3369_v29 = vrot.slane %v3368_v36, 2 }
 0x38a   : > { %v6436_v59 = vpop.f32.mrf.mxu3  ;;  %v3105_v3 = vld [vmem:[#allocation2 + $0x338] sm:$0xf]  ;;  %v2460_v44 = vpop.f32.mrf.mxu0  ;;  %v6439_v52 = vsel %vm3423_vm4, %v3265_v38, %v3258_v28 }
 0x38b   : > { %v3159_v45 = vrot.slane %v3105_v3, 4  ;;  %2632 = vst [vmem:[#allocation2 + $0x280] sm:$0xff] %v2330_v61  ;;  %v2461_v20 = vadd.f32 %v2460_v44, %v6410_v22  ;;  %v2529_v18 = vpop.f32.mrf.mxu1  ;;  %v3370_v25 = vmax.f32 %v3368_v36, %v3369_v29 }
 0x38d   : > { %v3160_v2 = vsel %vm3145_vm3, %v3157_v4, %v3159_v45  ;;  %v2530_v14 = vadd.f32 %v2529_v18, %v2461_v20  ;;  %2499 = vmatmul.bf16.gmra.mxu0 %v6693_v10  ;;  %v3371_v33 = vrot.slane %v3370_v25, 1 }
 0x38e   : > { %2568 = vmatmul.bf16.gmra.mxu1 %v6725_v37  ;;  %v3207_v16 = vadd.f32 %v3160_v2, %v6727_v17  ;;  %v4655_v17 = vld [vmem:[%s6573_s3 + $0x60] sm:$0xff] }
 0x38f   : > { %v3372_v63 = vmax.f32 %v3370_v25, %v3371_v33  ;;  %v3331_v35 = vadd.f32 %v6387_v41, %v2530_v14  ;;  %v4647_v14 = vld [vmem:[%s6573_s3 + $0x20] sm:$0xff]  ;;  %3604 = vmatpush.bf16.msrb.mxu3 %v4655_v17 }
 0x390   : > { %v2332_v12 = vpop.f32.mrf.mxu2  ;;  %v3225_v22 = vadd.f32 %v6376_v19, %v3207_v16  ;;  %3591 = vmatpush.bf16.msrb.mxu2 %v4647_v14 }
 0x391   : > { %v2333_v55 = vadd.f32 %v2332_v12, %v6255_v27  ;;  %v3446_v4 = vsel %vm3423_vm4, %v3372_v63, %v3365_v46  ;;  %v6728_v27 = vld [vmem:[#allocation14_spill] sm:$0xff]  ;;  %v3347_v20 = vmax.f32 %v3331_v35, 0.0 }
 0x392   : > { %v6449_v34 = vpop.f32.mrf.mxu3  ;;  %v3106_v23 = vld [vmem:[#allocation2 + $0x280] sm:$0xf0]  ;;  %v2462_v10 = vpop.f32.mrf.mxu0  ;;  %v3241_v57 = vmax.f32 %v3225_v22, 0.0 }
 0x393   : > { %v3161_v37 = vrot.slane %v3106_v23, 4  ;;  %v3162_v9 = vrot.slane %v2333_v55, 4  ;;  %v2463_v36 = vadd.f32 %v2462_v10, %v6419_v51  ;;  %v2531_v48 = vpop.f32.mrf.mxu1 }
 0x394   : > { %v3266_v60 = vmax.f32 %v3240_v54, %v3241_v57 }
 0x395   : > { %v2532_v28 = vadd.f32 %v2531_v48, %v2463_v36  ;;  %v3163_v38 = vsel %vm3145_vm3, %v3161_v37, %v3162_v9 }
 0x396   : > { %v3208_v61 = vadd.f32 %v3163_v38, %v6728_v27  ;;  %v3267_v29 = vrot.slane %v3266_v60, 4 }
 0x397   : > { %v3332_v3 = vadd.f32 %v6392_v43, %v2532_v28 }
 0x398   : > { %v2334_v44 = vpop.f32.mrf.mxu2  ;;  %v3268_v45 = vmax.f32 %v3266_v60, %v3267_v29 }
 0x399   : > { %v3348_v18 = vmax.f32 %v3332_v3, 0.0  ;;  %v2335_v50 = vadd.f32 %v2334_v44, %v6266_v39 }
 0x39a   : > { %v2465_v25 = vpop.f32.mrf.mxu0  ;;  %v2403_v51 = vpop.f32.mrf.mxu3  ;;  %v3269_v2 = vrot.slane %v3268_v45, 2 }
 0x39b   : > { %2644 = vst [vmem:[#allocation2 + $0x3a0] sm:$0xff] %v2335_v50  ;;  %v2534_v33 = vpop.f32.mrf.mxu1  ;;  %v3373_v16 = vmax.f32 %v3347_v20, %v3348_v18 }
 0x39c   : > { %v3270_v7 = vmax.f32 %v3268_v45, %v3269_v2 }
 0x39d   : > { %v3374_v46 = vrot.slane %v3373_v16, 4 }
 0x39e   : > { %v3271_v63 = vrot.slane %v3270_v7, 1 }
 0x39f   : > { %v3375_v39 = vmax.f32 %v3373_v16, %v3374_v46 }
 0x3a0   : > { %v2337_v12 = vpop.f32.mrf.mxu2  ;;  %v3272_v22 = vmax.f32 %v3270_v7, %v3271_v63 }
 0x3a1   : > { %v2338_v55 = vadd.f32 %v2337_v12, %v6269_v42  ;;  %v3376_v23 = vrot.slane %v3375_v39, 2  ;;  %v3226_v42 = vadd.f32 %v6368_v47, %v3208_v61 }
 0x3a2   : > { %v3108_v10 = vld [vmem:[#allocation2 + $0x3a0] sm:$0xf]  ;;  %v2467_v54 = vpop.f32.mrf.mxu0  ;;  %v3426_v57 = vsel %vm3425_vm5, %v3272_v22, %v6439_v52  ;;  %v2406_v35 = vpop.f32.mrf.mxu3 }
 0x3a3   : > { %v3164_v37 = vrot.slane %v3108_v10, 4  ;;  %2650 = vst [vmem:[#allocation2 + $0x318] sm:$0xff] %v2338_v55  ;;  %v2468_v36 = vadd.f32 %v2467_v54, %v6436_v59  ;;  %v2536_v48 = vpop.f32.mrf.mxu1  ;;  %v3377_v60 = vmax.f32 %v3375_v39, %v3376_v23  ;;  %v3242_v50 = vmax.f32 %v3226_v42, 0.0  ;;  %v4646_v10 = vld [vmem:[%s6573_s3 + $0x18] sm:$0xff] }
 0x3a4   : > { %3592 = vmatpush.bf16.msrb.mxu2 %v4646_v10 }
 0x3a5   : > { %v2537_v28 = vadd.f32 %v2536_v48, %v2468_v36  ;;  %v3165_v38 = vsel %vm3145_vm3, %v3162_v9, %v3164_v37  ;;  %v3378_v27 = vrot.slane %v3377_v60, 1 }
 0x3a6   : > { %v3209_v29 = vadd.f32 %v3165_v38, %v6252_v62 }
 0x3a7   : > { %v3379_v3 = vmax.f32 %v3377_v60, %v3378_v27  ;;  %v3333_v61 = vadd.f32 %v6387_v41, %v2537_v28 }
 0x3a8   : > { %v2339_v44 = vpop.f32.mrf.mxu2  ;;  %v3227_v45 = vadd.f32 %v6376_v19, %v3209_v29 }
 0x3a9   : > { %v2340_v52 = vadd.f32 %v2339_v44, %v6280_v1  ;;  %v3447_v20 = vsel %vm3425_vm5, %v3379_v3, %v3446_v4  ;;  %v3349_v12 = vmax.f32 %v3333_v61, 0.0 }
 0x3aa   : > { %v3109_v59 = vld [vmem:[#allocation2 + $0x318] sm:$0xf0]  ;;  %v2470_v18 = vpop.f32.mrf.mxu0  ;;  %v3243_v25 = vmax.f32 %v3227_v45, 0.0  ;;  %v2408_v16 = vpop.f32.mrf.mxu3 }
 0x3ab   : > { %v3166_v51 = vrot.slane %v3109_v59, 4  ;;  %v3167_v2 = vrot.slane %v2340_v52, 4  ;;  %v2471_v9 = vadd.f32 %v2470_v18, %v6449_v34  ;;  %v2539_v33 = vpop.f32.mrf.mxu1 }
 0x3ac   : > { %v3273_v62 = vmax.f32 %v3242_v50, %v3243_v25 }
 0x3ad   : > { %v2540_v14 = vadd.f32 %v2539_v33, %v2471_v9  ;;  %v3168_v17 = vsel %vm3145_vm3, %v3166_v51, %v3167_v2 }
 0x3ae   : > { %v3210_v1 = vadd.f32 %v3168_v17, %v6263_v26  ;;  %v3274_v7 = vrot.slane %v3273_v62, 4  ;;  %v4654_v26 = vld [vmem:[%s6573_s3 + $0x58] sm:$0xff] }
 0x3af   : > { %v3334_v4 = vadd.f32 %v6392_v43, %v2540_v14  ;;  %3605 = vmatpush.bf16.msrb.mxu3 %v4654_v26 }
 0x3b0   : > { %v2342_v46 = vpop.f32.mrf.mxu2  ;;  %v3275_v63 = vmax.f32 %v3273_v62, %v3274_v7  ;;  %v3228_v33 = vadd.f32 %v6368_v47, %v3210_v1 }
 0x3b1   : > { %v2343_v39 = vadd.f32 %v2342_v46, %v6287_v53  ;;  %v3350_v22 = vmax.f32 %v3334_v4, 0.0 }
 0x3b2   : > { %v2472_v34 = vpop.f32.mrf.mxu0  ;;  %v3276_v55 = vrot.slane %v3275_v63, 2  ;;  %v2411_v28 = vpop.f32.mrf.mxu3  ;;  %v3244_v4 = vmax.f32 %v3228_v33, 0.0 }
 0x3b3   : > { %2662 = vst [vmem:[#allocation2 + $0xb8] sm:$0xff] %v2343_v39  ;;  %v2541_v23 = vpop.f32.mrf.mxu1  ;;  %v3380_v54 = vmax.f32 %v3349_v12, %v3350_v22 }
 0x3b4   : > { %v3277_v37 = vmax.f32 %v3275_v63, %v3276_v55 }
 0x3b5   : > { %v3381_v36 = vrot.slane %v3380_v54, 4 }
 0x3b6   : > { %v3278_v53 = vrot.slane %v3277_v37, 1 }
 0x3b7   : > { %v3382_v48 = vmax.f32 %v3380_v54, %v3381_v36 }
 0x3b8   : > { %v2344_v60 = vpop.f32.mrf.mxu2  ;;  %v3279_v38 = vmax.f32 %v3277_v37, %v3278_v53 }
 0x3b9   : > { %v2345_v27 = vadd.f32 %v2344_v60, %v6294_v58  ;;  %v3383_v29 = vrot.slane %v3382_v48, 2 }
 0x3ba   : > { %v3111_v42 = vld [vmem:[#allocation2 + $0xb8] sm:$0xf]  ;;  %v2475_v3 = vpop.f32.mrf.mxu0  ;;  %v3428_v44 = vsel %vm3427_vm6, %v3279_v38, %v3426_v57  ;;  %v2413_v7 = vpop.f32.mrf.mxu3 }
 0x3bb   : > { %v3169_v45 = vrot.slane %v3111_v42, 4  ;;  %2668 = vst [vmem:[#allocation2 + $0x1f0] sm:$0xff] %v2345_v27  ;;  %v2476_v52 = vadd.f32 %v2475_v3, %v2406_v35  ;;  %v2544_v59 = vpop.f32.mrf.mxu1  ;;  %v3384_v18 = vmax.f32 %v3382_v48, %v3383_v29  ;;  %v4645_v48 = vld [vmem:[%s6573_s3 + $0x10] sm:$0xff] }
 0x3bc   : > { %3593 = vmatpush.bf16.msrb.mxu2 %v4645_v48 }
 0x3bd   : > { %v2545_v50 = vadd.f32 %v2544_v59, %v2476_v52  ;;  %v3170_v25 = vsel %vm3145_vm3, %v3167_v2, %v3169_v45  ;;  %v3385_v51 = vrot.slane %v3384_v18, 1 }
 0x3be   : > { %v3211_v9 = vadd.f32 %v3170_v25, %v6277_v49 }
 0x3bf   : > { %v3386_v62 = vmax.f32 %v3384_v18, %v3385_v51  ;;  %v3335_v34 = vadd.f32 %v6387_v41, %v2545_v50 }
 0x3c0   : > { %v2347_v58 = vpop.f32.mrf.mxu2  ;;  %v3229_v61 = vadd.f32 %v6376_v19, %v3211_v9 }
 0x3c1   : > { %v2348_v14 = vadd.f32 %v2347_v58, %v6301_v5  ;;  %v3448_v57 = vsel %vm3427_vm6, %v3386_v62, %v3447_v20  ;;  %v3351_v54 = vmax.f32 %v3335_v34, 0.0 }
 0x3c2   : > { %v3112_v17 = vld [vmem:[#allocation2 + $0x1f0] sm:$0xf0]  ;;  %v2477_v35 = vpop.f32.mrf.mxu0  ;;  %v3245_v46 = vmax.f32 %v3229_v61, 0.0  ;;  %v2416_v28 = vpop.f32.mrf.mxu3 }
 0x3c3   : > { %v3171_v63 = vrot.slane %v3112_v17, 4  ;;  %v3172_v2 = vrot.slane %v2348_v14, 4  ;;  %v2478_v39 = vadd.f32 %v2477_v35, %v2408_v16  ;;  %v2546_v12 = vpop.f32.mrf.mxu1 }
 0x3c4   : > { %v3280_v49 = vmax.f32 %v3244_v4, %v3245_v46 }
 0x3c5   : > { %v2547_v22 = vadd.f32 %v2546_v12, %v2478_v39  ;;  %v3173_v1 = vsel %vm3145_vm3, %v3171_v63, %v3172_v2 }
 0x3c6   : > { %v3212_v55 = vadd.f32 %v3173_v1, %v6284_v24  ;;  %v3281_v5 = vrot.slane %v3280_v49, 4  ;;  %v4653_v24 = vld [vmem:[%s6573_s3 + $0x50] sm:$0xff] }
 0x3c7   : > { %v3336_v20 = vadd.f32 %v6392_v43, %v2547_v22  ;;  %3606 = vmatpush.bf16.msrb.mxu3 %v4653_v24 }
 0x3c8   : > { %v2349_v23 = vpop.f32.mrf.mxu2  ;;  %v3282_v10 = vmax.f32 %v3280_v49, %v3281_v5 }
 0x3c9   : > { %v2350_v26 = vadd.f32 %v2349_v23, %v6312_v56  ;;  %v3352_v37 = vmax.f32 %v3336_v20, 0.0 }
 0x3ca   : > { %v2480_v36 = vpop.f32.mrf.mxu0  ;;  %v3283_v16 = vrot.slane %v3282_v10, 2  ;;  %v2418_v14 = vpop.f32.mrf.mxu3 }
 0x3cb   : > { %2680 = vst [vmem:[#allocation2 + $0xd8] sm:$0xff] %v2350_v26  ;;  %v2549_v53 = vpop.f32.mrf.mxu1  ;;  %v3387_v60 = vmax.f32 %v3351_v54, %v3352_v37 }
 0x3cc   : > { %v3284_v38 = vmax.f32 %v3282_v10, %v3283_v16 }
 0x3cd   : > { %v3388_v56 = vrot.slane %v3387_v60, 4 }
 0x3ce   : > { %v3285_v27 = vrot.slane %v3284_v38, 1 }
 0x3cf   : > { %v3389_v29 = vmax.f32 %v3387_v60, %v3388_v56 }
 0x3d0   : > { %v2352_v42 = vpop.f32.mrf.mxu2  ;;  %v3286_v3 = vmax.f32 %v3284_v38, %v3285_v27 }
 0x3d1   : > { %v2353_v45 = vadd.f32 %v2352_v42, %v6315_v6  ;;  %v3390_v52 = vrot.slane %v3389_v29, 2  ;;  %v3230_v6 = vadd.f32 %v6368_v47, %v3212_v55 }
 0x3d2   : > { %v3114_v59 = vld [vmem:[#allocation2 + $0xd8] sm:$0xf]  ;;  %v2482_v18 = vpop.f32.mrf.mxu0  ;;  %v3430_v50 = vsel %vm3429_vm7, %v3286_v3, %v3428_v44  ;;  %v2421_v26 = vpop.f32.mrf.mxu3 }
 0x3d3   : > { %v3174_v25 = vrot.slane %v3114_v59, 4  ;;  %2686 = vst [vmem:[#allocation2 + $0x108] sm:$0xff] %v2353_v45  ;;  %v2483_v51 = vadd.f32 %v2482_v18, %v2413_v7  ;;  %v2551_v9 = vpop.f32.mrf.mxu1  ;;  %v3391_v33 = vmax.f32 %v3389_v29, %v3390_v52  ;;  %v3246_v12 = vmax.f32 %v3230_v6, 0.0 }
 0x3d5   : > { %v6507_v62 = vadd.f32 %v2551_v9, %v2483_v51  ;;  %v3175_v58 = vsel %vm3145_vm3, %v3172_v2, %v3174_v25  ;;  %v3392_v61 = vrot.slane %v3391_v33, 1 }
 0x3d6   : > { %v3213_v17 = vadd.f32 %v3175_v58, %v6298_v21 }
 0x3d7   : > { %v3393_v35 = vmax.f32 %v3391_v33, %v3392_v61 }
 0x3d8   : > { %v2354_v4 = vpop.f32.mrf.mxu2  ;;  %v3231_v46 = vadd.f32 %v6376_v19, %v3213_v17 }
 0x3d9   : > { %v2355_v44 = vadd.f32 %v2354_v4, %v6326_v40  ;;  %v6515_v7 = vsel %vm3429_vm7, %v3393_v35, %v3448_v57  ;;  %v4644_v40 = vld [vmem:[%s6573_s3 + $0x8] sm:$0xff] }
 0x3da   : > { %v3115_v63 = vld [vmem:[#allocation2 + $0x108] sm:$0xf0]  ;;  %v2485_v39 = vpop.f32.mrf.mxu0  ;;  %v3247_v49 = vmax.f32 %v3231_v46, 0.0  ;;  %3594 = vmatpush.bf16.msrb.mxu2 %v4644_v40  ;;  %v2423_v56 = vpop.f32.mrf.mxu3 }
 0x3db   : > { %v3176_v2 = vrot.slane %v3115_v63, 4  ;;  %v3177_v22 = vrot.slane %v2355_v44, 4  ;;  %v2486_v1 = vadd.f32 %v2485_v39, %v2416_v28  ;;  %v2554_v34 = vpop.f32.mrf.mxu1  ;;  %v4652_v57 = vld [vmem:[%s6573_s3 + $0x48] sm:$0xff]  ;;  %v4651_v39 = vld [vmem:[%s6573_s3 + $0x40] sm:$0xff] }
 0x3dc   : > { %v3287_v21 = vmax.f32 %v3246_v12, %v3247_v49  ;;  %3607 = vmatpush.bf16.msrb.mxu3 %v4652_v57 }
 0x3dd   : > { %v2555_v5 = vadd.f32 %v2554_v34, %v2486_v1  ;;  %v3178_v55 = vsel %vm3145_vm3, %v3176_v2, %v3177_v22 }
 0x3de   : > { %v3214_v20 = vadd.f32 %v3178_v55, %v6309_v31  ;;  %v3288_v23 = vrot.slane %v3287_v21, 4 }
 0x3e0   : > { %v2357_v10 = vpop.f32.mrf.mxu2  ;;  %v3289_v54 = vmax.f32 %v3287_v21, %v3288_v23  ;;  %v3232_v18 = vadd.f32 %v6368_v47, %v3214_v20  ;;  %3608 = vmatpush.bf16.msrb.mxu3 %v4651_v39  ;;  %v3337_v20 = vadd.f32 %v6387_v41, %v6507_v62 }
 0x3e1   : > { %v2358_v37 = vadd.f32 %v2357_v10, %v6333_v30 }
 0x3e2   : > { %v2487_v36 = vpop.f32.mrf.mxu0  ;;  %v3290_v16 = vrot.slane %v3289_v54, 2  ;;  %v3248_v58 = vmax.f32 %v3232_v18, 0.0  ;;  %v2426_v35 = vpop.f32.mrf.mxu3 }
 0x3e3   : > { %2698 = vst [vmem:[#allocation2 + $0x190] sm:$0xff] %v2358_v37  ;;  %v2556_v31 = vpop.f32.mrf.mxu1 }
 0x3e4   : > { %v3291_v53 = vmax.f32 %v3289_v54, %v3290_v16  ;;  %v3353_v54 = vmax.f32 %v3337_v20, 0.0 }
 0x3e6   : > { %v3292_v48 = vrot.slane %v3291_v53, 1 }
 0x3e8   : > { %v2359_v24 = vpop.f32.mrf.mxu2  ;;  %v3293_v60 = vmax.f32 %v3291_v53, %v3292_v48 }
 0x3e9   : > { %v2360_v28 = vadd.f32 %v2359_v24, %v6340_v32 }
 0x3ea   : > { %v3117_v38 = vld [vmem:[#allocation2 + $0x190] sm:$0xf]  ;;  %v2490_v27 = vpop.f32.mrf.mxu0  ;;  %v3432_v29 = vsel %vm3431_vm8, %v3293_v60, %v3430_v50  ;;  %v2428_v23 = vpop.f32.mrf.mxu3 }
 0x3eb   : > { %v3179_v42 = vrot.slane %v3117_v38, 4  ;;  %2704 = vst [vmem:[#allocation2 + $0x1e0] sm:$0xff] %v2360_v28  ;;  %v2491_v30 = vadd.f32 %v2490_v27, %v2421_v26  ;;  %v2559_v3 = vpop.f32.mrf.mxu1 }
 0x3ed   : > { %v2560_v45 = vadd.f32 %v2559_v3, %v2491_v30  ;;  %v3180_v52 = vsel %vm3145_vm3, %v3177_v22, %v3179_v42 }
 0x3ee   : > { %v3215_v59 = vadd.f32 %v3180_v52, %v6323_v8 }
 0x3ef   : > { %v3339_v57 = vadd.f32 %v6387_v41, %v2560_v45 }
 0x3f0   : > { %v2362_v25 = vpop.f32.mrf.mxu2  ;;  %v3233_v51 = vadd.f32 %v6376_v19, %v3215_v59 }
 0x3f1   : > { %v2363_v32 = vadd.f32 %v2362_v25, %v6347_v11  ;;  %v4643_v11 = vld [vmem:[%s6573_s3] sm:$0xff] }
 0x3f2   : > { %v2492_v9 = vpop.f32.mrf.mxu0  ;;  %v3118_v33 = vld [vmem:[#allocation2 + $0x1e0] sm:$0xf0]  ;;  %v3249_v50 = vmax.f32 %v3233_v51, 0.0  ;;  %3595 = vmatpush.bf16.msrb.mxu2 %v4643_v11  ;;  %v2431_v42 = vpop.f32.mrf.mxu3 }
 0x3f3   : > { %v2493_v61 = vadd.f32 %v2492_v9, %v2423_v56  ;;  %v2561_v14 = vpop.f32.mrf.mxu1  ;;  %v3181_v17 = vrot.slane %v3118_v33, 4  ;;  %v3182_v6 = vrot.slane %v2363_v32, 4 }
 0x3f4   : > { %v3294_v4 = vmax.f32 %v3248_v58, %v3249_v50 }
 0x3f5   : > { %v2562_v46 = vadd.f32 %v2561_v14, %v2493_v61  ;;  %v3183_v8 = vsel %vm3145_vm3, %v3181_v17, %v3182_v6 }
 0x3f6   : > { %v3216_v44 = vadd.f32 %v3183_v8, %v6330_v15  ;;  %v3295_v63 = vrot.slane %v3294_v4, 4  ;;  %v3338_v15 = vadd.f32 %v6392_v43, %v2555_v5  ;;  %v3355_v5 = vmax.f32 %v3339_v57, 0.0 }
 0x3f7   : > { %v3340_v55 = vadd.f32 %v6392_v43, %v2562_v46 }
 0x3f8   : > { %v2364_v12 = vpop.f32.mrf.mxu2  ;;  %v3296_v49 = vmax.f32 %v3294_v4, %v3295_v63  ;;  %v3234_v56 = vadd.f32 %v6368_v47, %v3216_v44 }
 0x3f9   : > { %v2365_v2 = vadd.f32 %v2364_v12, %v6356_v13  ;;  %v3354_v13 = vmax.f32 %v3338_v15, 0.0  ;;  %v3356_v26 = vmax.f32 %v3340_v55, 0.0 }
 0x3fa   : > { %v2495_v22 = vpop.f32.mrf.mxu0  ;;  %v3297_v1 = vrot.slane %v3296_v49, 2  ;;  %v2433_v17 = vpop.f32.mrf.mxu3 }
 0x3fb   : > { %2716 = vst [vmem:[#allocation2 + $0x58] sm:$0xff] %v2365_v2  ;;  %v2564_v34 = vpop.f32.mrf.mxu1  ;;  %v3394_v24 = vmax.f32 %v3353_v54, %v3354_v13  ;;  %v3401_v60 = vmax.f32 %v3355_v5, %v3356_v26  ;;  %v4684_v26 = vld [vmem:[%s6574_s4] ss:$0 sm:$0xff] }
 0x3fc   : > { %v3298_v21 = vmax.f32 %v3296_v49, %v3297_v1 }
 0x3fd   : > { %v3395_v27 = vrot.slane %v3394_v24, 4  ;;  %v3402_v3 = vrot.slane %v3401_v60, 4 }
 0x3fe   : > { %v3299_v40 = vrot.slane %v3298_v21, 1 }
 0x3ff   : > { %v3396_v25 = vmax.f32 %v3394_v24, %v3395_v27  ;;  %v3403_v32 = vmax.f32 %v3401_v60, %v3402_v3 }
 0x400   : > { %v3300_v10 = vmax.f32 %v3298_v21, %v3299_v40 }
 0x401   : > { %v3397_v47 = vrot.slane %v3396_v25, 2  ;;  %v3404_v61 = vrot.slane %v3403_v32, 2 }
 0x402   : > { %v2497_v37 = vpop.f32.mrf.mxu0  ;;  %v3120_v36 = vld [vmem:[#allocation2 + $0x58] sm:$0xf]  ;;  %v3434_v16 = vsel %vm3433_vm9, %v3300_v10, %v3432_v29  ;;  %v3250_v29 = vmax.f32 %v3234_v56, 0.0 }
 0x403   : > { %v2498_v31 = vadd.f32 %v2497_v37, %v2428_v23  ;;  %v2566_v53 = vpop.f32.mrf.mxu1  ;;  %v3184_v48 = vrot.slane %v3120_v36, 4  ;;  %v3398_v4 = vmax.f32 %v3396_v25, %v3397_v47  ;;  %v3405_v63 = vmax.f32 %v3403_v32, %v3404_v61 }
 0x405   : > { %v2567_v62 = vadd.f32 %v2566_v53, %v2498_v31  ;;  %v3185_v28 = vsel %vm3145_vm3, %v3182_v6, %v3184_v48 }
 0x406   : > { %v3217_v38 = vadd.f32 %v3185_v28, %v6344_v0 }
 0x407   : > { %v3341_v33 = vadd.f32 %v6387_v41, %v2567_v62  ;;  %v3399_v41 = vrot.slane %v3398_v4, 1 }
 0x408   : > { %v3235_v30 = vadd.f32 %v6376_v19, %v3217_v38 }
 0x409   : > { %v3357_v14 = vmax.f32 %v3341_v33, 0.0  ;;  %v3400_v34 = vmax.f32 %v3398_v4, %v3399_v41 }
 0x40a   : > { %v2500_v45 = vpop.f32.mrf.mxu0  ;;  %v3251_v52 = vmax.f32 %v3235_v30, 0.0 }
 0x40b   : > { %v2501_v59 = vadd.f32 %v2500_v45, %v2431_v42  ;;  %v2569_v18 = vpop.f32.mrf.mxu1  ;;  %v3450_v23 = vsel %vm3431_vm8, %v3400_v34, %v6515_v7 }
 0x40c   : > { %v3301_v51 = vmax.f32 %v3250_v29, %v3251_v52 }
 0x40d   : > { %v2570_v9 = vadd.f32 %v2569_v18, %v2501_v59 }
 0x40e   : > { %v3302_v58 = vrot.slane %v3301_v51, 4 }
 0x40f   : > { %v3342_v0 = vadd.f32 %v6392_v43, %v2570_v9  ;;  %v3406_v43 = vrot.slane %v3405_v63, 1 }
 0x410   : > { %v3303_v50 = vmax.f32 %v3301_v51, %v3302_v58 }
 0x411   : > { %v3358_v19 = vmax.f32 %v3342_v0, 0.0  ;;  %v3407_v21 = vmax.f32 %v3405_v63, %v3406_v43 }
 0x412   : > { %v2502_v6 = vpop.f32.mrf.mxu0  ;;  %v3304_v35 = vrot.slane %v3303_v50, 2 }
 0x413   : > { %v3408_v46 = vmax.f32 %v3357_v14, %v3358_v19  ;;  %v2571_v8 = vpop.f32.mrf.mxu1  ;;  %v3451_v40 = vsel %vm3433_vm9, %v3407_v21, %v3450_v23 }
 0x414   : > { %v3305_v44 = vmax.f32 %v3303_v50, %v3304_v35 }
 0x415   : > { %v3409_v11 = vrot.slane %v3408_v46, 4 }
 0x416   : > { %v3306_v39 = vrot.slane %v3305_v44, 1 }
 0x417   : > { %v3410_v12 = vmax.f32 %v3408_v46, %v3409_v11 }
 0x418   : > { %v3307_v49 = vmax.f32 %v3305_v44, %v3306_v39 }
 0x419   : > { %v3411_v2 = vrot.slane %v3410_v12, 2 }
 0x41a   : > { %v3436_v22 = vsel %vm3435_vm10, %v3307_v49, %v3434_v16 }
 0x41b   : > { %v3454_v1 = vpack.c.bf16 %v3436_v22, %v3436_v22  ;;  %v3412_v15 = vmax.f32 %v3410_v12, %v3411_v2 }
 0x41d   : > { %3596 = vmatmul.bf16.vlgmr.msrb.gmra.mxu2 %v3454_v1  ;;  %v3413_v55 = vrot.slane %v3412_v15, 1 }
 0x41f   : > { %v3414_v20 = vmax.f32 %v3412_v15, %v3413_v55 }
 0x421   : > { %v3452_v57 = vsel %vm3435_vm10, %v3414_v20, %v3451_v40 }
 0x422   : > { %v3455_v13 = vpack.c.bf16 %v3452_v57, %v3452_v57 }
 0x424   : > { %3609 = vmatmul.bf16.vlgmr.msrb.gmra.mxu3 %v3455_v13 }
 0x4a0   : > { %v3597_v10 = vpop.f32.mrf.mxu2 }
 0x4a1   : > { %v3598_v54 = vadd.f32 %v4684_v26, %v3597_v10 }
 0x4a7   : > { %v3610_v7 = vpop.f32.mrf.mxu3 }
 0x4a8   : > { %v3599_v37 = vpop.f32.mrf.mxu2  ;;  %v3611_v36 = vadd.f32 %v3610_v7, %v3598_v54 }
 0x4aa   : > { %3614 = vst [vmem:[%s227_s10] sm:$0xff] %v3611_v36 }
 0x4af   : > { %v3612_v16 = vpop.f32.mrf.mxu3 }
 0x4b0 PF: > { %s15_s18 = sadd.s32 1, %s4691_s18  }
 0x4b1   : > { %p12_p5 = scmp.ge.s32.totalorder %s15_s18, 4  }
 0x4b3   :  { %14 = sbr.rel (!%p12_p5) target bundleno = 1 (0x1), region = 71 }

</bundles_post_ra>
